<compile_context>
chip_gen: v5e
topology: v5e:2x2
jax: 0.10.0
libtpu: 0.0.40
codegen_flags: <defaults>
</compile_context>

<pallas_src>
import math

import jax
import jax.numpy as jnp
from jax.experimental import pallas as pl
from jax.experimental.pallas import tpu as pltpu


# ----------------------------- kernel helpers -----------------------------

def _layer_norm(x, g, b, eps=1e-5):
    mu = jnp.mean(x, axis=-1, keepdims=True)
    xc = x - mu
    var = jnp.mean(xc * xc, axis=-1, keepdims=True)
    return xc * jax.lax.rsqrt(var + eps) * g + b


def _gelu_new(x):
    # GPT-2 "gelu_new" activation (kept f32: v5e has no bf16 VPU/EUP).
    c = math.sqrt(2.0 / math.pi)
    return 0.5 * x * (1.0 + jnp.tanh(c * (x + 0.044715 * x * x * x)))


# ------------------------------- the kernel -------------------------------
# grid = (batch_blocks,): one invocation runs embed-LN + wpe, all GPT-2
# layers (unrolled Python loop over VMEM-resident stacked weights) and ln_f.

def _dt_kernel(x_ref, mask_ref, wpe_ref, eln_g_ref, eln_b_ref,
               ln1_g_ref, ln1_b_ref, wqkv_ref, bqkv_ref, wo_ref, bo_ref,
               ln2_g_ref, ln2_b_ref, wfc_ref, bfc_ref, wpr_ref, bpr_ref,
               lnf_g_ref, lnf_b_ref, out_ref):
    Bb, S, H = x_ref.shape
    n_layer = ln1_g_ref.shape[0]
    Hp = wqkv_ref.shape[2] // 3          # lane-tile-aligned q/k/v section width

    # ---- embed LayerNorm + GPT-2 wpe (position_ids = arange(S)) ----
    x = x_ref[...]                                                 # (Bb,S,H) f32
    h = _layer_norm(x, eln_g_ref[...], eln_b_ref[...]) + wpe_ref[...][None, :, :]
    h = h.reshape(Bb * S, H)

    # ---- additive causal + key-padding bias, built once per batch block ----
    qpos = jax.lax.broadcasted_iota(jnp.int32, (1, S, S), 1)
    kpos = jax.lax.broadcasted_iota(jnp.int32, (1, S, S), 2)
    keep = jnp.logical_and(kpos <= qpos, mask_ref[...] > 0.5)      # (Bb,S,S)
    bias = jnp.where(keep, 0.0, -1e9).astype(jnp.float32)

    # ---- GPT-2 blocks: unrolled layer loop, all weights VMEM-resident ----
    for l in range(n_layer):
        # self-attention (single head); head_scale pre-folded into Wq/bq.
        a_in = _layer_norm(h, ln1_g_ref[l], ln1_b_ref[l]).astype(jnp.bfloat16)
        qkv = jnp.dot(a_in, wqkv_ref[l],
                      preferred_element_type=jnp.float32) + bqkv_ref[l]
        q = qkv[:, 0 * Hp:1 * Hp].reshape(Bb, S, Hp).astype(jnp.bfloat16)
        k = qkv[:, 1 * Hp:2 * Hp].reshape(Bb, S, Hp).astype(jnp.bfloat16)
        v = qkv[:, 2 * Hp:3 * Hp].reshape(Bb, S, Hp).astype(jnp.bfloat16)
        scores = jnp.einsum('bqd,bkd->bqk', q, k,
                            preferred_element_type=jnp.float32) + bias
        m = jnp.max(scores, axis=-1, keepdims=True)
        e = jnp.exp(scores - m)
        p = e * pl.reciprocal(jnp.sum(e, axis=-1, keepdims=True), approx=True)
        att = jnp.einsum('bqk,bkd->bqd', p.astype(jnp.bfloat16), v,
                         preferred_element_type=jnp.float32)
        att = att.reshape(Bb * S, Hp).astype(jnp.bfloat16)
        h = h + (jnp.dot(att, wo_ref[l],
                         preferred_element_type=jnp.float32) + bo_ref[l])

        # MLP (c_fc -> gelu_new -> c_proj)
        m_in = _layer_norm(h, ln2_g_ref[l], ln2_b_ref[l]).astype(jnp.bfloat16)
        ff = jnp.dot(m_in, wfc_ref[l],
                     preferred_element_type=jnp.float32) + bfc_ref[l]
        ff = _gelu_new(ff)
        h = h + (jnp.dot(ff.astype(jnp.bfloat16), wpr_ref[l],
                         preferred_element_type=jnp.float32) + bpr_ref[l])

    # ---- final GPT-2 ln_f; bf16 writeback halves output store bytes ----
    hf = _layer_norm(h, lnf_g_ref[...], lnf_b_ref[...])
    out_ref[...] = hf.reshape(Bb, S, H).astype(out_ref.dtype)


# ------------------------------ pallas wrapper ------------------------------

def _run_transformer(kparams, stacked, mask3, wpe):
    B, S, H = stacked.shape
    L, _, H3p = kparams['wqkv'].shape
    Hp = H3p // 3

    # >=2 batch blocks keep both v7x TensorCores busy ("parallel" axis);
    # weight blocks have constant index maps so they are fetched once and
    # reused across batch blocks.  Harmless on single-TC v5e/v6e.
    nb = 2 if (B % 2 == 0 and B >= 2) else 1
    Bblk = B // nb

    def full(shape):
        return pl.BlockSpec(shape, lambda b, _s=shape: (0,) * len(_s))

    in_specs = [
        pl.BlockSpec((Bblk, S, H), lambda b: (b, 0, 0)),    # token embeddings
        pl.BlockSpec((Bblk, 1, S), lambda b: (b, 0, 0)),    # key padding mask
        full((S, H)),                                       # wpe (pre-sliced)
        full((1, H)), full((1, H)),                         # embed_ln g/b
        full((L, 1, H)), full((L, 1, H)),                   # ln_1 g/b
        full((L, H, 3 * Hp)), full((L, 1, 3 * Hp)),         # fused W_qkv / b_qkv
        full((L, Hp, H)), full((L, 1, H)),                  # attn c_proj
        full((L, 1, H)), full((L, 1, H)),                   # ln_2 g/b
        full((L, H, 4 * H)), full((L, 1, 4 * H)),           # mlp c_fc
        full((L, 4 * H, H)), full((L, 1, H)),               # mlp c_proj
        full((1, H)), full((1, H)),                         # ln_f g/b
    ]
    out_spec = pl.BlockSpec((Bblk, S, H), lambda b: (b, 0, 0))

    return pl.pallas_call(
        _dt_kernel,
        out_shape=jax.ShapeDtypeStruct((B, S, H), jnp.bfloat16),
        grid_spec=pltpu.PrefetchScalarGridSpec(
            num_scalar_prefetch=0,
            grid=(nb,),
            in_specs=in_specs,
            out_specs=out_spec),
        compiler_params=pltpu.CompilerParams(
            dimension_semantics=("parallel",),
            vmem_limit_bytes=48 * 1024 * 1024),
    )(stacked, mask3, wpe,
      kparams['embed_ln_g'], kparams['embed_ln_b'],
      kparams['ln1_g'], kparams['ln1_b'],
      kparams['wqkv'], kparams['bqkv'],
      kparams['wo'], kparams['bo'],
      kparams['ln2_g'], kparams['ln2_b'],
      kparams['wfc'], kparams['bfc'],
      kparams['wpr'], kparams['bpr'],
      kparams['lnf_g'], kparams['lnf_b'])


# ------------------------------- JAX glue ----------------------------------

def decision_transformer_forward(kparams, states, actions, rewards, returns_to_go,
                                 timesteps, attention_mask=None, style_ids=None):
    del rewards  # unused by the PyTorch forward as well
    B, T = states.shape[0], states.shape[1]
    H = kparams['embed_state_w'].shape[1]
    S = 3 * T

    if attention_mask is None:
        attention_mask = jnp.ones((B, T), dtype=jnp.int32)

    # embedding gathers (glue)
    time_emb = kparams['embed_timestep'][timesteps]                # (B,T,H)
    style_emb = kparams['embed_style'][style_ids][:, None, :]      # (B,1,H)

    state_emb = states @ kparams['embed_state_w'] + kparams['embed_state_b'] + time_emb + style_emb
    act_emb = actions @ kparams['embed_action_w'] + kparams['embed_action_b'] + time_emb + style_emb
    ret_emb = returns_to_go @ kparams['embed_return_w'] + kparams['embed_return_b'] + time_emb + style_emb

    # interleave (return, state, action) tokens -> (B, 3T, H)
    stacked = jnp.stack([ret_emb, state_emb, act_emb], axis=1)
    stacked = jnp.transpose(stacked, (0, 2, 1, 3)).reshape(B, S, H).astype(jnp.float32)

    # repeat_interleave(3) padding mask, passed as a (B,1,S) row; causal part
    # of the bias is rebuilt inside the kernel from iota.
    mask3 = jnp.repeat(attention_mask.astype(jnp.float32), 3, axis=1).reshape(B, 1, S)

    wpe = kparams['wpe'][:S].astype(jnp.float32)   # position_ids = arange(S)

    hidden = _run_transformer(kparams, stacked, mask3, wpe)        # (B,S,H) bf16

    # x.view(B,T,3,H).permute(0,2,1,3)[:, 1] -> state tokens (index 3t+1);
    # tiny lane-sparse (H, act_dim) head + tanh stays in XLA.
    state_h = hidden.reshape(B, T, 3, H)[:, :, 1, :].astype(jnp.float32)
    action_preds = jnp.tanh(state_h @ kparams['head_w'] + kparams['head_b'])
    return action_preds


def prepare_kernel_params(p):
    """One-time conversion of f32 master params into kernel-ready form:
    bf16 MXU weights, head_scale folded into Wq/bq, QKV fused and packed into
    128-lane-aligned sections (zero padding; Wo gets matching zero rows)."""
    H = p['embed_state_w'].shape[1]
    scale = 1.0 / math.sqrt(H)                 # n_head = 1 -> head_dim == H
    Hp = ((H + 127) // 128) * 128              # lane-tile-aligned section width

    def padc(a):                               # pad last axis H -> Hp with zeros
        return jnp.pad(a, ((0, 0), (0, 0), (0, Hp - a.shape[-1])))

    wqkv = jnp.concatenate(
        [padc(p['wq'] * scale), padc(p['wk']), padc(p['wv'])],
        axis=-1).astype(jnp.bfloat16)                          # (L, H, 3*Hp)
    bqkv = jnp.concatenate(
        [padc(p['bq'] * scale), padc(p['bk']), padc(p['bv'])], axis=-1)  # f32
    wo = jnp.pad(p['wo'], ((0, 0), (0, Hp - H), (0, 0))).astype(jnp.bfloat16)

    kp = dict(p)
    kp.update(wqkv=wqkv, bqkv=bqkv, wo=wo,
              wfc=p['wfc'].astype(jnp.bfloat16),
              wpr=p['wpr'].astype(jnp.bfloat16))
    for k in ('wq', 'wk', 'wv', 'bq', 'bk', 'bv'):
        del kp[k]
    return kp


def init_params(key, state_dim, act_dim, hidden_size, max_length, num_styles,
                n_layer=3, timestep_vocab=2907):
    H = hidden_size
    n_positions = 3 * max_length
    keys = iter(jax.random.split(key, 64))

    def nrm(shape, scale=0.02):
        return (scale * jax.random.normal(next(keys), shape)).astype(jnp.float32)

    z = lambda *s: jnp.zeros(s, jnp.float32)
    o = lambda *s: jnp.ones(s, jnp.float32)

    return {
        'embed_timestep': nrm((timestep_vocab, H)),
        'embed_style': nrm((num_styles, H)),
        'embed_return_w': nrm((1, H)), 'embed_return_b': z(H),
        'embed_state_w': nrm((state_dim, H)), 'embed_state_b': z(H),
        'embed_action_w': nrm((act_dim, H)), 'embed_action_b': z(H),
        'embed_ln_g': o(1, H), 'embed_ln_b': z(1, H),
        'wpe': nrm((n_positions, H)),
        # GPT-2 blocks (stacked along layer dim)
        'ln1_g': o(n_layer, 1, H), 'ln1_b': z(n_layer, 1, H),
        'wq': nrm((n_layer, H, H)), 'bq': z(n_layer, 1, H),
        'wk': nrm((n_layer, H, H)), 'bk': z(n_layer, 1, H),
        'wv': nrm((n_layer, H, H)), 'bv': z(n_layer, 1, H),
        'wo': nrm((n_layer, H, H)), 'bo': z(n_layer, 1, H),
        'ln2_g': o(n_layer, 1, H), 'ln2_b': z(n_layer, 1, H),
        'wfc': nrm((n_layer, H, 4 * H)), 'bfc': z(n_layer, 1, 4 * H),
        'wpr': nrm((n_layer, 4 * H, H)), 'bpr': z(n_layer, 1, H),
        'lnf_g': o(1, H), 'lnf_b': z(1, H),
        # predict_action head (applied in XLA glue)
        'head_w': nrm((H, act_dim)), 'head_b': z(1, act_dim),
    }


# --------------------------------- main ------------------------------------

if __name__ == "__main__":
    key = jax.random.PRNGKey(0)
    B, T = 2, 8
    state_dim, act_dim, hidden, num_styles, max_length = 4, 3, 32, 3, 8

    kp, k1, k2, k3, k4, k5, k6 = jax.random.split(key, 7)
    params = init_params(kp, state_dim, act_dim, hidden, max_length, num_styles)
    kparams = prepare_kernel_params(params)   # one-time bf16 cast / scale fold / QKV pack

    states = jax.random.normal(k1, (B, T, state_dim), jnp.float32)
    actions = jax.random.normal(k2, (B, T, act_dim), jnp.float32)
    rewards = jax.random.normal(k3, (B, T, 1), jnp.float32)
    returns_to_go = jax.random.normal(k4, (B, T, 1), jnp.float32)
    timesteps = jax.random.randint(k5, (B, T), 0, 2907, dtype=jnp.int32)
    style_ids = jax.random.randint(k6, (B,), 0, num_styles, dtype=jnp.int32)

    action_preds = decision_transformer_forward(
        kparams, states, actions, rewards, returns_to_go, timesteps,
        attention_mask=None, style_ids=style_ids)
    action_preds = jax.block_until_ready(action_preds)

    assert action_preds.shape == (B, T, act_dim)
    assert bool(jnp.all(jnp.isfinite(action_preds)))
    print("KERNEL_OK")
</pallas_src>

<mosaic_0001>
module attributes {stable_mosaic.version = 11 : i64} {
  func.func @_dt_kernel(%arg0: i32, %arg1: memref<1x24x32xf32, #tpu.memory_space<vmem>>, %arg2: memref<1x1x24xf32, #tpu.memory_space<vmem>>, %arg3: memref<24x32xf32, #tpu.memory_space<vmem>>, %arg4: memref<1x32xf32, #tpu.memory_space<vmem>>, %arg5: memref<1x32xf32, #tpu.memory_space<vmem>>, %arg6: memref<3x1x32xf32, #tpu.memory_space<vmem>>, %arg7: memref<3x1x32xf32, #tpu.memory_space<vmem>>, %arg8: memref<3x32x384xbf16, #tpu.memory_space<vmem>>, %arg9: memref<3x1x384xf32, #tpu.memory_space<vmem>>, %arg10: memref<3x128x32xbf16, #tpu.memory_space<vmem>>, %arg11: memref<3x1x32xf32, #tpu.memory_space<vmem>>, %arg12: memref<3x1x32xf32, #tpu.memory_space<vmem>>, %arg13: memref<3x1x32xf32, #tpu.memory_space<vmem>>, %arg14: memref<3x32x128xbf16, #tpu.memory_space<vmem>>, %arg15: memref<3x1x128xf32, #tpu.memory_space<vmem>>, %arg16: memref<3x128x32xbf16, #tpu.memory_space<vmem>>, %arg17: memref<3x1x32xf32, #tpu.memory_space<vmem>>, %arg18: memref<1x32xf32, #tpu.memory_space<vmem>>, %arg19: memref<1x32xf32, #tpu.memory_space<vmem>>, %arg20: memref<1x24x32xbf16, #tpu.memory_space<vmem>>) attributes {dimension_semantics = [#tpu.dimension_semantics<parallel>], iteration_bounds = array<i64: 2>, scalar_prefetch = 0 : i64, scratch_operands = 0 : i64, tpu.core_type = #tpu.core_type<tc>, window_params = [{transform_indices = @transform_0, window_bounds = array<i64: 1, 24, 32>}, {transform_indices = @transform_1, window_bounds = array<i64: 1, 1, 24>}, {pipeline_mode = #tpu.pipeline_mode<synchronous>, transform_indices = @transform_2, window_bounds = array<i64: 24, 32>}, {pipeline_mode = #tpu.pipeline_mode<synchronous>, transform_indices = @transform_3, window_bounds = array<i64: 1, 32>}, {pipeline_mode = #tpu.pipeline_mode<synchronous>, transform_indices = @transform_4, window_bounds = array<i64: 1, 32>}, {pipeline_mode = #tpu.pipeline_mode<synchronous>, transform_indices = @transform_5, window_bounds = array<i64: 3, 1, 32>}, {pipeline_mode = #tpu.pipeline_mode<synchronous>, transform_indices = @transform_6, window_bounds = array<i64: 3, 1, 32>}, {pipeline_mode = #tpu.pipeline_mode<synchronous>, transform_indices = @transform_7, window_bounds = array<i64: 3, 32, 384>}, {pipeline_mode = #tpu.pipeline_mode<synchronous>, transform_indices = @transform_8, window_bounds = array<i64: 3, 1, 384>}, {pipeline_mode = #tpu.pipeline_mode<synchronous>, transform_indices = @transform_9, window_bounds = array<i64: 3, 128, 32>}, {pipeline_mode = #tpu.pipeline_mode<synchronous>, transform_indices = @transform_10, window_bounds = array<i64: 3, 1, 32>}, {pipeline_mode = #tpu.pipeline_mode<synchronous>, transform_indices = @transform_11, window_bounds = array<i64: 3, 1, 32>}, {pipeline_mode = #tpu.pipeline_mode<synchronous>, transform_indices = @transform_12, window_bounds = array<i64: 3, 1, 32>}, {pipeline_mode = #tpu.pipeline_mode<synchronous>, transform_indices = @transform_13, window_bounds = array<i64: 3, 32, 128>}, {pipeline_mode = #tpu.pipeline_mode<synchronous>, transform_indices = @transform_14, window_bounds = array<i64: 3, 1, 128>}, {pipeline_mode = #tpu.pipeline_mode<synchronous>, transform_indices = @transform_15, window_bounds = array<i64: 3, 128, 32>}, {pipeline_mode = #tpu.pipeline_mode<synchronous>, transform_indices = @transform_16, window_bounds = array<i64: 3, 1, 32>}, {pipeline_mode = #tpu.pipeline_mode<synchronous>, transform_indices = @transform_17, window_bounds = array<i64: 1, 32>}, {pipeline_mode = #tpu.pipeline_mode<synchronous>, transform_indices = @transform_18, window_bounds = array<i64: 1, 32>}, {transform_indices = @transform_19, window_bounds = array<i64: 1, 24, 32>}]} {
    %c0 = arith.constant 0 : index
    %c0_0 = arith.constant 0 : index
    %c0_1 = arith.constant 0 : index
    %0 = vector.load %arg1[%c0, %c0_0, %c0_1] : memref<1x24x32xf32, #tpu.memory_space<vmem>>, vector<1x24x32xf32>
    %c0_2 = arith.constant 0 : index
    %c0_3 = arith.constant 0 : index
    %1 = vector.load %arg4[%c0_2, %c0_3] : memref<1x32xf32, #tpu.memory_space<vmem>>, vector<1x32xf32>
    %c0_4 = arith.constant 0 : index
    %c0_5 = arith.constant 0 : index
    %2 = vector.load %arg5[%c0_4, %c0_5] : memref<1x32xf32, #tpu.memory_space<vmem>>, vector<1x32xf32>
    %cst = arith.constant dense<0.000000e+00> : vector<1x24xf32>
    %3 = vector.multi_reduction <add>, %0, %cst [2] : vector<1x24x32xf32> to vector<1x24xf32>
    %4 = vector.shape_cast %3 : vector<1x24xf32> to vector<1x24x1xf32>
    %cst_6 = arith.constant 3.200000e+01 : f32
    %5 = vector.broadcast %cst_6 : f32 to vector<1x24x1xf32>
    %6 = arith.divf %4, %5 : vector<1x24x1xf32>
    %7 = vector.broadcast %6 : vector<1x24x1xf32> to vector<1x24x32xf32>
    %8 = arith.subf %0, %7 : vector<1x24x32xf32>
    %9 = arith.mulf %8, %8 : vector<1x24x32xf32>
    %cst_7 = arith.constant dense<0.000000e+00> : vector<1x24xf32>
    %10 = vector.multi_reduction <add>, %9, %cst_7 [2] : vector<1x24x32xf32> to vector<1x24xf32>
    %11 = vector.shape_cast %10 : vector<1x24xf32> to vector<1x24x1xf32>
    %cst_8 = arith.constant 3.200000e+01 : f32
    %12 = vector.broadcast %cst_8 : f32 to vector<1x24x1xf32>
    %13 = arith.divf %11, %12 : vector<1x24x1xf32>
    %cst_9 = arith.constant 9.99999974E-6 : f32
    %14 = vector.broadcast %cst_9 : f32 to vector<1x24x1xf32>
    %15 = arith.addf %13, %14 : vector<1x24x1xf32>
    %16 = math.rsqrt %15 : vector<1x24x1xf32>
    %17 = vector.broadcast %16 : vector<1x24x1xf32> to vector<1x24x32xf32>
    %18 = arith.mulf %8, %17 : vector<1x24x32xf32>
    %19 = vector.shape_cast %1 : vector<1x32xf32> to vector<1x1x32xf32>
    %20 = vector.broadcast %19 : vector<1x1x32xf32> to vector<1x24x32xf32>
    %21 = arith.mulf %18, %20 : vector<1x24x32xf32>
    %22 = vector.shape_cast %2 : vector<1x32xf32> to vector<1x1x32xf32>
    %23 = vector.broadcast %22 : vector<1x1x32xf32> to vector<1x24x32xf32>
    %24 = arith.addf %21, %23 : vector<1x24x32xf32>
    %c0_10 = arith.constant 0 : index
    %c0_11 = arith.constant 0 : index
    %25 = vector.load %arg3[%c0_10, %c0_11] : memref<24x32xf32, #tpu.memory_space<vmem>>, vector<24x32xf32>
    %26 = vector.shape_cast %25 : vector<24x32xf32> to vector<1x24x32xf32>
    %27 = arith.addf %24, %26 : vector<1x24x32xf32>
    %28 = vector.shape_cast %27 : vector<1x24x32xf32> to vector<24x32xf32>
    %29 = tpu.iota {dimensions = array<i32: 1>} : vector<1x24x24xi32>
    %30 = tpu.iota {dimensions = array<i32: 2>} : vector<1x24x24xi32>
    %31 = arith.cmpi sle, %30, %29 : vector<1x24x24xi32>
    %c0_12 = arith.constant 0 : index
    %c0_13 = arith.constant 0 : index
    %c0_14 = arith.constant 0 : index
    %32 = vector.load %arg2[%c0_12, %c0_13, %c0_14] : memref<1x1x24xf32, #tpu.memory_space<vmem>>, vector<1x1x24xf32>
    %cst_15 = arith.constant 5.000000e-01 : f32
    %33 = vector.broadcast %cst_15 : f32 to vector<1x1x24xf32>
    %34 = arith.cmpf ogt, %32, %33 : vector<1x1x24xf32>
    %35 = vector.broadcast %34 : vector<1x1x24xi1> to vector<1x24x24xi1>
    %36 = arith.andi %31, %35 : vector<1x24x24xi1>
    %cst_16 = arith.constant 0.000000e+00 : f32
    %cst_17 = arith.constant -1.000000e+09 : f32
    %37 = vector.broadcast %cst_16 : f32 to vector<1x24x24xf32>
    %38 = vector.broadcast %cst_17 : f32 to vector<1x24x24xf32>
    %39 = arith.select %36, %37, %38 : vector<1x24x24xi1>, vector<1x24x24xf32>
    %c0_18 = arith.constant 0 : index
    %c0_19 = arith.constant 0 : index
    %c0_20 = arith.constant 0 : index
    %40 = vector.load %arg6[%c0_18, %c0_19, %c0_20] : memref<3x1x32xf32, #tpu.memory_space<vmem>>, vector<1x1x32xf32>
    %41 = vector.shape_cast %40 : vector<1x1x32xf32> to vector<1x32xf32>
    %c0_21 = arith.constant 0 : index
    %c0_22 = arith.constant 0 : index
    %c0_23 = arith.constant 0 : index
    %42 = vector.load %arg7[%c0_21, %c0_22, %c0_23] : memref<3x1x32xf32, #tpu.memory_space<vmem>>, vector<1x1x32xf32>
    %43 = vector.shape_cast %42 : vector<1x1x32xf32> to vector<1x32xf32>
    %cst_24 = arith.constant dense<0.000000e+00> : vector<24xf32>
    %44 = vector.multi_reduction <add>, %28, %cst_24 [1] : vector<24x32xf32> to vector<24xf32>
    %45 = vector.shape_cast %44 : vector<24xf32> to vector<24x1xf32>
    %cst_25 = arith.constant 3.200000e+01 : f32
    %46 = vector.broadcast %cst_25 : f32 to vector<24x1xf32>
    %47 = arith.divf %45, %46 : vector<24x1xf32>
    %48 = vector.broadcast %47 : vector<24x1xf32> to vector<24x32xf32>
    %49 = arith.subf %28, %48 : vector<24x32xf32>
    %50 = arith.mulf %49, %49 : vector<24x32xf32>
    %cst_26 = arith.constant dense<0.000000e+00> : vector<24xf32>
    %51 = vector.multi_reduction <add>, %50, %cst_26 [1] : vector<24x32xf32> to vector<24xf32>
    %52 = vector.shape_cast %51 : vector<24xf32> to vector<24x1xf32>
    %cst_27 = arith.constant 3.200000e+01 : f32
    %53 = vector.broadcast %cst_27 : f32 to vector<24x1xf32>
    %54 = arith.divf %52, %53 : vector<24x1xf32>
    %cst_28 = arith.constant 9.99999974E-6 : f32
    %55 = vector.broadcast %cst_28 : f32 to vector<24x1xf32>
    %56 = arith.addf %54, %55 : vector<24x1xf32>
    %57 = math.rsqrt %56 : vector<24x1xf32>
    %58 = vector.broadcast %57 : vector<24x1xf32> to vector<24x32xf32>
    %59 = arith.mulf %49, %58 : vector<24x32xf32>
    %60 = vector.broadcast %41 : vector<1x32xf32> to vector<24x32xf32>
    %61 = arith.mulf %59, %60 : vector<24x32xf32>
    %62 = vector.broadcast %43 : vector<1x32xf32> to vector<24x32xf32>
    %63 = arith.addf %61, %62 : vector<24x32xf32>
    %64 = arith.truncf %63 : vector<24x32xf32> to vector<24x32xbf16>
    %c0_29 = arith.constant 0 : index
    %c0_30 = arith.constant 0 : index
    %c0_31 = arith.constant 0 : index
    %65 = vector.load %arg8[%c0_29, %c0_30, %c0_31] : memref<3x32x384xbf16, #tpu.memory_space<vmem>>, vector<1x32x384xbf16>
    %66 = vector.shape_cast %65 : vector<1x32x384xbf16> to vector<32x384xbf16>
    %cst_32 = arith.constant dense<0.000000e+00> : vector<24x384xf32>
    %67 = tpu.matmul %64, %66, %cst_32 {dimension_numbers = #tpu.dot_dimension_numbers<[1], [0], [0], [1], [0, 0, 1, 1], [], []>} : vector<24x32xbf16>, vector<32x384xbf16>, vector<24x384xf32> -> vector<24x384xf32>
    %c0_33 = arith.constant 0 : index
    %c0_34 = arith.constant 0 : index
    %c0_35 = arith.constant 0 : index
    %68 = vector.load %arg9[%c0_33, %c0_34, %c0_35] : memref<3x1x384xf32, #tpu.memory_space<vmem>>, vector<1x1x384xf32>
    %69 = vector.shape_cast %68 : vector<1x1x384xf32> to vector<1x384xf32>
    %70 = vector.broadcast %69 : vector<1x384xf32> to vector<24x384xf32>
    %71 = arith.addf %67, %70 : vector<24x384xf32>
    %72 = vector.extract_strided_slice %71 {offsets = [0, 0], sizes = [24, 128], strides = [1, 1]} : vector<24x384xf32> to vector<24x128xf32>
    %73 = vector.shape_cast %72 : vector<24x128xf32> to vector<1x24x128xf32>
    %74 = arith.truncf %73 : vector<1x24x128xf32> to vector<1x24x128xbf16>
    %75 = vector.extract_strided_slice %71 {offsets = [0, 128], sizes = [24, 128], strides = [1, 1]} : vector<24x384xf32> to vector<24x128xf32>
    %76 = vector.shape_cast %75 : vector<24x128xf32> to vector<1x24x128xf32>
    %77 = arith.truncf %76 : vector<1x24x128xf32> to vector<1x24x128xbf16>
    %78 = vector.extract_strided_slice %71 {offsets = [0, 256], sizes = [24, 128], strides = [1, 1]} : vector<24x384xf32> to vector<24x128xf32>
    %79 = vector.shape_cast %78 : vector<24x128xf32> to vector<1x24x128xf32>
    %80 = arith.truncf %79 : vector<1x24x128xf32> to vector<1x24x128xbf16>
    "tpu.trace_start"() <{level = 10 : i32, message = "bqd,bkd->bqk"}> : () -> ()
    %cst_36 = arith.constant dense<0.000000e+00> : vector<1x24x24xf32>
    %81 = tpu.matmul %74, %77, %cst_36 {dimension_numbers = #tpu.dot_dimension_numbers<[2], [2], [1], [1], [0, 0, 0, 1, 1, 1], [0], [0]>} : vector<1x24x128xbf16>, vector<1x24x128xbf16>, vector<1x24x24xf32> -> vector<1x24x24xf32>
    "tpu.trace_stop"() : () -> ()
    %82 = arith.addf %81, %39 : vector<1x24x24xf32>
    %cst_37 = arith.constant dense<0xFF800000> : vector<1x24xf32>
    %83 = vector.multi_reduction <maximumf>, %82, %cst_37 [2] : vector<1x24x24xf32> to vector<1x24xf32>
    %84 = vector.shape_cast %83 : vector<1x24xf32> to vector<1x24x1xf32>
    %85 = vector.broadcast %84 : vector<1x24x1xf32> to vector<1x24x24xf32>
    %86 = arith.subf %82, %85 : vector<1x24x24xf32>
    %87 = math.exp %86 : vector<1x24x24xf32>
    %cst_38 = arith.constant dense<0.000000e+00> : vector<1x24xf32>
    %88 = vector.multi_reduction <add>, %87, %cst_38 [2] : vector<1x24x24xf32> to vector<1x24xf32>
    %89 = vector.shape_cast %88 : vector<1x24xf32> to vector<1x24x1xf32>
    %90 = tpu.reciprocal %89 {approx = true} : vector<1x24x1xf32> -> vector<1x24x1xf32>
    %91 = vector.broadcast %90 : vector<1x24x1xf32> to vector<1x24x24xf32>
    %92 = arith.mulf %87, %91 : vector<1x24x24xf32>
    %93 = arith.truncf %92 : vector<1x24x24xf32> to vector<1x24x24xbf16>
    "tpu.trace_start"() <{level = 10 : i32, message = "bqk,bkd->bqd"}> : () -> ()
    %cst_39 = arith.constant dense<0.000000e+00> : vector<1x24x128xf32>
    %94 = tpu.matmul %93, %80, %cst_39 {dimension_numbers = #tpu.dot_dimension_numbers<[2], [1], [1], [2], [0, 0, 0, 1, 1, 2], [0], [0]>} : vector<1x24x24xbf16>, vector<1x24x128xbf16>, vector<1x24x128xf32> -> vector<1x24x128xf32>
    "tpu.trace_stop"() : () -> ()
    %95 = vector.shape_cast %94 : vector<1x24x128xf32> to vector<24x128xf32>
    %96 = arith.truncf %95 : vector<24x128xf32> to vector<24x128xbf16>
    %c0_40 = arith.constant 0 : index
    %c0_41 = arith.constant 0 : index
    %c0_42 = arith.constant 0 : index
    %97 = vector.load %arg10[%c0_40, %c0_41, %c0_42] : memref<3x128x32xbf16, #tpu.memory_space<vmem>>, vector<1x128x32xbf16>
    %98 = vector.shape_cast %97 : vector<1x128x32xbf16> to vector<128x32xbf16>
    %cst_43 = arith.constant dense<0.000000e+00> : vector<24x32xf32>
    %99 = tpu.matmul %96, %98, %cst_43 {dimension_numbers = #tpu.dot_dimension_numbers<[1], [0], [0], [1], [0, 0, 1, 1], [], []>} : vector<24x128xbf16>, vector<128x32xbf16>, vector<24x32xf32> -> vector<24x32xf32>
    %c0_44 = arith.constant 0 : index
    %c0_45 = arith.constant 0 : index
    %c0_46 = arith.constant 0 : index
    %100 = vector.load %arg11[%c0_44, %c0_45, %c0_46] : memref<3x1x32xf32, #tpu.memory_space<vmem>>, vector<1x1x32xf32>
    %101 = vector.shape_cast %100 : vector<1x1x32xf32> to vector<1x32xf32>
    %102 = vector.broadcast %101 : vector<1x32xf32> to vector<24x32xf32>
    %103 = arith.addf %99, %102 : vector<24x32xf32>
    %104 = arith.addf %28, %103 : vector<24x32xf32>
    %c0_47 = arith.constant 0 : index
    %c0_48 = arith.constant 0 : index
    %c0_49 = arith.constant 0 : index
    %105 = vector.load %arg12[%c0_47, %c0_48, %c0_49] : memref<3x1x32xf32, #tpu.memory_space<vmem>>, vector<1x1x32xf32>
    %106 = vector.shape_cast %105 : vector<1x1x32xf32> to vector<1x32xf32>
    %c0_50 = arith.constant 0 : index
    %c0_51 = arith.constant 0 : index
    %c0_52 = arith.constant 0 : index
    %107 = vector.load %arg13[%c0_50, %c0_51, %c0_52] : memref<3x1x32xf32, #tpu.memory_space<vmem>>, vector<1x1x32xf32>
    %108 = vector.shape_cast %107 : vector<1x1x32xf32> to vector<1x32xf32>
    %cst_53 = arith.constant dense<0.000000e+00> : vector<24xf32>
    %109 = vector.multi_reduction <add>, %104, %cst_53 [1] : vector<24x32xf32> to vector<24xf32>
    %110 = vector.shape_cast %109 : vector<24xf32> to vector<24x1xf32>
    %cst_54 = arith.constant 3.200000e+01 : f32
    %111 = vector.broadcast %cst_54 : f32 to vector<24x1xf32>
    %112 = arith.divf %110, %111 : vector<24x1xf32>
    %113 = vector.broadcast %112 : vector<24x1xf32> to vector<24x32xf32>
    %114 = arith.subf %104, %113 : vector<24x32xf32>
    %115 = arith.mulf %114, %114 : vector<24x32xf32>
    %cst_55 = arith.constant dense<0.000000e+00> : vector<24xf32>
    %116 = vector.multi_reduction <add>, %115, %cst_55 [1] : vector<24x32xf32> to vector<24xf32>
    %117 = vector.shape_cast %116 : vector<24xf32> to vector<24x1xf32>
    %cst_56 = arith.constant 3.200000e+01 : f32
    %118 = vector.broadcast %cst_56 : f32 to vector<24x1xf32>
    %119 = arith.divf %117, %118 : vector<24x1xf32>
    %cst_57 = arith.constant 9.99999974E-6 : f32
    %120 = vector.broadcast %cst_57 : f32 to vector<24x1xf32>
    %121 = arith.addf %119, %120 : vector<24x1xf32>
    %122 = math.rsqrt %121 : vector<24x1xf32>
    %123 = vector.broadcast %122 : vector<24x1xf32> to vector<24x32xf32>
    %124 = arith.mulf %114, %123 : vector<24x32xf32>
    %125 = vector.broadcast %106 : vector<1x32xf32> to vector<24x32xf32>
    %126 = arith.mulf %124, %125 : vector<24x32xf32>
    %127 = vector.broadcast %108 : vector<1x32xf32> to vector<24x32xf32>
    %128 = arith.addf %126, %127 : vector<24x32xf32>
    %129 = arith.truncf %128 : vector<24x32xf32> to vector<24x32xbf16>
    %c0_58 = arith.constant 0 : index
    %c0_59 = arith.constant 0 : index
    %c0_60 = arith.constant 0 : index
    %130 = vector.load %arg14[%c0_58, %c0_59, %c0_60] : memref<3x32x128xbf16, #tpu.memory_space<vmem>>, vector<1x32x128xbf16>
    %131 = vector.shape_cast %130 : vector<1x32x128xbf16> to vector<32x128xbf16>
    %cst_61 = arith.constant dense<0.000000e+00> : vector<24x128xf32>
    %132 = tpu.matmul %129, %131, %cst_61 {dimension_numbers = #tpu.dot_dimension_numbers<[1], [0], [0], [1], [0, 0, 1, 1], [], []>} : vector<24x32xbf16>, vector<32x128xbf16>, vector<24x128xf32> -> vector<24x128xf32>
    %c0_62 = arith.constant 0 : index
    %c0_63 = arith.constant 0 : index
    %c0_64 = arith.constant 0 : index
    %133 = vector.load %arg15[%c0_62, %c0_63, %c0_64] : memref<3x1x128xf32, #tpu.memory_space<vmem>>, vector<1x1x128xf32>
    %134 = vector.shape_cast %133 : vector<1x1x128xf32> to vector<1x128xf32>
    %135 = vector.broadcast %134 : vector<1x128xf32> to vector<24x128xf32>
    %136 = arith.addf %132, %135 : vector<24x128xf32>
    %cst_65 = arith.constant 5.000000e-01 : f32
    %137 = vector.broadcast %cst_65 : f32 to vector<24x128xf32>
    %138 = arith.mulf %137, %136 : vector<24x128xf32>
    %cst_66 = arith.constant 4.471500e-02 : f32
    %139 = vector.broadcast %cst_66 : f32 to vector<24x128xf32>
    %140 = arith.mulf %139, %136 : vector<24x128xf32>
    %141 = arith.mulf %140, %136 : vector<24x128xf32>
    %142 = arith.mulf %141, %136 : vector<24x128xf32>
    %143 = arith.addf %136, %142 : vector<24x128xf32>
    %cst_67 = arith.constant 0.797884583 : f32
    %144 = vector.broadcast %cst_67 : f32 to vector<24x128xf32>
    %145 = arith.mulf %144, %143 : vector<24x128xf32>
    %146 = math.tanh %145 : vector<24x128xf32>
    %cst_68 = arith.constant 1.000000e+00 : f32
    %147 = vector.broadcast %cst_68 : f32 to vector<24x128xf32>
    %148 = arith.addf %147, %146 : vector<24x128xf32>
    %149 = arith.mulf %138, %148 : vector<24x128xf32>
    %150 = arith.truncf %149 : vector<24x128xf32> to vector<24x128xbf16>
    %c0_69 = arith.constant 0 : index
    %c0_70 = arith.constant 0 : index
    %c0_71 = arith.constant 0 : index
    %151 = vector.load %arg16[%c0_69, %c0_70, %c0_71] : memref<3x128x32xbf16, #tpu.memory_space<vmem>>, vector<1x128x32xbf16>
    %152 = vector.shape_cast %151 : vector<1x128x32xbf16> to vector<128x32xbf16>
    %cst_72 = arith.constant dense<0.000000e+00> : vector<24x32xf32>
    %153 = tpu.matmul %150, %152, %cst_72 {dimension_numbers = #tpu.dot_dimension_numbers<[1], [0], [0], [1], [0, 0, 1, 1], [], []>} : vector<24x128xbf16>, vector<128x32xbf16>, vector<24x32xf32> -> vector<24x32xf32>
    %c0_73 = arith.constant 0 : index
    %c0_74 = arith.constant 0 : index
    %c0_75 = arith.constant 0 : index
    %154 = vector.load %arg17[%c0_73, %c0_74, %c0_75] : memref<3x1x32xf32, #tpu.memory_space<vmem>>, vector<1x1x32xf32>
    %155 = vector.shape_cast %154 : vector<1x1x32xf32> to vector<1x32xf32>
    %156 = vector.broadcast %155 : vector<1x32xf32> to vector<24x32xf32>
    %157 = arith.addf %153, %156 : vector<24x32xf32>
    %158 = arith.addf %104, %157 : vector<24x32xf32>
    %c1 = arith.constant 1 : index
    %c0_76 = arith.constant 0 : index
    %c0_77 = arith.constant 0 : index
    %159 = vector.load %arg6[%c1, %c0_76, %c0_77] : memref<3x1x32xf32, #tpu.memory_space<vmem>>, vector<1x1x32xf32>
    %160 = vector.shape_cast %159 : vector<1x1x32xf32> to vector<1x32xf32>
    %c1_78 = arith.constant 1 : index
    %c0_79 = arith.constant 0 : index
    %c0_80 = arith.constant 0 : index
    %161 = vector.load %arg7[%c1_78, %c0_79, %c0_80] : memref<3x1x32xf32, #tpu.memory_space<vmem>>, vector<1x1x32xf32>
    %162 = vector.shape_cast %161 : vector<1x1x32xf32> to vector<1x32xf32>
    %cst_81 = arith.constant dense<0.000000e+00> : vector<24xf32>
    %163 = vector.multi_reduction <add>, %158, %cst_81 [1] : vector<24x32xf32> to vector<24xf32>
    %164 = vector.shape_cast %163 : vector<24xf32> to vector<24x1xf32>
    %cst_82 = arith.constant 3.200000e+01 : f32
    %165 = vector.broadcast %cst_82 : f32 to vector<24x1xf32>
    %166 = arith.divf %164, %165 : vector<24x1xf32>
    %167 = vector.broadcast %166 : vector<24x1xf32> to vector<24x32xf32>
    %168 = arith.subf %158, %167 : vector<24x32xf32>
    %169 = arith.mulf %168, %168 : vector<24x32xf32>
    %cst_83 = arith.constant dense<0.000000e+00> : vector<24xf32>
    %170 = vector.multi_reduction <add>, %169, %cst_83 [1] : vector<24x32xf32> to vector<24xf32>
    %171 = vector.shape_cast %170 : vector<24xf32> to vector<24x1xf32>
    %cst_84 = arith.constant 3.200000e+01 : f32
    %172 = vector.broadcast %cst_84 : f32 to vector<24x1xf32>
    %173 = arith.divf %171, %172 : vector<24x1xf32>
    %cst_85 = arith.constant 9.99999974E-6 : f32
    %174 = vector.broadcast %cst_85 : f32 to vector<24x1xf32>
    %175 = arith.addf %173, %174 : vector<24x1xf32>
    %176 = math.rsqrt %175 : vector<24x1xf32>
    %177 = vector.broadcast %176 : vector<24x1xf32> to vector<24x32xf32>
    %178 = arith.mulf %168, %177 : vector<24x32xf32>
    %179 = vector.broadcast %160 : vector<1x32xf32> to vector<24x32xf32>
    %180 = arith.mulf %178, %179 : vector<24x32xf32>
    %181 = vector.broadcast %162 : vector<1x32xf32> to vector<24x32xf32>
    %182 = arith.addf %180, %181 : vector<24x32xf32>
    %183 = arith.truncf %182 : vector<24x32xf32> to vector<24x32xbf16>
    %c1_86 = arith.constant 1 : index
    %c0_87 = arith.constant 0 : index
    %c0_88 = arith.constant 0 : index
    %184 = vector.load %arg8[%c1_86, %c0_87, %c0_88] : memref<3x32x384xbf16, #tpu.memory_space<vmem>>, vector<1x32x384xbf16>
    %185 = vector.shape_cast %184 : vector<1x32x384xbf16> to vector<32x384xbf16>
    %cst_89 = arith.constant dense<0.000000e+00> : vector<24x384xf32>
    %186 = tpu.matmul %183, %185, %cst_89 {dimension_numbers = #tpu.dot_dimension_numbers<[1], [0], [0], [1], [0, 0, 1, 1], [], []>} : vector<24x32xbf16>, vector<32x384xbf16>, vector<24x384xf32> -> vector<24x384xf32>
    %c1_90 = arith.constant 1 : index
    %c0_91 = arith.constant 0 : index
    %c0_92 = arith.constant 0 : index
    %187 = vector.load %arg9[%c1_90, %c0_91, %c0_92] : memref<3x1x384xf32, #tpu.memory_space<vmem>>, vector<1x1x384xf32>
    %188 = vector.shape_cast %187 : vector<1x1x384xf32> to vector<1x384xf32>
    %189 = vector.broadcast %188 : vector<1x384xf32> to vector<24x384xf32>
    %190 = arith.addf %186, %189 : vector<24x384xf32>
    %191 = vector.extract_strided_slice %190 {offsets = [0, 0], sizes = [24, 128], strides = [1, 1]} : vector<24x384xf32> to vector<24x128xf32>
    %192 = vector.shape_cast %191 : vector<24x128xf32> to vector<1x24x128xf32>
    %193 = arith.truncf %192 : vector<1x24x128xf32> to vector<1x24x128xbf16>
    %194 = vector.extract_strided_slice %190 {offsets = [0, 128], sizes = [24, 128], strides = [1, 1]} : vector<24x384xf32> to vector<24x128xf32>
    %195 = vector.shape_cast %194 : vector<24x128xf32> to vector<1x24x128xf32>
    %196 = arith.truncf %195 : vector<1x24x128xf32> to vector<1x24x128xbf16>
    %197 = vector.extract_strided_slice %190 {offsets = [0, 256], sizes = [24, 128], strides = [1, 1]} : vector<24x384xf32> to vector<24x128xf32>
    %198 = vector.shape_cast %197 : vector<24x128xf32> to vector<1x24x128xf32>
    %199 = arith.truncf %198 : vector<1x24x128xf32> to vector<1x24x128xbf16>
    "tpu.trace_start"() <{level = 10 : i32, message = "bqd,bkd->bqk"}> : () -> ()
    %cst_93 = arith.constant dense<0.000000e+00> : vector<1x24x24xf32>
    %200 = tpu.matmul %193, %196, %cst_93 {dimension_numbers = #tpu.dot_dimension_numbers<[2], [2], [1], [1], [0, 0, 0, 1, 1, 1], [0], [0]>} : vector<1x24x128xbf16>, vector<1x24x128xbf16>, vector<1x24x24xf32> -> vector<1x24x24xf32>
    "tpu.trace_stop"() : () -> ()
    %201 = arith.addf %200, %39 : vector<1x24x24xf32>
    %cst_94 = arith.constant dense<0xFF800000> : vector<1x24xf32>
    %202 = vector.multi_reduction <maximumf>, %201, %cst_94 [2] : vector<1x24x24xf32> to vector<1x24xf32>
    %203 = vector.shape_cast %202 : vector<1x24xf32> to vector<1x24x1xf32>
    %204 = vector.broadcast %203 : vector<1x24x1xf32> to vector<1x24x24xf32>
    %205 = arith.subf %201, %204 : vector<1x24x24xf32>
    %206 = math.exp %205 : vector<1x24x24xf32>
    %cst_95 = arith.constant dense<0.000000e+00> : vector<1x24xf32>
    %207 = vector.multi_reduction <add>, %206, %cst_95 [2] : vector<1x24x24xf32> to vector<1x24xf32>
    %208 = vector.shape_cast %207 : vector<1x24xf32> to vector<1x24x1xf32>
    %209 = tpu.reciprocal %208 {approx = true} : vector<1x24x1xf32> -> vector<1x24x1xf32>
    %210 = vector.broadcast %209 : vector<1x24x1xf32> to vector<1x24x24xf32>
    %211 = arith.mulf %206, %210 : vector<1x24x24xf32>
    %212 = arith.truncf %211 : vector<1x24x24xf32> to vector<1x24x24xbf16>
    "tpu.trace_start"() <{level = 10 : i32, message = "bqk,bkd->bqd"}> : () -> ()
    %cst_96 = arith.constant dense<0.000000e+00> : vector<1x24x128xf32>
    %213 = tpu.matmul %212, %199, %cst_96 {dimension_numbers = #tpu.dot_dimension_numbers<[2], [1], [1], [2], [0, 0, 0, 1, 1, 2], [0], [0]>} : vector<1x24x24xbf16>, vector<1x24x128xbf16>, vector<1x24x128xf32> -> vector<1x24x128xf32>
    "tpu.trace_stop"() : () -> ()
    %214 = vector.shape_cast %213 : vector<1x24x128xf32> to vector<24x128xf32>
    %215 = arith.truncf %214 : vector<24x128xf32> to vector<24x128xbf16>
    %c1_97 = arith.constant 1 : index
    %c0_98 = arith.constant 0 : index
    %c0_99 = arith.constant 0 : index
    %216 = vector.load %arg10[%c1_97, %c0_98, %c0_99] : memref<3x128x32xbf16, #tpu.memory_space<vmem>>, vector<1x128x32xbf16>
    %217 = vector.shape_cast %216 : vector<1x128x32xbf16> to vector<128x32xbf16>
    %cst_100 = arith.constant dense<0.000000e+00> : vector<24x32xf32>
    %218 = tpu.matmul %215, %217, %cst_100 {dimension_numbers = #tpu.dot_dimension_numbers<[1], [0], [0], [1], [0, 0, 1, 1], [], []>} : vector<24x128xbf16>, vector<128x32xbf16>, vector<24x32xf32> -> vector<24x32xf32>
    %c1_101 = arith.constant 1 : index
    %c0_102 = arith.constant 0 : index
    %c0_103 = arith.constant 0 : index
    %219 = vector.load %arg11[%c1_101, %c0_102, %c0_103] : memref<3x1x32xf32, #tpu.memory_space<vmem>>, vector<1x1x32xf32>
    %220 = vector.shape_cast %219 : vector<1x1x32xf32> to vector<1x32xf32>
    %221 = vector.broadcast %220 : vector<1x32xf32> to vector<24x32xf32>
    %222 = arith.addf %218, %221 : vector<24x32xf32>
    %223 = arith.addf %158, %222 : vector<24x32xf32>
    %c1_104 = arith.constant 1 : index
    %c0_105 = arith.constant 0 : index
    %c0_106 = arith.constant 0 : index
    %224 = vector.load %arg12[%c1_104, %c0_105, %c0_106] : memref<3x1x32xf32, #tpu.memory_space<vmem>>, vector<1x1x32xf32>
    %225 = vector.shape_cast %224 : vector<1x1x32xf32> to vector<1x32xf32>
    %c1_107 = arith.constant 1 : index
    %c0_108 = arith.constant 0 : index
    %c0_109 = arith.constant 0 : index
    %226 = vector.load %arg13[%c1_107, %c0_108, %c0_109] : memref<3x1x32xf32, #tpu.memory_space<vmem>>, vector<1x1x32xf32>
    %227 = vector.shape_cast %226 : vector<1x1x32xf32> to vector<1x32xf32>
    %cst_110 = arith.constant dense<0.000000e+00> : vector<24xf32>
    %228 = vector.multi_reduction <add>, %223, %cst_110 [1] : vector<24x32xf32> to vector<24xf32>
    %229 = vector.shape_cast %228 : vector<24xf32> to vector<24x1xf32>
    %cst_111 = arith.constant 3.200000e+01 : f32
    %230 = vector.broadcast %cst_111 : f32 to vector<24x1xf32>
    %231 = arith.divf %229, %230 : vector<24x1xf32>
    %232 = vector.broadcast %231 : vector<24x1xf32> to vector<24x32xf32>
    %233 = arith.subf %223, %232 : vector<24x32xf32>
    %234 = arith.mulf %233, %233 : vector<24x32xf32>
    %cst_112 = arith.constant dense<0.000000e+00> : vector<24xf32>
    %235 = vector.multi_reduction <add>, %234, %cst_112 [1] : vector<24x32xf32> to vector<24xf32>
    %236 = vector.shape_cast %235 : vector<24xf32> to vector<24x1xf32>
    %cst_113 = arith.constant 3.200000e+01 : f32
    %237 = vector.broadcast %cst_113 : f32 to vector<24x1xf32>
    %238 = arith.divf %236, %237 : vector<24x1xf32>
    %cst_114 = arith.constant 9.99999974E-6 : f32
    %239 = vector.broadcast %cst_114 : f32 to vector<24x1xf32>
    %240 = arith.addf %238, %239 : vector<24x1xf32>
    %241 = math.rsqrt %240 : vector<24x1xf32>
    %242 = vector.broadcast %241 : vector<24x1xf32> to vector<24x32xf32>
    %243 = arith.mulf %233, %242 : vector<24x32xf32>
    %244 = vector.broadcast %225 : vector<1x32xf32> to vector<24x32xf32>
    %245 = arith.mulf %243, %244 : vector<24x32xf32>
    %246 = vector.broadcast %227 : vector<1x32xf32> to vector<24x32xf32>
    %247 = arith.addf %245, %246 : vector<24x32xf32>
    %248 = arith.truncf %247 : vector<24x32xf32> to vector<24x32xbf16>
    %c1_115 = arith.constant 1 : index
    %c0_116 = arith.constant 0 : index
    %c0_117 = arith.constant 0 : index
    %249 = vector.load %arg14[%c1_115, %c0_116, %c0_117] : memref<3x32x128xbf16, #tpu.memory_space<vmem>>, vector<1x32x128xbf16>
    %250 = vector.shape_cast %249 : vector<1x32x128xbf16> to vector<32x128xbf16>
    %cst_118 = arith.constant dense<0.000000e+00> : vector<24x128xf32>
    %251 = tpu.matmul %248, %250, %cst_118 {dimension_numbers = #tpu.dot_dimension_numbers<[1], [0], [0], [1], [0, 0, 1, 1], [], []>} : vector<24x32xbf16>, vector<32x128xbf16>, vector<24x128xf32> -> vector<24x128xf32>
    %c1_119 = arith.constant 1 : index
    %c0_120 = arith.constant 0 : index
    %c0_121 = arith.constant 0 : index
    %252 = vector.load %arg15[%c1_119, %c0_120, %c0_121] : memref<3x1x128xf32, #tpu.memory_space<vmem>>, vector<1x1x128xf32>
    %253 = vector.shape_cast %252 : vector<1x1x128xf32> to vector<1x128xf32>
    %254 = vector.broadcast %253 : vector<1x128xf32> to vector<24x128xf32>
    %255 = arith.addf %251, %254 : vector<24x128xf32>
    %cst_122 = arith.constant 5.000000e-01 : f32
    %256 = vector.broadcast %cst_122 : f32 to vector<24x128xf32>
    %257 = arith.mulf %256, %255 : vector<24x128xf32>
    %cst_123 = arith.constant 4.471500e-02 : f32
    %258 = vector.broadcast %cst_123 : f32 to vector<24x128xf32>
    %259 = arith.mulf %258, %255 : vector<24x128xf32>
    %260 = arith.mulf %259, %255 : vector<24x128xf32>
    %261 = arith.mulf %260, %255 : vector<24x128xf32>
    %262 = arith.addf %255, %261 : vector<24x128xf32>
    %cst_124 = arith.constant 0.797884583 : f32
    %263 = vector.broadcast %cst_124 : f32 to vector<24x128xf32>
    %264 = arith.mulf %263, %262 : vector<24x128xf32>
    %265 = math.tanh %264 : vector<24x128xf32>
    %cst_125 = arith.constant 1.000000e+00 : f32
    %266 = vector.broadcast %cst_125 : f32 to vector<24x128xf32>
    %267 = arith.addf %266, %265 : vector<24x128xf32>
    %268 = arith.mulf %257, %267 : vector<24x128xf32>
    %269 = arith.truncf %268 : vector<24x128xf32> to vector<24x128xbf16>
    %c1_126 = arith.constant 1 : index
    %c0_127 = arith.constant 0 : index
    %c0_128 = arith.constant 0 : index
    %270 = vector.load %arg16[%c1_126, %c0_127, %c0_128] : memref<3x128x32xbf16, #tpu.memory_space<vmem>>, vector<1x128x32xbf16>
    %271 = vector.shape_cast %270 : vector<1x128x32xbf16> to vector<128x32xbf16>
    %cst_129 = arith.constant dense<0.000000e+00> : vector<24x32xf32>
    %272 = tpu.matmul %269, %271, %cst_129 {dimension_numbers = #tpu.dot_dimension_numbers<[1], [0], [0], [1], [0, 0, 1, 1], [], []>} : vector<24x128xbf16>, vector<128x32xbf16>, vector<24x32xf32> -> vector<24x32xf32>
    %c1_130 = arith.constant 1 : index
    %c0_131 = arith.constant 0 : index
    %c0_132 = arith.constant 0 : index
    %273 = vector.load %arg17[%c1_130, %c0_131, %c0_132] : memref<3x1x32xf32, #tpu.memory_space<vmem>>, vector<1x1x32xf32>
    %274 = vector.shape_cast %273 : vector<1x1x32xf32> to vector<1x32xf32>
    %275 = vector.broadcast %274 : vector<1x32xf32> to vector<24x32xf32>
    %276 = arith.addf %272, %275 : vector<24x32xf32>
    %277 = arith.addf %223, %276 : vector<24x32xf32>
    %c2 = arith.constant 2 : index
    %c0_133 = arith.constant 0 : index
    %c0_134 = arith.constant 0 : index
    %278 = vector.load %arg6[%c2, %c0_133, %c0_134] : memref<3x1x32xf32, #tpu.memory_space<vmem>>, vector<1x1x32xf32>
    %279 = vector.shape_cast %278 : vector<1x1x32xf32> to vector<1x32xf32>
    %c2_135 = arith.constant 2 : index
    %c0_136 = arith.constant 0 : index
    %c0_137 = arith.constant 0 : index
    %280 = vector.load %arg7[%c2_135, %c0_136, %c0_137] : memref<3x1x32xf32, #tpu.memory_space<vmem>>, vector<1x1x32xf32>
    %281 = vector.shape_cast %280 : vector<1x1x32xf32> to vector<1x32xf32>
    %cst_138 = arith.constant dense<0.000000e+00> : vector<24xf32>
    %282 = vector.multi_reduction <add>, %277, %cst_138 [1] : vector<24x32xf32> to vector<24xf32>
    %283 = vector.shape_cast %282 : vector<24xf32> to vector<24x1xf32>
    %cst_139 = arith.constant 3.200000e+01 : f32
    %284 = vector.broadcast %cst_139 : f32 to vector<24x1xf32>
    %285 = arith.divf %283, %284 : vector<24x1xf32>
    %286 = vector.broadcast %285 : vector<24x1xf32> to vector<24x32xf32>
    %287 = arith.subf %277, %286 : vector<24x32xf32>
    %288 = arith.mulf %287, %287 : vector<24x32xf32>
    %cst_140 = arith.constant dense<0.000000e+00> : vector<24xf32>
    %289 = vector.multi_reduction <add>, %288, %cst_140 [1] : vector<24x32xf32> to vector<24xf32>
    %290 = vector.shape_cast %289 : vector<24xf32> to vector<24x1xf32>
    %cst_141 = arith.constant 3.200000e+01 : f32
    %291 = vector.broadcast %cst_141 : f32 to vector<24x1xf32>
    %292 = arith.divf %290, %291 : vector<24x1xf32>
    %cst_142 = arith.constant 9.99999974E-6 : f32
    %293 = vector.broadcast %cst_142 : f32 to vector<24x1xf32>
    %294 = arith.addf %292, %293 : vector<24x1xf32>
    %295 = math.rsqrt %294 : vector<24x1xf32>
    %296 = vector.broadcast %295 : vector<24x1xf32> to vector<24x32xf32>
    %297 = arith.mulf %287, %296 : vector<24x32xf32>
    %298 = vector.broadcast %279 : vector<1x32xf32> to vector<24x32xf32>
    %299 = arith.mulf %297, %298 : vector<24x32xf32>
    %300 = vector.broadcast %281 : vector<1x32xf32> to vector<24x32xf32>
    %301 = arith.addf %299, %300 : vector<24x32xf32>
    %302 = arith.truncf %301 : vector<24x32xf32> to vector<24x32xbf16>
    %c2_143 = arith.constant 2 : index
    %c0_144 = arith.constant 0 : index
    %c0_145 = arith.constant 0 : index
    %303 = vector.load %arg8[%c2_143, %c0_144, %c0_145] : memref<3x32x384xbf16, #tpu.memory_space<vmem>>, vector<1x32x384xbf16>
    %304 = vector.shape_cast %303 : vector<1x32x384xbf16> to vector<32x384xbf16>
    %cst_146 = arith.constant dense<0.000000e+00> : vector<24x384xf32>
    %305 = tpu.matmul %302, %304, %cst_146 {dimension_numbers = #tpu.dot_dimension_numbers<[1], [0], [0], [1], [0, 0, 1, 1], [], []>} : vector<24x32xbf16>, vector<32x384xbf16>, vector<24x384xf32> -> vector<24x384xf32>
    %c2_147 = arith.constant 2 : index
    %c0_148 = arith.constant 0 : index
    %c0_149 = arith.constant 0 : index
    %306 = vector.load %arg9[%c2_147, %c0_148, %c0_149] : memref<3x1x384xf32, #tpu.memory_space<vmem>>, vector<1x1x384xf32>
    %307 = vector.shape_cast %306 : vector<1x1x384xf32> to vector<1x384xf32>
    %308 = vector.broadcast %307 : vector<1x384xf32> to vector<24x384xf32>
    %309 = arith.addf %305, %308 : vector<24x384xf32>
    %310 = vector.extract_strided_slice %309 {offsets = [0, 0], sizes = [24, 128], strides = [1, 1]} : vector<24x384xf32> to vector<24x128xf32>
    %311 = vector.shape_cast %310 : vector<24x128xf32> to vector<1x24x128xf32>
    %312 = arith.truncf %311 : vector<1x24x128xf32> to vector<1x24x128xbf16>
    %313 = vector.extract_strided_slice %309 {offsets = [0, 128], sizes = [24, 128], strides = [1, 1]} : vector<24x384xf32> to vector<24x128xf32>
    %314 = vector.shape_cast %313 : vector<24x128xf32> to vector<1x24x128xf32>
    %315 = arith.truncf %314 : vector<1x24x128xf32> to vector<1x24x128xbf16>
    %316 = vector.extract_strided_slice %309 {offsets = [0, 256], sizes = [24, 128], strides = [1, 1]} : vector<24x384xf32> to vector<24x128xf32>
    %317 = vector.shape_cast %316 : vector<24x128xf32> to vector<1x24x128xf32>
    %318 = arith.truncf %317 : vector<1x24x128xf32> to vector<1x24x128xbf16>
    "tpu.trace_start"() <{level = 10 : i32, message = "bqd,bkd->bqk"}> : () -> ()
    %cst_150 = arith.constant dense<0.000000e+00> : vector<1x24x24xf32>
    %319 = tpu.matmul %312, %315, %cst_150 {dimension_numbers = #tpu.dot_dimension_numbers<[2], [2], [1], [1], [0, 0, 0, 1, 1, 1], [0], [0]>} : vector<1x24x128xbf16>, vector<1x24x128xbf16>, vector<1x24x24xf32> -> vector<1x24x24xf32>
    "tpu.trace_stop"() : () -> ()
    %320 = arith.addf %319, %39 : vector<1x24x24xf32>
    %cst_151 = arith.constant dense<0xFF800000> : vector<1x24xf32>
    %321 = vector.multi_reduction <maximumf>, %320, %cst_151 [2] : vector<1x24x24xf32> to vector<1x24xf32>
    %322 = vector.shape_cast %321 : vector<1x24xf32> to vector<1x24x1xf32>
    %323 = vector.broadcast %322 : vector<1x24x1xf32> to vector<1x24x24xf32>
    %324 = arith.subf %320, %323 : vector<1x24x24xf32>
    %325 = math.exp %324 : vector<1x24x24xf32>
    %cst_152 = arith.constant dense<0.000000e+00> : vector<1x24xf32>
    %326 = vector.multi_reduction <add>, %325, %cst_152 [2] : vector<1x24x24xf32> to vector<1x24xf32>
    %327 = vector.shape_cast %326 : vector<1x24xf32> to vector<1x24x1xf32>
    %328 = tpu.reciprocal %327 {approx = true} : vector<1x24x1xf32> -> vector<1x24x1xf32>
    %329 = vector.broadcast %328 : vector<1x24x1xf32> to vector<1x24x24xf32>
    %330 = arith.mulf %325, %329 : vector<1x24x24xf32>
    %331 = arith.truncf %330 : vector<1x24x24xf32> to vector<1x24x24xbf16>
    "tpu.trace_start"() <{level = 10 : i32, message = "bqk,bkd->bqd"}> : () -> ()
    %cst_153 = arith.constant dense<0.000000e+00> : vector<1x24x128xf32>
    %332 = tpu.matmul %331, %318, %cst_153 {dimension_numbers = #tpu.dot_dimension_numbers<[2], [1], [1], [2], [0, 0, 0, 1, 1, 2], [0], [0]>} : vector<1x24x24xbf16>, vector<1x24x128xbf16>, vector<1x24x128xf32> -> vector<1x24x128xf32>
    "tpu.trace_stop"() : () -> ()
    %333 = vector.shape_cast %332 : vector<1x24x128xf32> to vector<24x128xf32>
    %334 = arith.truncf %333 : vector<24x128xf32> to vector<24x128xbf16>
    %c2_154 = arith.constant 2 : index
    %c0_155 = arith.constant 0 : index
    %c0_156 = arith.constant 0 : index
    %335 = vector.load %arg10[%c2_154, %c0_155, %c0_156] : memref<3x128x32xbf16, #tpu.memory_space<vmem>>, vector<1x128x32xbf16>
    %336 = vector.shape_cast %335 : vector<1x128x32xbf16> to vector<128x32xbf16>
    %cst_157 = arith.constant dense<0.000000e+00> : vector<24x32xf32>
    %337 = tpu.matmul %334, %336, %cst_157 {dimension_numbers = #tpu.dot_dimension_numbers<[1], [0], [0], [1], [0, 0, 1, 1], [], []>} : vector<24x128xbf16>, vector<128x32xbf16>, vector<24x32xf32> -> vector<24x32xf32>
    %c2_158 = arith.constant 2 : index
    %c0_159 = arith.constant 0 : index
    %c0_160 = arith.constant 0 : index
    %338 = vector.load %arg11[%c2_158, %c0_159, %c0_160] : memref<3x1x32xf32, #tpu.memory_space<vmem>>, vector<1x1x32xf32>
    %339 = vector.shape_cast %338 : vector<1x1x32xf32> to vector<1x32xf32>
    %340 = vector.broadcast %339 : vector<1x32xf32> to vector<24x32xf32>
    %341 = arith.addf %337, %340 : vector<24x32xf32>
    %342 = arith.addf %277, %341 : vector<24x32xf32>
    %c2_161 = arith.constant 2 : index
    %c0_162 = arith.constant 0 : index
    %c0_163 = arith.constant 0 : index
    %343 = vector.load %arg12[%c2_161, %c0_162, %c0_163] : memref<3x1x32xf32, #tpu.memory_space<vmem>>, vector<1x1x32xf32>
    %344 = vector.shape_cast %343 : vector<1x1x32xf32> to vector<1x32xf32>
    %c2_164 = arith.constant 2 : index
    %c0_165 = arith.constant 0 : index
    %c0_166 = arith.constant 0 : index
    %345 = vector.load %arg13[%c2_164, %c0_165, %c0_166] : memref<3x1x32xf32, #tpu.memory_space<vmem>>, vector<1x1x32xf32>
    %346 = vector.shape_cast %345 : vector<1x1x32xf32> to vector<1x32xf32>
    %cst_167 = arith.constant dense<0.000000e+00> : vector<24xf32>
    %347 = vector.multi_reduction <add>, %342, %cst_167 [1] : vector<24x32xf32> to vector<24xf32>
    %348 = vector.shape_cast %347 : vector<24xf32> to vector<24x1xf32>
    %cst_168 = arith.constant 3.200000e+01 : f32
    %349 = vector.broadcast %cst_168 : f32 to vector<24x1xf32>
    %350 = arith.divf %348, %349 : vector<24x1xf32>
    %351 = vector.broadcast %350 : vector<24x1xf32> to vector<24x32xf32>
    %352 = arith.subf %342, %351 : vector<24x32xf32>
    %353 = arith.mulf %352, %352 : vector<24x32xf32>
    %cst_169 = arith.constant dense<0.000000e+00> : vector<24xf32>
    %354 = vector.multi_reduction <add>, %353, %cst_169 [1] : vector<24x32xf32> to vector<24xf32>
    %355 = vector.shape_cast %354 : vector<24xf32> to vector<24x1xf32>
    %cst_170 = arith.constant 3.200000e+01 : f32
    %356 = vector.broadcast %cst_170 : f32 to vector<24x1xf32>
    %357 = arith.divf %355, %356 : vector<24x1xf32>
    %cst_171 = arith.constant 9.99999974E-6 : f32
    %358 = vector.broadcast %cst_171 : f32 to vector<24x1xf32>
    %359 = arith.addf %357, %358 : vector<24x1xf32>
    %360 = math.rsqrt %359 : vector<24x1xf32>
    %361 = vector.broadcast %360 : vector<24x1xf32> to vector<24x32xf32>
    %362 = arith.mulf %352, %361 : vector<24x32xf32>
    %363 = vector.broadcast %344 : vector<1x32xf32> to vector<24x32xf32>
    %364 = arith.mulf %362, %363 : vector<24x32xf32>
    %365 = vector.broadcast %346 : vector<1x32xf32> to vector<24x32xf32>
    %366 = arith.addf %364, %365 : vector<24x32xf32>
    %367 = arith.truncf %366 : vector<24x32xf32> to vector<24x32xbf16>
    %c2_172 = arith.constant 2 : index
    %c0_173 = arith.constant 0 : index
    %c0_174 = arith.constant 0 : index
    %368 = vector.load %arg14[%c2_172, %c0_173, %c0_174] : memref<3x32x128xbf16, #tpu.memory_space<vmem>>, vector<1x32x128xbf16>
    %369 = vector.shape_cast %368 : vector<1x32x128xbf16> to vector<32x128xbf16>
    %cst_175 = arith.constant dense<0.000000e+00> : vector<24x128xf32>
    %370 = tpu.matmul %367, %369, %cst_175 {dimension_numbers = #tpu.dot_dimension_numbers<[1], [0], [0], [1], [0, 0, 1, 1], [], []>} : vector<24x32xbf16>, vector<32x128xbf16>, vector<24x128xf32> -> vector<24x128xf32>
    %c2_176 = arith.constant 2 : index
    %c0_177 = arith.constant 0 : index
    %c0_178 = arith.constant 0 : index
    %371 = vector.load %arg15[%c2_176, %c0_177, %c0_178] : memref<3x1x128xf32, #tpu.memory_space<vmem>>, vector<1x1x128xf32>
    %372 = vector.shape_cast %371 : vector<1x1x128xf32> to vector<1x128xf32>
    %373 = vector.broadcast %372 : vector<1x128xf32> to vector<24x128xf32>
    %374 = arith.addf %370, %373 : vector<24x128xf32>
    %cst_179 = arith.constant 5.000000e-01 : f32
    %375 = vector.broadcast %cst_179 : f32 to vector<24x128xf32>
    %376 = arith.mulf %375, %374 : vector<24x128xf32>
    %cst_180 = arith.constant 4.471500e-02 : f32
    %377 = vector.broadcast %cst_180 : f32 to vector<24x128xf32>
    %378 = arith.mulf %377, %374 : vector<24x128xf32>
    %379 = arith.mulf %378, %374 : vector<24x128xf32>
    %380 = arith.mulf %379, %374 : vector<24x128xf32>
    %381 = arith.addf %374, %380 : vector<24x128xf32>
    %cst_181 = arith.constant 0.797884583 : f32
    %382 = vector.broadcast %cst_181 : f32 to vector<24x128xf32>
    %383 = arith.mulf %382, %381 : vector<24x128xf32>
    %384 = math.tanh %383 : vector<24x128xf32>
    %cst_182 = arith.constant 1.000000e+00 : f32
    %385 = vector.broadcast %cst_182 : f32 to vector<24x128xf32>
    %386 = arith.addf %385, %384 : vector<24x128xf32>
    %387 = arith.mulf %376, %386 : vector<24x128xf32>
    %388 = arith.truncf %387 : vector<24x128xf32> to vector<24x128xbf16>
    %c2_183 = arith.constant 2 : index
    %c0_184 = arith.constant 0 : index
    %c0_185 = arith.constant 0 : index
    %389 = vector.load %arg16[%c2_183, %c0_184, %c0_185] : memref<3x128x32xbf16, #tpu.memory_space<vmem>>, vector<1x128x32xbf16>
    %390 = vector.shape_cast %389 : vector<1x128x32xbf16> to vector<128x32xbf16>
    %cst_186 = arith.constant dense<0.000000e+00> : vector<24x32xf32>
    %391 = tpu.matmul %388, %390, %cst_186 {dimension_numbers = #tpu.dot_dimension_numbers<[1], [0], [0], [1], [0, 0, 1, 1], [], []>} : vector<24x128xbf16>, vector<128x32xbf16>, vector<24x32xf32> -> vector<24x32xf32>
    %c2_187 = arith.constant 2 : index
    %c0_188 = arith.constant 0 : index
    %c0_189 = arith.constant 0 : index
    %392 = vector.load %arg17[%c2_187, %c0_188, %c0_189] : memref<3x1x32xf32, #tpu.memory_space<vmem>>, vector<1x1x32xf32>
    %393 = vector.shape_cast %392 : vector<1x1x32xf32> to vector<1x32xf32>
    %394 = vector.broadcast %393 : vector<1x32xf32> to vector<24x32xf32>
    %395 = arith.addf %391, %394 : vector<24x32xf32>
    %396 = arith.addf %342, %395 : vector<24x32xf32>
    %c0_190 = arith.constant 0 : index
    %c0_191 = arith.constant 0 : index
    %397 = vector.load %arg18[%c0_190, %c0_191] : memref<1x32xf32, #tpu.memory_space<vmem>>, vector<1x32xf32>
    %c0_192 = arith.constant 0 : index
    %c0_193 = arith.constant 0 : index
    %398 = vector.load %arg19[%c0_192, %c0_193] : memref<1x32xf32, #tpu.memory_space<vmem>>, vector<1x32xf32>
    %cst_194 = arith.constant dense<0.000000e+00> : vector<24xf32>
    %399 = vector.multi_reduction <add>, %396, %cst_194 [1] : vector<24x32xf32> to vector<24xf32>
    %400 = vector.shape_cast %399 : vector<24xf32> to vector<24x1xf32>
    %cst_195 = arith.constant 3.200000e+01 : f32
    %401 = vector.broadcast %cst_195 : f32 to vector<24x1xf32>
    %402 = arith.divf %400, %401 : vector<24x1xf32>
    %403 = vector.broadcast %402 : vector<24x1xf32> to vector<24x32xf32>
    %404 = arith.subf %396, %403 : vector<24x32xf32>
    %405 = arith.mulf %404, %404 : vector<24x32xf32>
    %cst_196 = arith.constant dense<0.000000e+00> : vector<24xf32>
    %406 = vector.multi_reduction <add>, %405, %cst_196 [1] : vector<24x32xf32> to vector<24xf32>
    %407 = vector.shape_cast %406 : vector<24xf32> to vector<24x1xf32>
    %cst_197 = arith.constant 3.200000e+01 : f32
    %408 = vector.broadcast %cst_197 : f32 to vector<24x1xf32>
    %409 = arith.divf %407, %408 : vector<24x1xf32>
    %cst_198 = arith.constant 9.99999974E-6 : f32
    %410 = vector.broadcast %cst_198 : f32 to vector<24x1xf32>
    %411 = arith.addf %409, %410 : vector<24x1xf32>
    %412 = math.rsqrt %411 : vector<24x1xf32>
    %413 = vector.broadcast %412 : vector<24x1xf32> to vector<24x32xf32>
    %414 = arith.mulf %404, %413 : vector<24x32xf32>
    %415 = vector.broadcast %397 : vector<1x32xf32> to vector<24x32xf32>
    %416 = arith.mulf %414, %415 : vector<24x32xf32>
    %417 = vector.broadcast %398 : vector<1x32xf32> to vector<24x32xf32>
    %418 = arith.addf %416, %417 : vector<24x32xf32>
    %419 = vector.shape_cast %418 : vector<24x32xf32> to vector<1x24x32xf32>
    %420 = arith.truncf %419 : vector<1x24x32xf32> to vector<1x24x32xbf16>
    %c0_199 = arith.constant 0 : index
    %c0_200 = arith.constant 0 : index
    %c0_201 = arith.constant 0 : index
    %421 = vector.load %arg20[%c0_199, %c0_200, %c0_201] : memref<1x24x32xbf16, #tpu.memory_space<vmem>>, vector<1x24x32xbf16>
    tpu.vector_store %arg20[%c0_199, %c0_200, %c0_201], %420 {strides = array<i32>} : memref<1x24x32xbf16, #tpu.memory_space<vmem>>, vector<1x24x32xbf16>,
    return
  }
  func.func @transform_0(%arg0: i32) -> (i32, i32, i32) {
    %c0_i32 = arith.constant 0 : i32
    %c0_i32_0 = arith.constant 0 : i32
    %c0_i32_1 = arith.constant 0 : i32
    return %arg0, %c0_i32, %c0_i32_0 : i32, i32, i32
  }
  func.func @transform_1(%arg0: i32) -> (i32, i32, i32) {
    %c0_i32 = arith.constant 0 : i32
    %c0_i32_0 = arith.constant 0 : i32
    %c0_i32_1 = arith.constant 0 : i32
    return %arg0, %c0_i32, %c0_i32_0 : i32, i32, i32
  }
  func.func @transform_2(%arg0: i32) -> (i32, i32) {
    %c0_i32 = arith.constant 0 : i32
    %c0_i32_0 = arith.constant 0 : i32
    %c0_i32_1 = arith.constant 0 : i32
    return %c0_i32, %c0_i32_0 : i32, i32
  }
  func.func @transform_3(%arg0: i32) -> (i32, i32) {
    %c0_i32 = arith.constant 0 : i32
    %c0_i32_0 = arith.constant 0 : i32
    %c0_i32_1 = arith.constant 0 : i32
    return %c0_i32, %c0_i32_0 : i32, i32
  }
  func.func @transform_4(%arg0: i32) -> (i32, i32) {
    %c0_i32 = arith.constant 0 : i32
    %c0_i32_0 = arith.constant 0 : i32
    %c0_i32_1 = arith.constant 0 : i32
    return %c0_i32, %c0_i32_0 : i32, i32
  }
  func.func @transform_5(%arg0: i32) -> (i32, i32, i32) {
    %c0_i32 = arith.constant 0 : i32
    %c0_i32_0 = arith.constant 0 : i32
    %c0_i32_1 = arith.constant 0 : i32
    %c0_i32_2 = arith.constant 0 : i32
    return %c0_i32, %c0_i32_0, %c0_i32_1 : i32, i32, i32
  }
  func.func @transform_6(%arg0: i32) -> (i32, i32, i32) {
    %c0_i32 = arith.constant 0 : i32
    %c0_i32_0 = arith.constant 0 : i32
    %c0_i32_1 = arith.constant 0 : i32
    %c0_i32_2 = arith.constant 0 : i32
    return %c0_i32, %c0_i32_0, %c0_i32_1 : i32, i32, i32
  }
  func.func @transform_7(%arg0: i32) -> (i32, i32, i32) {
    %c0_i32 = arith.constant 0 : i32
    %c0_i32_0 = arith.constant 0 : i32
    %c0_i32_1 = arith.constant 0 : i32
    %c0_i32_2 = arith.constant 0 : i32
    return %c0_i32, %c0_i32_0, %c0_i32_1 : i32, i32, i32
  }
  func.func @transform_8(%arg0: i32) -> (i32, i32, i32) {
    %c0_i32 = arith.constant 0 : i32
    %c0_i32_0 = arith.constant 0 : i32
    %c0_i32_1 = arith.constant 0 : i32
    %c0_i32_2 = arith.constant 0 : i32
    return %c0_i32, %c0_i32_0, %c0_i32_1 : i32, i32, i32
  }
  func.func @transform_9(%arg0: i32) -> (i32, i32, i32) {
    %c0_i32 = arith.constant 0 : i32
    %c0_i32_0 = arith.constant 0 : i32
    %c0_i32_1 = arith.constant 0 : i32
    %c0_i32_2 = arith.constant 0 : i32
    return %c0_i32, %c0_i32_0, %c0_i32_1 : i32, i32, i32
  }
  func.func @transform_10(%arg0: i32) -> (i32, i32, i32) {
    %c0_i32 = arith.constant 0 : i32
    %c0_i32_0 = arith.constant 0 : i32
    %c0_i32_1 = arith.constant 0 : i32
    %c0_i32_2 = arith.constant 0 : i32
    return %c0_i32, %c0_i32_0, %c0_i32_1 : i32, i32, i32
  }
  func.func @transform_11(%arg0: i32) -> (i32, i32, i32) {
    %c0_i32 = arith.constant 0 : i32
    %c0_i32_0 = arith.constant 0 : i32
    %c0_i32_1 = arith.constant 0 : i32
    %c0_i32_2 = arith.constant 0 : i32
    return %c0_i32, %c0_i32_0, %c0_i32_1 : i32, i32, i32
  }
  func.func @transform_12(%arg0: i32) -> (i32, i32, i32) {
    %c0_i32 = arith.constant 0 : i32
    %c0_i32_0 = arith.constant 0 : i32
    %c0_i32_1 = arith.constant 0 : i32
    %c0_i32_2 = arith.constant 0 : i32
    return %c0_i32, %c0_i32_0, %c0_i32_1 : i32, i32, i32
  }
  func.func @transform_13(%arg0: i32) -> (i32, i32, i32) {
    %c0_i32 = arith.constant 0 : i32
    %c0_i32_0 = arith.constant 0 : i32
    %c0_i32_1 = arith.constant 0 : i32
    %c0_i32_2 = arith.constant 0 : i32
    return %c0_i32, %c0_i32_0, %c0_i32_1 : i32, i32, i32
  }
  func.func @transform_14(%arg0: i32) -> (i32, i32, i32) {
    %c0_i32 = arith.constant 0 : i32
    %c0_i32_0 = arith.constant 0 : i32
    %c0_i32_1 = arith.constant 0 : i32
    %c0_i32_2 = arith.constant 0 : i32
    return %c0_i32, %c0_i32_0, %c0_i32_1 : i32, i32, i32
  }
  func.func @transform_15(%arg0: i32) -> (i32, i32, i32) {
    %c0_i32 = arith.constant 0 : i32
    %c0_i32_0 = arith.constant 0 : i32
    %c0_i32_1 = arith.constant 0 : i32
    %c0_i32_2 = arith.constant 0 : i32
    return %c0_i32, %c0_i32_0, %c0_i32_1 : i32, i32, i32
  }
  func.func @transform_16(%arg0: i32) -> (i32, i32, i32) {
    %c0_i32 = arith.constant 0 : i32
    %c0_i32_0 = arith.constant 0 : i32
    %c0_i32_1 = arith.constant 0 : i32
    %c0_i32_2 = arith.constant 0 : i32
    return %c0_i32, %c0_i32_0, %c0_i32_1 : i32, i32, i32
  }
  func.func @transform_17(%arg0: i32) -> (i32, i32) {
    %c0_i32 = arith.constant 0 : i32
    %c0_i32_0 = arith.constant 0 : i32
    %c0_i32_1 = arith.constant 0 : i32
    return %c0_i32, %c0_i32_0 : i32, i32
  }
  func.func @transform_18(%arg0: i32) -> (i32, i32) {
    %c0_i32 = arith.constant 0 : i32
    %c0_i32_0 = arith.constant 0 : i32
    %c0_i32_1 = arith.constant 0 : i32
    return %c0_i32, %c0_i32_0 : i32, i32
  }
  func.func @transform_19(%arg0: i32) -> (i32, i32, i32) {
    %c0_i32 = arith.constant 0 : i32
    %c0_i32_0 = arith.constant 0 : i32
    %c0_i32_1 = arith.constant 0 : i32
    return %arg0, %c0_i32, %c0_i32_0 : i32, i32, i32
  }
}

</mosaic_0001>

<bundles_post_ra>
// kernel: tpu_custom_call.1
= control target key start
LH: loop header
LB: loop body
LE: loop exit
PB: predicated region body
PF: predicated region fallthrough
CT: control target
= control target key end

     0   :  { %s4517_s0 = inlined_call_operand.vmem [shape: f32[2,24,32], index: 0, kind: input, shape index: {}]   ;;  %s4518_s1 = inlined_call_operand.vmem [shape: f32[2,1,24], index: 1, kind: input, shape index: {}]   ;;  %s4519_s2 = inlined_call_operand.vmem [shape: f32[24,32], index: 2, kind: input, shape index: {}]   ;;  %s4520_s3 = inlined_call_operand.vmem [shape: f32[1,32], index: 3, kind: input, shape index: {}]   ;;  %s4521_s4 = inlined_call_operand.vmem [shape: f32[1,32], index: 4, kind: input, shape index: {}]   ;;  %s4522_s5 = inlined_call_operand.vmem [shape: f32[3,1,32], index: 5, kind: input, shape index: {}]   ;;  %s4523_s6 = inlined_call_operand.vmem [shape: f32[3,1,32], index: 6, kind: input, shape index: {}]   ;;  %s4524_s7 = inlined_call_operand.vmem [shape: bf16[3,32,384], index: 7, kind: input, shape index: {}]   ;;  %s4525_s8 = inlined_call_operand.vmem [shape: f32[3,1,384], index: 8, kind: input, shape index: {}]   ;;  %s4526_s9 = inlined_call_operand.vmem [shape: bf16[3,128,32], index: 9, kind: input, shape index: {}]   ;;  %s4527_s10 = inlined_call_operand.vmem [shape: f32[3,1,32], index: 10, kind: input, shape index: {}]   ;;  %s4528_s11 = inlined_call_operand.vmem [shape: f32[3,1,32], index: 11, kind: input, shape index: {}]   ;;  %s4529_s12 = inlined_call_operand.vmem [shape: f32[3,1,32], index: 12, kind: input, shape index: {}]   ;;  %s4530_s13 = inlined_call_operand.vmem [shape: bf16[3,32,128], index: 13, kind: input, shape index: {}]   ;;  %s4531_s14 = inlined_call_operand.vmem [shape: f32[3,1,128], index: 14, kind: input, shape index: {}]   ;;  %s4532_s15 = inlined_call_operand.vmem [shape: bf16[3,128,32], index: 15, kind: input, shape index: {}]   ;;  %s4533_s16 = inlined_call_operand.vmem [shape: f32[3,1,32], index: 16, kind: input, shape index: {}]   ;;  %s4534_s17 = inlined_call_operand.vmem [shape: f32[1,32], index: 17, kind: input, shape index: {}]   ;;  %s4535_s18 = inlined_call_operand.vmem [shape: f32[1,32], index: 18, kind: input, shape index: {}]   ;;  %s4536_s19 = inlined_call_operand.hbm [shape: bf16[2,24,32], index: 19, kind: output, shape index: {}]  }
   0x1   :  { %4544 = sst [smem:[#allocation10_spill]] %s4517_s0 }
   0x2   :  { %4545 = sst [smem:[#allocation11_spill]] %s4518_s1 }
   0x3   :  { %4546 = sst [smem:[#allocation12_spill]] %s4519_s2 }
   0x4   :  { %4547 = sst [smem:[#allocation13_spill]] %s4520_s3 }
   0x5   :  { %4548 = sst [smem:[#allocation14_spill]] %s4521_s4 }
   0x6   :  { %4549 = sst [smem:[#allocation15_spill]] %s4522_s5 }
   0x7   :  { %24 = vsyncpa [#allocation3], 0 }
   0x8   :  { %26 = vsyncpa [#allocation3 + $0x1], 0  ;;  %s3736_s0 = smov 0   ;;  %s3738_s30 = smov 0  }
   0x9   :  { %s3740_s20 = smov 0   ;;  %s3742_s21 = smov 0  }
   0xa LB: > { %4550 = sst [smem:[#allocation5_spill]] %s3617_s0  ;;  %s3757_s1 = sadd.s32 4294967295, %s3629_s21   ;;  %s3629_s21 = sphi %s3742_s21, %s4567_s21   ;;  %s3625_s20 = sphi %s3740_s20, %s4569_s20   ;;  %s3621_s30 = sphi %s3738_s30, %s4571_s30   ;;  %s3617_s0 = sphi %s3736_s0, %s4570_s0  }
   0xb   : > { %4551 = sst [smem:[#allocation6_spill]] %s3625_s20  ;;  %s2889_s22 = sadd.s32 4294967294, %s3629_s21  }
   0xc   : > { %s3761_s2 = sadd.s32 1, %s3629_s21   ;;  %s448_s23 = sadd.s32 1, %s3625_s20 }
   0xd   : > { %4552 = sst [smem:[#allocation7_spill]] %s3761_s2  ;;  %s445_s24 = ssub.s32 %s3629_s21, %s3761_s2 }
   0xe   : > { %p458_p0 = scmp.ne.s32.totalorder %s3625_s20, %s3621_s30  ;;  %p446_p1 = scmp.eq.s32.totalorder %s445_s24, 0 }
   0xf   : > { %p459_p2 = scmp.eq.s32.totalorder %s3757_s1, 1  ;;  %p464_p3 = scmp.ne.s32.totalorder %s3621_s30, %s3617_s0 }
  0x10   : > { %p465_p4 = scmp.eq.s32.totalorder %s2889_s22, 1  ;;  %p2892_p7 = scmp.ge.s32.totalorder %s3629_s21, 1 }
  0x11   : > { %s3772_s25 = scalar_select %p446_p1, %s3625_s20, %s448_s23  }
  0x12   : > { %p3774_p5 = por %p459_p2, %p458_p0  ;;  %p3778_p6 = por %p465_p4, %p464_p3 }
  0x13   : > { %4553 = sst [smem:[#allocation8_spill]] %s3772_s25  ;;  %p548_p8 = scmp.lt.s32.totalorder %s3629_s21, 3 }
  0x14   : > { %s4555_s26 = scalar_select %p3778_p6, 1, 0 }
  0x15   : > { %p549_p9 = pnand %p2892_p7, %p548_p8 }
  0x16   : > { %4556 = sst [smem:[#allocation9_spill]] %s4555_s26  ;;  %p607_p10 = scmp.lt.s32.totalorder (!%p549_p9), %s3757_s1, 1 }
  0x17   : > { %552 = sbr.rel (%p549_p9) target bundleno = 5664 (0x1620), region = 96  ;;  %s4557_s23 = sld [smem:[#allocation10_spill]] (!%p549_p9) }
  0x18   : > { %s4558_s22 = sld [smem:[#allocation13_spill]] (!%p549_p9)  ;;  %s604_s25 = sand.u32 (!%p549_p9), 1, %s3621_s30  }
  0x19   : > { %s4559_s4 = sld [smem:[#allocation14_spill]] (!%p549_p9) }
  0x1a   : > { %s4560_s2 = sld [smem:[#allocation12_spill]] (!%p549_p9) }
  0x1b   : > { %s4561_s5 = sld [smem:[#allocation15_spill]] (!%p549_p9) }
  0x1c   : > { %s3786_s27 = scalar_select %p607_p10, %s3757_s1, 1  ;;  %vm621_vm0 = vcmask 261120   ;;  %v3631_v6 = vmov 32.0  }
  0x1d   : > { %3463 = vrcp.f32 %v3631_v6  ;;  %s4562_s29 = sld [smem:[#allocation11_spill]] }
  0x1e   : > { %s3392_s28 = smul.u32 24, %s3786_s27  ;;  %v3438_v45 = vld [vmem:[%s4558_s22] ss:$0 sm:$0xff] }
  0x1f   : > { %v3439_v49 = vld [vmem:[%s4559_s4] ss:$0 sm:$0xff] }
  0x20   : > { %s611_s24 = scalar_lea.vmem %s4557_s23, %s3392_s28  ;;  %v707_v53 = vld [vmem:[%s4560_s2] sm:$0xff]  ;;  %s3393_s23 = smul.u32 12, %s3757_s1 }
  0x21   : > { %v616_v0 = vld [vmem:[%s611_s24] sm:$0xff]  ;;  %v618_v1 = vld [vmem:[%s611_s24 + $0x10] sm:$0xff]  ;;  %v617_v4 = vld [vmem:[%s611_s24 + $0x8] sm:$0xff]  ;;  %s2803_s1 = scalar_lea.sflag [#allocation3], %s604_s25 }
  0x22   : > { %v622_v2 = vsel %vm621_vm0, %v616_v0, 0.0  ;;  %v628_v3 = vsel %vm621_vm0, %v618_v1, 0.0  ;;  %v625_v5 = vsel %vm621_vm0, %v617_v4, 0.0  ;;  %s2814_s20 = scalar_lea.hbm %s4536_s19, %s3393_s23  ;;  %s3587_s23 = scalar_lea.hbm %s4536_s19, 24 }
  0x23   : > { %623 = vadd.xlane.f32.xlu0 %v622_v2  ;;  %629 = vadd.xlane.f32.xlu1 %v628_v3  ;;  %v3464_v7 = vpop.eup %3463  ;;  %v708_v2 = vld [vmem:[%s4560_s2 + $0x8] sm:$0xff]  ;;  %s614_s22 = scalar_lea.vmem %s4562_s29, %s3786_s27  ;;  %s2817_s26 = sshll.u32 %s2814_s20, 4  ;;  %s2818_s26 = int_to_ptr.hbm [resolvable:$true] %s2817_s26 }
  0x24   : > { %v632_v8 = vmul.f32 32.0, %v3464_v7  ;;  %vm636_vm1 = vweird.f32 %v3464_v7  ;;  %s3581_s0 = sshra.s32 %s2818_s26, 4  ;;  %s3582_s0 = int_to_ptr.hbm [resolvable:$true] %s3581_s0 }
  0x25   : > { %s3583_s28 = scalar_lea.hbm %s3582_s0, 12  ;;  %p3588_p0 = scmp.lt.s32.totalorder %s3582_s0, %s4536_s19 }
  0x26   : > { %v633_v9 = vsub.f32 1.0, %v632_v8  ;;  %p3584_p11 = scmp.ne.s32.totalorder %s3582_s0, %s3583_s28  ;;  %p3589_p1 = scmp.lt.s32.totalorder %s3587_s23, %s3583_s28 }
  0x28   : > { %v634_v10 = vmul.f32 %v3464_v7, %v633_v9  ;;  %p3585_p12 = pnand %p3584_p11, %p3774_p5  ;;  %p3590_p2 = por %p3589_p1, %p3588_p0 }
  0x2a   : > { %v635_v11 = vadd.f32 %v3464_v7, %v634_v10  ;;  %v709_v10 = vld [vmem:[%s4560_s2 + $0x10] sm:$0xff]  ;;  %p3586_p13 = pneg %p3585_p12 }
  0x2b   : > { %626 = vadd.xlane.f32.xlu0 %v625_v5 }
  0x2c   : > { %v3795_v12 = vsel %vm636_vm1, %v3464_v7, %v635_v11  ;;  %p3591_p3 = pnand %p3590_p2, %p3586_p13 }
  0x96   : > { %v624_v13 = vpop.xlane.xlu0 %623  ;;  %v630_v17 = vpop.xlane.xlu1 %629 }
  0x97   : > { %v638_v14 = vmul.f32 %v3795_v12, %v624_v13  ;;  %v640_v21 = vmul.f32 %v3795_v12, %v630_v17 }
  0x99   : > { %v641_v15 = vsub.f32 %v616_v0, %v638_v14  ;;  %v3801_v23 = vsub.f32 %v618_v1, %v640_v21 }
  0x9b   : > { %v644_v16 = vmul.f32 %v641_v15, %v641_v15  ;;  %v646_v26 = vmul.f32 %v3801_v23, %v3801_v23 }
  0x9d   : > { %v647_v18 = vsel %vm621_vm0, %v644_v16, 0.0  ;;  %v653_v27 = vsel %vm621_vm0, %v646_v26, 0.0 }
  0x9e   : > { %648 = vadd.xlane.f32.xlu1 %v647_v18  ;;  %v627_v19 = vpop.xlane.xlu0 %626 }
  0x9f   : > { %v639_v20 = vmul.f32 %v3795_v12, %v627_v19 }
  0xa1   : > { %v642_v22 = vsub.f32 %v617_v4, %v639_v20 }
  0xa3   : > { %v645_v24 = vmul.f32 %v642_v22, %v642_v22 }
  0xa5   : > { %v650_v25 = vsel %vm621_vm0, %v645_v24, 0.0 }
  0xa6   : > { %651 = vadd.xlane.f32.xlu2 %v650_v25 }
  0xae   : > { %654 = vadd.xlane.f32.xlu2 %v653_v27 }
 0x111   : > { %v649_v28 = vpop.xlane.xlu1 %648 }
 0x112   : > { %v656_v29 = vmul.f32 %v649_v28, %v3795_v12 }
 0x114   : > { %v659_v30 = vadd.f32 1e-05, %v656_v29 }
 0x116   : > { %3465 = vrsqrt.f32 %v659_v30  ;;  %vm668_vm3 = vweird.f32 %v659_v30 }
 0x119   : > { %v652_v31 = vpop.xlane.xlu2 %651 }
 0x11a   : > { %v657_v32 = vmul.f32 %v652_v31, %v3795_v12  ;;  %v3323_v31 = vld [vmem:[%s4524_s7 + $0x20] sm:$0xf0] }
 0x11c   : > { %v3466_v33 = vpop.eup %3465  ;;  %v660_v34 = vadd.f32 1e-05, %v657_v32  ;;  %v3322_v32 = vld [vmem:[%s4524_s7 + $0x1c] sm:$0xf] }
 0x11d   : > { %v663_v35 = vmul.f32 %v3466_v33, %v659_v30  ;;  %vm669_vm2 = vweird.f32 %v3466_v33  ;;  %v2908_v30 = vld [vmem:[%s4524_s7 + $0x18] sm:$0xf] }
 0x11e   : > { %3467 = vrsqrt.f32 %v660_v34  ;;  %vm670_vm4 = vmor %vm668_vm3, %vm669_vm2  ;;  %vm678_vm6 = vweird.f32 %v660_v34 }
 0x11f   : > { %v664_v36 = vmul.f32 %v3466_v33, %v663_v35  ;;  %v2916_v35 = vld [vmem:[%s4524_s7 + $0x20] sm:$0xf] }
 0x121   : > { %v665_v37 = vmul.f32 0.5, %v664_v36  ;;  %v655_v38 = vpop.xlane.xlu2 %654  ;;  %v3324_v36 = vld [vmem:[%s4524_s7 + $0x28] sm:$0xf0] }
 0x122   : > { %v658_v39 = vmul.f32 %v655_v38, %v3795_v12  ;;  %v2917_v38 = vor.u32 %v3324_v36, %v2916_v35 }
 0x123   : > { %v666_v40 = vsub.f32 1.5, %v665_v37 }
 0x124   : > { %v3468_v41 = vpop.eup %3467  ;;  %v661_v42 = vadd.f32 1e-05, %v658_v39  ;;  %911 = vmatpush.bf16.msra.mxu2 %v2917_v38 }
 0x125   : > { %v667_v43 = vmul.f32 %v3466_v33, %v666_v40  ;;  %v673_v44 = vmul.f32 %v3468_v41, %v660_v34  ;;  %vm679_vm5 = vweird.f32 %v3468_v41  ;;  %v2910_v34 = vld [vmem:[%s4524_s7 + $0x24] sm:$0xf0] }
 0x126   : > { %3469 = vrsqrt.f32 %v661_v42  ;;  %vm680_vm7 = vmor %vm678_vm6, %vm679_vm5  ;;  %vm688_vm8 = vweird.f32 %v661_v42  ;;  %v2913_v37 = vor.u32 %v3322_v32, %v2910_v34  ;;  %vm1030_vm5 = vcmask 1043456  }
 0x127   : > { %v671_v46 = vsel %vm670_vm4, %v3466_v33, %v667_v43  ;;  %v674_v47 = vmul.f32 %v3468_v41, %v673_v44  ;;  %v2909_v33 = vor.u32 %v3323_v31, %v2908_v30  ;;  %v3319_v43 = vld [vmem:[%s4524_s7 + $0x4] sm:$0xf] }
 0x128   : > { %v692_v48 = vmul.f32 %v671_v46, %v641_v15  ;;  %893 = vmatpush.bf16.msra.mxu1 %v2913_v37  ;;  %v2904_v46 = vld [vmem:[%s4524_s7 + $0x8] sm:$0xf]  ;;  %v823_v37 = vld [vmem:[%s4525_s8] sm:$0x7] }
 0x129   : > { %v675_v50 = vmul.f32 0.5, %v674_v47  ;;  %875 = vmatpush.bf16.msra.mxu0 %v2909_v33  ;;  %v3321_v47 = vld [vmem:[%s4524_s7 + $0x10] sm:$0xf0]  ;;  %v826_v38 = vperm.slane %v823_v37, 1 }
 0x12a   : > { %v698_v51 = vmul.f32 %v3438_v45, %v692_v48 }
 0x12b   : > { %v676_v52 = vsub.f32 1.5, %v675_v50  ;;  %v2905_v50 = vor.u32 %v3321_v47, %v2904_v46 }
 0x12c   : > { %v3470_v54 = vpop.eup %3469  ;;  %v704_v55 = vadd.f32 %v3439_v49, %v698_v51 }
 0x12d   : > { %v677_v56 = vmul.f32 %v3468_v41, %v676_v52  ;;  %v683_v57 = vmul.f32 %v3470_v54, %v661_v42  ;;  %vm689_vm9 = vweird.f32 %v3470_v54  ;;  %v3320_v42 = vld [vmem:[%s4524_s7 + $0x8] sm:$0xf0]  ;;  %912 = vmatpush.bf16.msra.mxu2 %v2905_v50 }
 0x12e   : > { %v3819_v58 = vadd.f32 %v707_v53, %v704_v55  ;;  %vm690_vm10 = vmor %vm688_vm8, %vm689_vm9 }
 0x12f   : > { %v681_v59 = vsel %vm680_vm7, %v3468_v41, %v677_v56  ;;  %v684_v60 = vmul.f32 %v3470_v54, %v683_v57  ;;  %v2896_v41 = vld [vmem:[%s4524_s7] sm:$0xf] }
 0x130   : > { %v693_v61 = vmul.f32 %v681_v59, %v642_v22  ;;  %v735_v62 = vsel %vm621_vm0, %v3819_v58, 0.0  ;;  %v2897_v44 = vor.u32 %v3320_v42, %v2896_v41 }
 0x131   : > { %v685_v63 = vmul.f32 0.5, %v684_v60  ;;  %736 = vadd.xlane.f32.xlu0 %v735_v62 }
 0x132   : > { %v699_v0 = vmul.f32 %v3438_v45, %v693_v61  ;;  %876 = vmatpush.bf16.msra.mxu0 %v2897_v44 }
 0x133   : > { %v686_v1 = vsub.f32 1.5, %v685_v63 }
 0x134   : > { %v705_v3 = vadd.f32 %v3439_v49, %v699_v0 }
 0x135   : > { %v687_v4 = vmul.f32 %v3470_v54, %v686_v1 }
 0x136   : > { %v3826_v5 = vadd.f32 %v708_v2, %v705_v3 }
 0x137   : > { %v691_v6 = vsel %vm690_vm10, %v3470_v54, %v687_v4  ;;  %vm970_vm10 = vcmask 195584  }
 0x138   : > { %v694_v7 = vmul.f32 %v691_v6, %v3801_v23  ;;  %v738_v8 = vsel %vm621_vm0, %v3826_v5, 0.0 }
 0x139   : > { %739 = vadd.xlane.f32.xlu1 %v738_v8 }
 0x13a   : > { %v700_v9 = vmul.f32 %v3438_v45, %v694_v7  ;;  %v2898_v45 = vld [vmem:[%s4524_s7 + $0xc] sm:$0xf0] }
 0x13c   : > { %v706_v11 = vadd.f32 %v3439_v49, %v700_v9  ;;  %v2901_v49 = vor.u32 %v3319_v43, %v2898_v45  ;;  %v3440_v9 = vld [vmem:[%s4561_s5] ss:$0 sm:$0xff]  ;;  %v827_v45 = vperm.slane %v823_v37, 2 }
 0x13e   : > { %v3834_v13 = vadd.f32 %v709_v10, %v706_v11  ;;  %894 = vmatpush.bf16.msra.mxu1 %v2901_v49 }
 0x140   : > { %v741_v14 = vsel %vm621_vm0, %v3834_v13, 0.0 }
 0x141   : > { %742 = vadd.xlane.f32.xlu2 %v741_v14 }
 0x1a4   : > { %v737_v15 = vpop.xlane.xlu0 %736 }
 0x1a5   : > { %v744_v16 = vmul.f32 %v737_v15, %v3795_v12 }
 0x1a7   : > { %v3840_v17 = vsub.f32 %v3819_v58, %v744_v16 }
 0x1a9   : > { %v750_v18 = vmul.f32 %v3840_v17, %v3840_v17 }
 0x1ab   : > { %v753_v19 = vsel %vm621_vm0, %v750_v18, 0.0 }
 0x1ac   : > { %v740_v20 = vpop.xlane.xlu1 %739  ;;  %754 = vadd.xlane.f32.xlu0 %v753_v19  ;;  %v3441_v19 = vld [vmem:[%s4523_s6] ss:$0 sm:$0xff] }
 0x1ad   : > { %v745_v21 = vmul.f32 %v740_v20, %v3795_v12 }
 0x1af   : > { %v3847_v22 = vsub.f32 %v3826_v5, %v745_v21 }
 0x1b1   : > { %v751_v23 = vmul.f32 %v3847_v22, %v3847_v22 }
 0x1b3   : > { %v756_v24 = vsel %vm621_vm0, %v751_v23, 0.0 }
 0x1b4   : > { %757 = vadd.xlane.f32.xlu1 %v756_v24  ;;  %v743_v25 = vpop.xlane.xlu2 %742 }
 0x1b5   : > { %v746_v26 = vmul.f32 %v743_v25, %v3795_v12 }
 0x1b7   : > { %v3854_v27 = vsub.f32 %v3834_v13, %v746_v26 }
 0x1b9   : > { %v752_v28 = vmul.f32 %v3854_v27, %v3854_v27 }
 0x1bb   : > { %v759_v29 = vsel %vm621_vm0, %v752_v28, 0.0 }
 0x1bc   : > { %760 = vadd.xlane.f32.xlu2 %v759_v29 }
 0x21f   : > { %v755_v39 = vpop.xlane.xlu0 %754 }
 0x220   : > { %v762_v40 = vmul.f32 %v755_v39, %v3795_v12 }
 0x222   : > { %v765_v48 = vadd.f32 1e-05, %v762_v40 }
 0x224   : > { %3471 = vrsqrt.f32 %v765_v48  ;;  %vm774_vm12 = vweird.f32 %v765_v48 }
 0x227   : > { %v758_v51 = vpop.xlane.xlu1 %757 }
 0x228   : > { %v763_v52 = vmul.f32 %v758_v51, %v3795_v12  ;;  %v825_v51 = vperm.slane %v823_v37, 0 }
 0x22a   : > { %v3472_v53 = vpop.eup %3471  ;;  %v766_v54 = vadd.f32 1e-05, %v763_v52 }
 0x22b   : > { %v769_v55 = vmul.f32 %v3472_v53, %v765_v48  ;;  %vm775_vm11 = vweird.f32 %v3472_v53 }
 0x22c   : > { %3473 = vrsqrt.f32 %v766_v54  ;;  %vm776_vm13 = vmor %vm774_vm12, %vm775_vm11  ;;  %vm784_vm15 = vweird.f32 %v766_v54 }
 0x22d   : > { %v770_v56 = vmul.f32 %v3472_v53, %v769_v55 }
 0x22f   : > { %v771_v57 = vmul.f32 0.5, %v770_v56  ;;  %v761_v59 = vpop.xlane.xlu2 %760 }
 0x230   : > { %v764_v60 = vmul.f32 %v761_v59, %v3795_v12 }
 0x231   : > { %v772_v61 = vsub.f32 1.5, %v771_v57 }
 0x232   : > { %v3474_v62 = vpop.eup %3473  ;;  %v767_v63 = vadd.f32 1e-05, %v764_v60 }
 0x233   : > { %v773_v0 = vmul.f32 %v3472_v53, %v772_v61  ;;  %v779_v1 = vmul.f32 %v3474_v62, %v766_v54  ;;  %vm785_vm14 = vweird.f32 %v3474_v62 }
 0x234   : > { %3475 = vrsqrt.f32 %v767_v63  ;;  %vm786_vm1 = vmor %vm784_vm15, %vm785_vm14  ;;  %vm794_vm3 = vweird.f32 %v767_v63 }
 0x235   : > { %v780_v2 = vmul.f32 %v3474_v62, %v779_v1  ;;  %v777_v3 = vsel %vm776_vm13, %v3472_v53, %v773_v0 }
 0x236   : > { %v798_v8 = vmul.f32 %v777_v3, %v3840_v17 }
 0x237   : > { %v781_v4 = vmul.f32 0.5, %v780_v2 }
 0x238   : > { %v804_v18 = vmul.f32 %v3440_v9, %v798_v8 }
 0x239   : > { %v782_v6 = vsub.f32 1.5, %v781_v4 }
 0x23a   : > { %v3476_v7 = vpop.eup %3475  ;;  %v810_v23 = vadd.f32 %v3441_v19, %v804_v18 }
 0x23b   : > { %v783_v10 = vmul.f32 %v3474_v62, %v782_v6  ;;  %v789_v11 = vmul.f32 %v3476_v7, %v767_v63  ;;  %vm795_vm2 = vweird.f32 %v3476_v7 }
 0x23c   : > { %vm796_vm4 = vmor %vm794_vm3, %vm795_vm2 }
 0x23d   : > { %v787_v14 = vsel %vm786_vm1, %v3474_v62, %v783_v10  ;;  %v790_v15 = vmul.f32 %v3476_v7, %v789_v11 }
 0x23e   : > { %v799_v16 = vmul.f32 %v787_v14, %v3847_v22 }
 0x23f   : > { %v791_v20 = vmul.f32 0.5, %v790_v15 }
 0x240   : > { %v805_v21 = vmul.f32 %v3440_v9, %v799_v16 }
 0x241   : > { %v792_v17 = vsub.f32 1.5, %v791_v20 }
 0x242   : > { %v811_v24 = vadd.f32 %v3441_v19, %v805_v21 }
 0x243   : > { %v793_v25 = vmul.f32 %v3476_v7, %v792_v17  ;;  %v722_v17 = vld [vmem:[%s614_s22] sm:$0x1]  ;;  %s3391_s22 = smul.u32 12, %s604_s25 }
 0x244   : > { %v813_v26 = vpack.c.bf16 %v811_v24, %v810_v23  ;;  %vm723_vm6 = vcmp.gt.f32.partialorder %v722_v17, 0.5  ;;  %v713_v23 = vlaneseq  ;;  %v3632_v24 = vmov 0  }
 0x245   : > { %v797_v28 = vsel %vm796_vm4, %v3476_v7, %v793_v25  ;;  %v724_v25 = vsel %vm723_vm6, 1, %v3632_v24  ;;  %v3326_v24 = vld [vmem:[%s4526_s9 + $0x8] sm:$0xff]  ;;  %s606_s27 = scalar_lea.vmem [#allocation2], %s3391_s22 }
 0x246   : > { %2918 = vmatmul.msk.bf16.vlgmr.msra.gmra.mxu0 %vm621_vm0, %v813_v26  ;;  %2920 = vmatmul.msk.bf16.vlgmr.msra.gmra.mxu1 %vm621_vm0, %v813_v26  ;;  %v800_v22 = vmul.f32 %v797_v28, %v3854_v27  ;;  %v718_v28 = vand.u32 127, %v713_v23  ;;  %s2815_s4 = sshll.u32 %s606_s27, 4  ;;  %s2816_s4 = int_to_ptr.vmem [resolvable:$true] %s2815_s4 }
 0x247   : > { %2922 = vmatmul.msk.bf16.vlgmr.msra.gmra.mxu2 %vm621_vm0, %v813_v26  ;;  %v714_v26 = vshrl.u32 %v713_v23, 7  ;;  %v3327_v23 = vld [vmem:[%s4526_s9 + $0x10] sm:$0xff] }
 0x248   : > { %v806_v29 = vmul.f32 %v3440_v9, %v800_v22  ;;  %v725_v22 = vperm.slane %v724_v25, 0  ;;  %v3325_v25 = vld [vmem:[%s4526_s9] sm:$0xff] }
 0x249   : > { %vm719_vm7 = vcmp.le.s32.totalorder %v718_v28, %v714_v26 }
 0x24a   : > { %v812_v30 = vadd.f32 %v3441_v19, %v806_v29  ;;  %vm3921_vm8 = vcmp.eq.s32.totalorder %v725_v22, 1 }
 0x24b   : > { %vm727_vm9 = vmand %vm719_vm7, %vm3921_vm8 }
 0x24c   : > { %v814_v31 = vpack.c.bf16 %v812_v30, %v812_v30  ;;  %v715_v30 = vadd.s32 8, %v714_v26 }
 0x24e   : > { %vm720_vm11 = vcmp.le.s32.totalorder %v718_v28, %v715_v30 }
 0x24f   : > { %vm728_vm12 = vmand %vm720_vm11, %vm3921_vm8 }
 0x256   : > { %2919 = vmatmul.msk.bf16.gmra.mxu0 %vm621_vm0, %v814_v31  ;;  %2921 = vmatmul.msk.bf16.gmra.mxu1 %vm621_vm0, %v814_v31 }
 0x257   : > { %2923 = vmatmul.msk.bf16.gmra.mxu2 %vm621_vm0, %v814_v31  ;;  %v3633_v31 = vmov -1e+09  }
 0x258   : > { %v3933_v37 = vsel %vm728_vm12, 0.0, %v3633_v31 }
 0x2c3   : > { %v878_v32 = vpop.f32.mrf.mxu0  ;;  %v896_v33 = vpop.f32.mrf.mxu1 }
 0x2c4   : > { %v897_v44 = vadd.f32 %v896_v33, %v826_v38  ;;  %v879_v62 = vadd.f32 %v878_v32, %v825_v51  ;;  %v3927_v32 = vsel %vm727_vm9, 0.0, %v3633_v31 }
 0x2c6   : > { %v926_v55 = vpack.c.bf16 %v897_v44, %v897_v44  ;;  %v923_v8 = vpack.c.bf16 %v879_v62, %v879_v62 }
 0x2c8   : > { %v945_v0 = vunpack.c.l.b16 %v926_v55  ;;  %v935_v15 = vunpack.c.l.b16 %v923_v8 }
 0x2ca   : > { %v914_v34 = vpop.f32.mrf.mxu2 }
 0x2cb   : > { %v880_v35 = vpop.f32.mrf.mxu0  ;;  %v898_v36 = vpop.f32.mrf.mxu1  ;;  %v915_v56 = vadd.f32 %v914_v34, %v827_v45 }
 0x2cc   : > { %v899_v42 = vadd.f32 %v898_v36, %v826_v38  ;;  %v881_v57 = vadd.f32 %v880_v35, %v825_v51  ;;  %v716_v36 = vadd.s32 16, %v714_v26 }
 0x2cd   : > { %v929_v1 = vpack.c.bf16 %v915_v56, %v915_v56 }
 0x2ce   : > { %v927_v47 = vpack.c.bf16 %v899_v42, %v899_v42  ;;  %v924_v2 = vpack.c.bf16 %v881_v57, %v881_v57  ;;  %vm721_vm13 = vcmp.le.s32.totalorder %v718_v28, %v716_v36 }
 0x2cf   : > { %v1018_v10 = vunpack.c.l.b16 %v929_v1  ;;  %vm729_vm14 = vmand %vm721_vm13, %vm3921_vm8  ;;  %v3331_v1 = vld [vmem:[%s4526_s9 + $0x30] sm:$0xff] }
 0x2d0   : > { %v946_v60 = vunpack.c.l.b16 %v927_v47  ;;  %v936_v11 = vunpack.c.l.b16 %v924_v2 }
 0x2d2   : > { %v916_v27 = vpop.f32.mrf.mxu2  ;;  %v948_v7 = vpack.c.b16 %v946_v60, %v945_v0  ;;  %v938_v16 = vpack.c.b16 %v936_v11, %v935_v15 }
 0x2d3   : > { %v883_v39 = vpop.f32.mrf.mxu0  ;;  %v901_v40 = vpop.f32.mrf.mxu1  ;;  %v917_v48 = vadd.f32 %v916_v27, %v827_v45 }
 0x2d4   : > { %v902_v41 = vadd.f32 %v901_v40, %v826_v38  ;;  %v884_v18 = vadd.f32 %v883_v39, %v825_v51  ;;  %v3939_v40 = vsel %vm729_vm14, 0.0, %v3633_v31 }
 0x2d5   : > { %v930_v61 = vpack.c.bf16 %v917_v48, %v917_v48 }
 0x2d6   : > { %v928_v43 = vpack.c.bf16 %v902_v41, %v902_v41  ;;  %v925_v19 = vpack.c.bf16 %v884_v18, %v884_v18 }
 0x2d7   : > { %v1019_v4 = vunpack.c.l.b16 %v930_v61 }
 0x2d8   : > { %v947_v46 = vunpack.c.l.b16 %v928_v43  ;;  %v937_v20 = vunpack.c.l.b16 %v925_v19 }
 0x2d9   : > { %v1021_v14 = vpack.c.b16 %v1019_v4, %v1018_v10  ;;  %v3329_v10 = vld [vmem:[%s4526_s9 + $0x20] sm:$0xff] }
 0x2da   : > { %v919_v49 = vpop.f32.mrf.mxu2  ;;  %v949_v50 = vpack.c.b16 %v947_v46, %v947_v46  ;;  %v939_v21 = vpack.c.b16 %v937_v20, %v937_v20 }
 0x2db   : > { %v920_v52 = vadd.f32 %v919_v49, %v827_v45  ;;  %v885_v53 = vpop.f32.mrf.mxu0  ;;  %v903_v54 = vpop.f32.mrf.mxu1 }
 0x2dc   : > { %958 = vmatpush.bf16.xpose.msra.mxu3 %v949_v50 }
 0x2dd   : > { %v931_v59 = vpack.c.bf16 %v920_v52, %v920_v52 }
 0x2df   : > { %v1020_v63 = vunpack.c.l.b16 %v931_v59 }
 0x2e1   : > { %v1022_v3 = vpack.c.b16 %v1020_v63, %v1020_v63  ;;  %v3332_v63 = vld [vmem:[%s4526_s9 + $0x38] sm:$0xff] }
 0x2e2   : > { %v921_v6 = vpop.f32.mrf.mxu2  ;;  %1122 = vmatpush.bf16.msrb.mxu1 %v3332_v63 }
 0x2e3   : > { %v1032_v9 = vsel %vm1030_vm5, %v1022_v3, 0  ;;  %v3330_v3 = vld [vmem:[%s4526_s9 + $0x28] sm:$0xff] }
 0x2e4   : > { %1040 = vmatpush.bf16.msrb.mxu0 %v1032_v9  ;;  %959 = vmatpush.bf16.xpose.msra.mxu3 %v948_v7 }
 0x2e6   : > { %1123 = vmatpush.bf16.msrb.mxu1 %v3331_v1  ;;  %v3333_v1 = vld [vmem:[%s4530_s13] sm:$0xff] }
 0x2e8   : > { %1041 = vmatpush.bf16.msrb.mxu0 %v1021_v14 }
 0x2ea   : > { %1124 = vmatpush.bf16.msrb.mxu1 %v3330_v3 }
 0x2eb   : > { %960 = vmatmul.bf16.vlgmr.msra.gmra.mxu3 %v938_v16  ;;  %v3328_v16 = vld [vmem:[%s4526_s9 + $0x18] sm:$0xff] }
 0x2ee   : > { %1125 = vmatpush.bf16.msrb.mxu1 %v3329_v10 }
 0x2f2   : > { %1126 = vmatpush.bf16.msrb.mxu1 %v3328_v16 }
 0x2f6   : > { %1127 = vmatpush.bf16.msrb.mxu1 %v3327_v23 }
 0x2fa   : > { %1128 = vmatpush.bf16.msrb.mxu1 %v3326_v24 }
 0x2fb   : > { %965 = vmatmul.bf16.gmra.mxu3 %v939_v21 }
 0x2fe   : > { %1129 = vmatpush.bf16.msrb.mxu1 %v3325_v25 }
 0x36e   : > { %v961_v33 = vpop.f32.mrf.mxu3 }
 0x36f   : > { %v962_v34 = vadd.f32 %v961_v33, %v3927_v32  ;;  %v3442_v33 = vld [vmem:[%s4527_s10] ss:$0 sm:$0xff] }
 0x371   : > { %v971_v35 = vsel %vm970_vm10, %v962_v34, -inf }
 0x372   : > { %972 = vmax.xlane.f32.xlu0 %v971_v35 }
 0x376   : > { %v963_v38 = vpop.f32.mrf.mxu3 }
 0x377   : > { %v964_v27 = vadd.f32 %v963_v38, %v3933_v37 }
 0x379   : > { %v974_v39 = vsel %vm970_vm10, %v964_v27, -inf }
 0x37a   : > { %975 = vmax.xlane.f32.xlu1 %v974_v39 }
 0x37e   : > { %v966_v41 = vpop.f32.mrf.mxu3 }
 0x37f   : > { %v967_v42 = vadd.f32 %v966_v41, %v3939_v40 }
 0x381   : > { %v977_v43 = vsel %vm970_vm10, %v967_v42, -inf }
 0x382   : > { %978 = vmax.xlane.f32.xlu2 %v977_v43 }
 0x386   : > { %v968_v44 = vpop.f32.mrf.mxu3 }
 0x3e5   : > { %v973_v45 = vpop.xlane.xlu0 %972 }
 0x3e6   : > { %v980_v46 = vsub.f32 %v962_v34, %v973_v45 }
 0x3e8   : > { %v983_v47 = vmul.f32 1.442695, %v980_v46 }
 0x3ea   : > { %3477 = vpow2.f32 %v983_v47 }
 0x3ed   : > { %v976_v48 = vpop.xlane.xlu1 %975 }
 0x3ee   : > { %v981_v49 = vsub.f32 %v964_v27, %v976_v48 }
 0x3f0   : > { %v3478_v50 = vpop.eup %3477  ;;  %v985_v51 = vmul.f32 1.442695, %v981_v49 }
 0x3f1   : > { %v989_v52 = vsel %vm970_vm10, %v3478_v50, 0.0 }
 0x3f2   : > { %3479 = vpow2.f32 %v985_v51  ;;  %990 = vadd.xlane.f32.xlu0 %v989_v52 }
 0x3f5   : > { %v979_v53 = vpop.xlane.xlu2 %978 }
 0x3f6   : > { %v982_v54 = vsub.f32 %v967_v42, %v979_v53 }
 0x3f8   : > { %v3480_v55 = vpop.eup %3479  ;;  %v987_v56 = vmul.f32 1.442695, %v982_v54 }
 0x3f9   : > { %v992_v57 = vsel %vm970_vm10, %v3480_v55, 0.0 }
 0x3fa   : > { %3481 = vpow2.f32 %v987_v56  ;;  %993 = vadd.xlane.f32.xlu1 %v992_v57 }
 0x400   : > { %v3482_v59 = vpop.eup %3481 }
 0x401   : > { %v995_v60 = vsel %vm970_vm10, %v3482_v59, 0.0 }
 0x402   : > { %996 = vadd.xlane.f32.xlu2 %v995_v60 }
 0x465   : > { %v991_v61 = vpop.xlane.xlu0 %990 }
 0x466   : > { %3483 = vrcp.f32 %v991_v61  ;;  %v3334_v61 = vld [vmem:[%s4530_s13 + $0x8] sm:$0xff] }
 0x467   : > { %1257 = vmatpush.bf16.msrb.mxu2 %v3334_v61 }
 0x46b   : > { %1258 = vmatpush.bf16.msrb.mxu2 %v3333_v1 }
 0x46c   : > { %v3484_v0 = vpop.eup %3483 }
 0x46d   : > { %v994_v62 = vpop.xlane.xlu1 %993  ;;  %v1001_v2 = vmul.f32 %v3484_v0, %v3478_v50 }
 0x46e   : > { %3485 = vrcp.f32 %v994_v62 }
 0x46f   : > { %v1004_v6 = vpack.c.bf16 %v1001_v2, %v1001_v2 }
 0x471   : > { %v1010_v11 = vunpack.c.l.b16 %v1004_v6 }
 0x474   : > { %v3486_v4 = vpop.eup %3485 }
 0x475   : > { %v1002_v7 = vmul.f32 %v3486_v4, %v3480_v55  ;;  %v997_v8 = vpop.xlane.xlu2 %996 }
 0x476   : > { %3487 = vrcp.f32 %v997_v8 }
 0x477   : > { %v1005_v9 = vpack.c.bf16 %v1002_v7, %v1002_v7 }
 0x479   : > { %v1011_v14 = vunpack.c.l.b16 %v1005_v9 }
 0x47b   : > { %v1013_v15 = vpack.c.b16 %v1011_v14, %v1010_v11 }
 0x47c   : > { %v3488_v18 = vpop.eup %3487 }
 0x47d   : > { %2924 = vmatmul.msk.bf16.vlgmr.msrb.gmra.mxu0 %vm970_vm10, %v1013_v15  ;;  %v1003_v19 = vmul.f32 %v3488_v18, %v3482_v59 }
 0x47f   : > { %v1006_v20 = vpack.c.bf16 %v1003_v19, %v1003_v19 }
 0x481   : > { %v1012_v21 = vunpack.c.l.b16 %v1006_v20 }
 0x483   : > { %v1014_v17 = vpack.c.b16 %v1012_v21, %v1012_v21 }
 0x48d   : > { %2925 = vmatmul.msk.bf16.gmra.mxu0 %vm970_vm10, %v1014_v17 }
 0x4fa   : > { %v1043_v26 = vpop.f32.mrf.mxu0 }
 0x502   : > { %v1045_v28 = vpop.f32.mrf.mxu0 }
 0x503   : > { %v1052_v22 = vpack.c.bf16 %v1045_v28, %v1043_v26  ;;  %v3443_v26 = vld [vmem:[%s4528_s11] ss:$0 sm:$0xff] }
 0x505   : > { %1130 = vmatmul.bf16.vlgmr.msrb.gmra.mxu1 %v1052_v22 }
 0x50a   : > { %v1048_v29 = vpop.f32.mrf.mxu0 }
 0x50b   : > { %v1053_v31 = vpack.c.bf16 %v1048_v29, %v1048_v29 }
 0x512   : > { %v1050_v30 = vpop.f32.mrf.mxu0 }
 0x515   : > { %1135 = vmatmul.bf16.gmra.mxu1 %v1053_v31 }
 0x582   : > { %v1131_v34 = vpop.f32.mrf.mxu1 }
 0x583   : > { %v1132_v35 = vadd.f32 %v3442_v33, %v1131_v34  ;;  %v3444_v34 = vld [vmem:[%s4529_s12] ss:$0 sm:$0xff] }
 0x585   : > { %v3976_v36 = vadd.f32 %v1132_v35, %v3819_v58 }
 0x587   : > { %v1145_v38 = vsel %vm621_vm0, %v3976_v36, 0.0 }
 0x588   : > { %1146 = vadd.xlane.f32.xlu0 %v1145_v38 }
 0x58a   : > { %v1133_v27 = vpop.f32.mrf.mxu1 }
 0x58b   : > { %v1134_v39 = vadd.f32 %v3442_v33, %v1133_v27 }
 0x58d   : > { %v3981_v41 = vadd.f32 %v1134_v39, %v3826_v5 }
 0x58f   : > { %v1148_v42 = vsel %vm621_vm0, %v3981_v41, 0.0 }
 0x590   : > { %1149 = vadd.xlane.f32.xlu1 %v1148_v42 }
 0x592   : > { %v1136_v43 = vpop.f32.mrf.mxu1 }
 0x593   : > { %v1137_v44 = vadd.f32 %v3442_v33, %v1136_v43 }
 0x595   : > { %v3986_v45 = vadd.f32 %v1137_v44, %v3834_v13 }
 0x597   : > { %v1151_v58 = vsel %vm621_vm0, %v3986_v45, 0.0 }
 0x598   : > { %1152 = vadd.xlane.f32.xlu2 %v1151_v58 }
 0x59a   : > { %v1138_v46 = vpop.f32.mrf.mxu1 }
 0x5fb   : > { %v1147_v47 = vpop.xlane.xlu0 %1146 }
 0x5fc   : > { %v1154_v48 = vmul.f32 %v1147_v47, %v3795_v12 }
 0x5fe   : > { %v1157_v5 = vsub.f32 %v3976_v36, %v1154_v48 }
 0x600   : > { %v1160_v49 = vmul.f32 %v1157_v5, %v1157_v5 }
 0x602   : > { %v1163_v50 = vsel %vm621_vm0, %v1160_v49, 0.0  ;;  %v3342_v49 = vld [vmem:[%s4532_s15 + $0x38] sm:$0xff] }
 0x603   : > { %v1150_v51 = vpop.xlane.xlu1 %1149  ;;  %1164 = vadd.xlane.f32.xlu0 %v1163_v50  ;;  %1366 = vmatpush.bf16.msrb.mxu3 %v3342_v49  ;;  %v3341_v50 = vld [vmem:[%s4532_s15 + $0x30] sm:$0xff] }
 0x604   : > { %v1155_v52 = vmul.f32 %v1150_v51, %v3795_v12  ;;  %v3340_v51 = vld [vmem:[%s4532_s15 + $0x28] sm:$0xff] }
 0x606   : > { %v1158_v13 = vsub.f32 %v3981_v41, %v1155_v52  ;;  %v3339_v52 = vld [vmem:[%s4532_s15 + $0x20] sm:$0xff] }
 0x607   : > { %1367 = vmatpush.bf16.msrb.mxu3 %v3341_v50 }
 0x608   : > { %v1161_v53 = vmul.f32 %v1158_v13, %v1158_v13 }
 0x60a   : > { %v1166_v54 = vsel %vm621_vm0, %v1161_v53, 0.0  ;;  %v3337_v53 = vld [vmem:[%s4532_s15 + $0x10] sm:$0xff] }
 0x60b   : > { %1167 = vadd.xlane.f32.xlu1 %v1166_v54  ;;  %v1153_v55 = vpop.xlane.xlu2 %1152  ;;  %1368 = vmatpush.bf16.msrb.mxu3 %v3340_v51  ;;  %v3336_v54 = vld [vmem:[%s4532_s15 + $0x8] sm:$0xff] }
 0x60c   : > { %v1156_v56 = vmul.f32 %v1153_v55, %v3795_v12  ;;  %v3335_v55 = vld [vmem:[%s4532_s15] sm:$0xff] }
 0x60e   : > { %v1159_v57 = vsub.f32 %v3986_v45, %v1156_v56  ;;  %v3445_v56 = vld [vmem:[%s4531_s14] ss:$0 sm:$0xff] }
 0x60f   : > { %1369 = vmatpush.bf16.msrb.mxu3 %v3339_v52 }
 0x610   : > { %v1162_v59 = vmul.f32 %v1159_v57, %v1159_v57 }
 0x612   : > { %v1169_v60 = vsel %vm621_vm0, %v1162_v59, 0.0 }
 0x613   : > { %1170 = vadd.xlane.f32.xlu2 %v1169_v60 }
 0x676   : > { %v1165_v62 = vpop.xlane.xlu0 %1164 }
 0x677   : > { %v1172_v63 = vmul.f32 %v1165_v62, %v3795_v12 }
 0x679   : > { %v1175_v0 = vadd.f32 1e-05, %v1172_v63 }
 0x67b   : > { %3489 = vrsqrt.f32 %v1175_v0  ;;  %vm1184_vm1 = vweird.f32 %v1175_v0 }
 0x67e   : > { %v1168_v2 = vpop.xlane.xlu1 %1167 }
 0x67f   : > { %v1173_v3 = vmul.f32 %v1168_v2, %v3795_v12 }
 0x681   : > { %v3490_v4 = vpop.eup %3489  ;;  %v1176_v6 = vadd.f32 1e-05, %v1173_v3 }
 0x682   : > { %v1179_v7 = vmul.f32 %v3490_v4, %v1175_v0  ;;  %vm1185_vm15 = vweird.f32 %v3490_v4 }
 0x683   : > { %3491 = vrsqrt.f32 %v1176_v6  ;;  %vm1186_vm2 = vmor %vm1184_vm1, %vm1185_vm15  ;;  %vm1194_vm4 = vweird.f32 %v1176_v6 }
 0x684   : > { %v1180_v8 = vmul.f32 %v3490_v4, %v1179_v7 }
 0x686   : > { %v1181_v9 = vmul.f32 0.5, %v1180_v8  ;;  %v1171_v10 = vpop.xlane.xlu2 %1170 }
 0x687   : > { %v1174_v11 = vmul.f32 %v1171_v10, %v3795_v12 }
 0x688   : > { %v1182_v14 = vsub.f32 1.5, %v1181_v9 }
 0x689   : > { %v3492_v15 = vpop.eup %3491  ;;  %v1177_v16 = vadd.f32 1e-05, %v1174_v11 }
 0x68a   : > { %v1183_v18 = vmul.f32 %v3490_v4, %v1182_v14  ;;  %v1189_v19 = vmul.f32 %v3492_v15, %v1176_v6  ;;  %vm1195_vm3 = vweird.f32 %v3492_v15 }
 0x68b   : > { %3493 = vrsqrt.f32 %v1177_v16  ;;  %vm1196_vm6 = vmor %vm1194_vm4, %vm1195_vm3  ;;  %vm1204_vm8 = vweird.f32 %v1177_v16 }
 0x68c   : > { %v1190_v20 = vmul.f32 %v3492_v15, %v1189_v19  ;;  %v1187_v21 = vsel %vm1186_vm2, %v3490_v4, %v1183_v18 }
 0x68d   : > { %v1208_v25 = vmul.f32 %v1187_v21, %v1157_v5 }
 0x68e   : > { %v1191_v17 = vmul.f32 0.5, %v1190_v20 }
 0x68f   : > { %v1214_v33 = vmul.f32 %v3443_v26, %v1208_v25 }
 0x690   : > { %v1192_v23 = vsub.f32 1.5, %v1191_v17 }
 0x691   : > { %v3494_v24 = vpop.eup %3493  ;;  %v1220_v39 = vadd.f32 %v3444_v34, %v1214_v33 }
 0x692   : > { %v1193_v28 = vmul.f32 %v3492_v15, %v1192_v23  ;;  %v1199_v22 = vmul.f32 %v3494_v24, %v1177_v16  ;;  %vm1205_vm7 = vweird.f32 %v3494_v24 }
 0x693   : > { %vm1206_vm9 = vmor %vm1204_vm8, %vm1205_vm7 }
 0x694   : > { %v1197_v29 = vsel %vm1196_vm6, %v3492_v15, %v1193_v28  ;;  %v1200_v30 = vmul.f32 %v3494_v24, %v1199_v22 }
 0x695   : > { %v1209_v31 = vmul.f32 %v1197_v29, %v1158_v13  ;;  %v3338_v13 = vld [vmem:[%s4532_s15 + $0x18] sm:$0xff] }
 0x696   : > { %v1201_v35 = vmul.f32 0.5, %v1200_v30  ;;  %1370 = vmatpush.bf16.msrb.mxu3 %v3338_v13 }
 0x697   : > { %v1215_v38 = vmul.f32 %v3443_v26, %v1209_v31 }
 0x698   : > { %v1202_v27 = vsub.f32 1.5, %v1201_v35  ;;  %v3446_v35 = vld [vmem:[%s4533_s16] ss:$0 sm:$0xff] }
 0x699   : > { %v1221_v42 = vadd.f32 %v3444_v34, %v1215_v38 }
 0x69a   : > { %v1203_v43 = vmul.f32 %v3494_v24, %v1202_v27  ;;  %1371 = vmatpush.bf16.msrb.mxu3 %v3337_v53 }
 0x69b   : > { %v1223_v44 = vpack.c.bf16 %v1221_v42, %v1220_v39 }
 0x69c   : > { %v1207_v58 = vsel %vm1206_vm9, %v3494_v24, %v1203_v43 }
 0x69d   : > { %2966 = vmatmul.msk.bf16.vlgmr.msrb.gmra.mxu2 %vm621_vm0, %v1223_v44  ;;  %v1210_v46 = vmul.f32 %v1207_v58, %v1159_v57 }
 0x69e   : > { %1372 = vmatpush.bf16.msrb.mxu3 %v3336_v54 }
 0x69f   : > { %v1216_v47 = vmul.f32 %v3443_v26, %v1210_v46 }
 0x6a1   : > { %v1222_v48 = vadd.f32 %v3444_v34, %v1216_v47 }
 0x6a2   : > { %1373 = vmatpush.bf16.msrb.mxu3 %v3335_v55 }
 0x6a3   : > { %v1224_v5 = vpack.c.bf16 %v1222_v48, %v1222_v48 }
 0x6ad   : > { %2967 = vmatmul.msk.bf16.gmra.mxu2 %vm621_vm0, %v1224_v5 }
 0x720   : > { %v1260_v57 = vpop.f32.mrf.mxu2 }
 0x721   : > { %v1261_v59 = vadd.f32 %v3445_v56, %v1260_v57 }
 0x723   : > { %v1272_v60 = vmul.f32 0.044715, %v1261_v59  ;;  %v1269_v23 = vmul.f32 0.5, %v1261_v59 }
 0x725   : > { %v1275_v61 = vmul.f32 %v1272_v60, %v1261_v59 }
 0x727   : > { %v1278_v62 = vmul.f32 %v1275_v61, %v1261_v59 }
 0x728   : > { %v1262_v63 = vpop.f32.mrf.mxu2 }
 0x729   : > { %v1263_v0 = vadd.f32 %v3445_v56, %v1262_v63  ;;  %v1281_v1 = vadd.f32 %v1278_v62, %v1261_v59  ;;  %v3346_v63 = vld [vmem:[%s4524_s7 + $0x4c] sm:$0xf] }
 0x72b   : > { %v1273_v2 = vmul.f32 0.044715, %v1263_v0  ;;  %v1284_v4 = vmul.f32 0.7978846, %v1281_v1  ;;  %v1270_v24 = vmul.f32 0.5, %v1263_v0 }
 0x72c   : > { %v3025_v1 = vld [vmem:[%s4524_s7 + $0x48] sm:$0xf] }
 0x72d   : > { %v1276_v3 = vmul.f32 %v1273_v2, %v1263_v0  ;;  %3495 = vtanh.f32 %v1284_v4  ;;  %v3033_v4 = vld [vmem:[%s4524_s7 + $0x50] sm:$0xf] }
 0x72f   : > { %v1279_v6 = vmul.f32 %v1276_v3, %v1263_v0  ;;  %v3347_v3 = vld [vmem:[%s4524_s7 + $0x50] sm:$0xf0] }
 0x730   : > { %v1265_v7 = vpop.f32.mrf.mxu2 }
 0x731   : > { %v1266_v8 = vadd.f32 %v3445_v56, %v1265_v7  ;;  %v1282_v9 = vadd.f32 %v1279_v6, %v1263_v0  ;;  %v3027_v0 = vld [vmem:[%s4524_s7 + $0x54] sm:$0xf0]  ;;  %v3348_v6 = vld [vmem:[%s4524_s7 + $0x58] sm:$0xf0] }
 0x732   : > { %v3030_v2 = vor.u32 %v3346_v63, %v3027_v0 }
 0x733   : > { %v1285_v10 = vmul.f32 0.7978846, %v1282_v9  ;;  %v1274_v11 = vmul.f32 0.044715, %v1266_v8  ;;  %v3496_v15 = vpop.eup %3495  ;;  %v1271_v31 = vmul.f32 0.5, %v1266_v8  ;;  %v3034_v9 = vor.u32 %v3348_v6, %v3033_v4 }
 0x734   : > { %v1290_v20 = vadd.f32 1.0, %v3496_v15  ;;  %1551 = vmatpush.bf16.msra.mxu1 %v3030_v2  ;;  %v3343_v15 = vld [vmem:[%s4524_s7 + $0x34] sm:$0xf] }
 0x735   : > { %3497 = vtanh.f32 %v1285_v10  ;;  %v1277_v14 = vmul.f32 %v1274_v11, %v1266_v8  ;;  %1569 = vmatpush.bf16.msra.mxu2 %v3034_v9  ;;  %v3013_v11 = vld [vmem:[%s4524_s7 + $0x30] sm:$0xf] }
 0x736   : > { %v1293_v26 = vmul.f32 %v1290_v20, %v1269_v23  ;;  %v3021_v20 = vld [vmem:[%s4524_s7 + $0x38] sm:$0xf] }
 0x737   : > { %v1280_v16 = vmul.f32 %v1277_v14, %v1266_v8  ;;  %v3344_v14 = vld [vmem:[%s4524_s7 + $0x38] sm:$0xf0] }
 0x738   : > { %v1267_v18 = vpop.f32.mrf.mxu2 }
 0x739   : > { %v1283_v19 = vadd.f32 %v1280_v16, %v1266_v8  ;;  %v3026_v8 = vor.u32 %v3347_v3, %v3025_v1  ;;  %v3014_v18 = vor.u32 %v3344_v14, %v3013_v11 }
 0x73b   : > { %v3498_v21 = vpop.eup %3497  ;;  %v1286_v17 = vmul.f32 0.7978846, %v1283_v19  ;;  %1533 = vmatpush.bf16.msra.mxu0 %v3026_v8  ;;  %v3015_v19 = vld [vmem:[%s4524_s7 + $0x3c] sm:$0xf0] }
 0x73c   : > { %v1291_v25 = vadd.f32 1.0, %v3498_v21  ;;  %v3018_v21 = vor.u32 %v3343_v15, %v3015_v19 }
 0x73d   : > { %3499 = vtanh.f32 %v1286_v17  ;;  %v3345_v17 = vld [vmem:[%s4524_s7 + $0x40] sm:$0xf0] }
 0x73e   : > { %v1294_v28 = vmul.f32 %v1291_v25, %v1270_v24  ;;  %v3022_v23 = vor.u32 %v3345_v17, %v3021_v20  ;;  %1552 = vmatpush.bf16.msra.mxu1 %v3018_v21 }
 0x73f   : > { %1534 = vmatpush.bf16.msra.mxu0 %v3014_v18 }
 0x740   : > { %v1296_v22 = vpack.c.bf16 %v1294_v28, %v1293_v26  ;;  %1570 = vmatpush.bf16.msra.mxu2 %v3022_v23 }
 0x742   : > { %1374 = vmatmul.bf16.vlgmr.msrb.gmra.mxu3 %v1296_v22 }
 0x743   : > { %v3500_v29 = vpop.eup %3499 }
 0x744   : > { %v1292_v30 = vadd.f32 1.0, %v3500_v29 }
 0x746   : > { %v1295_v33 = vmul.f32 %v1292_v30, %v1271_v31 }
 0x748   : > { %v1297_v34 = vpack.c.bf16 %v1295_v33, %v1295_v33 }
 0x752   : > { %1379 = vmatmul.bf16.gmra.mxu3 %v1297_v34 }
 0x7c5   : > { %v1375_v38 = vpop.f32.mrf.mxu3 }
 0x7c6   : > { %v1376_v27 = vadd.f32 %v3446_v35, %v1375_v38 }
 0x7c8   : > { %v4047_v39 = vadd.f32 %v1376_v27, %v3976_v36 }
 0x7ca   : > { %v1391_v42 = vsel %vm621_vm0, %v4047_v39, 0.0 }
 0x7cb   : > { %1392 = vadd.xlane.f32.xlu0 %v1391_v42 }
 0x7cd   : > { %v1377_v43 = vpop.f32.mrf.mxu3 }
 0x7ce   : > { %v1378_v44 = vadd.f32 %v3446_v35, %v1377_v43 }
 0x7d0   : > { %v4052_v58 = vadd.f32 %v1378_v44, %v3981_v41 }
 0x7d2   : > { %v1394_v46 = vsel %vm621_vm0, %v4052_v58, 0.0 }
 0x7d3   : > { %1395 = vadd.xlane.f32.xlu1 %v1394_v46 }
 0x7d5   : > { %v1380_v47 = vpop.f32.mrf.mxu3 }
 0x7d6   : > { %v1381_v48 = vadd.f32 %v3446_v35, %v1380_v47 }
 0x7d8   : > { %v4057_v5 = vadd.f32 %v1381_v48, %v3986_v45 }
 0x7da   : > { %v1397_v36 = vsel %vm621_vm0, %v4057_v5, 0.0 }
 0x7db   : > { %1398 = vadd.xlane.f32.xlu2 %v1397_v36  ;;  %v3447_v36 = vld [vmem:[%s4561_s5 + $0x1] ss:$0 sm:$0xff] }
 0x7dd   : > { %v1382_v49 = vpop.f32.mrf.mxu3 }
 0x83e   : > { %v1393_v50 = vpop.xlane.xlu0 %1392 }
 0x83f   : > { %v1400_v51 = vmul.f32 %v1393_v50, %v3795_v12 }
 0x841   : > { %v4063_v41 = vsub.f32 %v4047_v39, %v1400_v51 }
 0x843   : > { %v1406_v52 = vmul.f32 %v4063_v41, %v4063_v41 }
 0x845   : > { %v1409_v13 = vsel %vm621_vm0, %v1406_v52, 0.0 }
 0x846   : > { %v1396_v53 = vpop.xlane.xlu1 %1395  ;;  %1410 = vadd.xlane.f32.xlu0 %v1409_v13 }
 0x847   : > { %v1401_v45 = vmul.f32 %v1396_v53, %v3795_v12  ;;  %v3448_v53 = vld [vmem:[%s4523_s6 + $0x1] ss:$0 sm:$0xff] }
 0x849   : > { %v4070_v54 = vsub.f32 %v4052_v58, %v1401_v45 }
 0x84b   : > { %v1407_v55 = vmul.f32 %v4070_v54, %v4070_v54 }
 0x84d   : > { %v1412_v56 = vsel %vm621_vm0, %v1407_v55, 0.0 }
 0x84e   : > { %1413 = vadd.xlane.f32.xlu1 %v1412_v56  ;;  %v1399_v57 = vpop.xlane.xlu2 %1398 }
 0x84f   : > { %v1402_v59 = vmul.f32 %v1399_v57, %v3795_v12 }
 0x851   : > { %v4077_v60 = vsub.f32 %v4057_v5, %v1402_v59 }
 0x853   : > { %v1408_v61 = vmul.f32 %v4077_v60, %v4077_v60 }
 0x855   : > { %v1415_v62 = vsel %vm621_vm0, %v1408_v61, 0.0 }
 0x856   : > { %1416 = vadd.xlane.f32.xlu2 %v1415_v62 }
 0x8b9   : > { %v1411_v7 = vpop.xlane.xlu0 %1410 }
 0x8ba   : > { %v1418_v10 = vmul.f32 %v1411_v7, %v3795_v12 }
 0x8bc   : > { %v1421_v16 = vadd.f32 1e-05, %v1418_v10  ;;  %v3010_v10 = vld [vmem:[%s4525_s8 + $0x3] sm:$0x7] }
 0x8bd   : > { %v1484_v11 = vperm.slane %v3010_v10, 1  ;;  %v1485_v21 = vperm.slane %v3010_v10, 2 }
 0x8be   : > { %3501 = vrsqrt.f32 %v1421_v16  ;;  %vm1430_vm12 = vweird.f32 %v1421_v16 }
 0x8c1   : > { %v1414_v24 = vpop.xlane.xlu1 %1413 }
 0x8c2   : > { %v1419_v25 = vmul.f32 %v1414_v24, %v3795_v12 }
 0x8c4   : > { %v3502_v26 = vpop.eup %3501  ;;  %v1422_v28 = vadd.f32 1e-05, %v1419_v25 }
 0x8c5   : > { %v1425_v22 = vmul.f32 %v3502_v26, %v1421_v16  ;;  %vm1431_vm11 = vweird.f32 %v3502_v26 }
 0x8c6   : > { %3503 = vrsqrt.f32 %v1422_v28  ;;  %vm1432_vm13 = vmor %vm1430_vm12, %vm1431_vm11  ;;  %vm1440_vm15 = vweird.f32 %v1422_v28 }
 0x8c7   : > { %v1426_v29 = vmul.f32 %v3502_v26, %v1425_v22 }
 0x8c9   : > { %v1427_v30 = vmul.f32 0.5, %v1426_v29  ;;  %v1417_v31 = vpop.xlane.xlu2 %1416 }
 0x8ca   : > { %v1420_v33 = vmul.f32 %v1417_v31, %v3795_v12 }
 0x8cb   : > { %v1428_v34 = vsub.f32 1.5, %v1427_v30 }
 0x8cc   : > { %v3504_v35 = vpop.eup %3503  ;;  %v1423_v38 = vadd.f32 1e-05, %v1420_v33 }
 0x8cd   : > { %v1429_v27 = vmul.f32 %v3502_v26, %v1428_v34  ;;  %v1435_v42 = vmul.f32 %v3504_v35, %v1422_v28  ;;  %vm1441_vm14 = vweird.f32 %v3504_v35  ;;  %v1483_v28 = vperm.slane %v3010_v10, 0 }
 0x8ce   : > { %3505 = vrsqrt.f32 %v1423_v38  ;;  %vm1442_vm1 = vmor %vm1440_vm15, %vm1441_vm14  ;;  %vm1450_vm3 = vweird.f32 %v1423_v38 }
 0x8cf   : > { %v1436_v43 = vmul.f32 %v3504_v35, %v1435_v42  ;;  %v1433_v44 = vsel %vm1432_vm13, %v3502_v26, %v1429_v27 }
 0x8d0   : > { %v1454_v49 = vmul.f32 %v1433_v44, %v4063_v41 }
 0x8d1   : > { %v1437_v46 = vmul.f32 0.5, %v1436_v43 }
 0x8d2   : > { %v1460_v45 = vmul.f32 %v3447_v36, %v1454_v49 }
 0x8d3   : > { %v1438_v47 = vsub.f32 1.5, %v1437_v46 }
 0x8d4   : > { %v3506_v48 = vpop.eup %3505  ;;  %v1466_v61 = vadd.f32 %v3448_v53, %v1460_v45 }
 0x8d5   : > { %v1439_v50 = vmul.f32 %v3504_v35, %v1438_v47  ;;  %v1445_v51 = vmul.f32 %v3506_v48, %v1423_v38  ;;  %vm1451_vm2 = vweird.f32 %v3506_v48 }
 0x8d6   : > { %vm1452_vm4 = vmor %vm1450_vm3, %vm1451_vm2 }
 0x8d7   : > { %v1443_v52 = vsel %vm1442_vm1, %v3504_v35, %v1439_v50  ;;  %v1446_v13 = vmul.f32 %v3506_v48, %v1445_v51 }
 0x8d8   : > { %v1455_v55 = vmul.f32 %v1443_v52, %v4070_v54 }
 0x8d9   : > { %v1447_v56 = vmul.f32 0.5, %v1446_v13 }
 0x8da   : > { %v1461_v57 = vmul.f32 %v3447_v36, %v1455_v55 }
 0x8db   : > { %v1448_v59 = vsub.f32 1.5, %v1447_v56 }
 0x8dc   : > { %v1467_v62 = vadd.f32 %v3448_v53, %v1461_v57 }
 0x8dd   : > { %v1449_v41 = vmul.f32 %v3506_v48, %v1448_v59 }
 0x8de   : > { %v1469_v63 = vpack.c.bf16 %v1467_v62, %v1466_v61 }
 0x8df   : > { %v1453_v0 = vsel %vm1452_vm4, %v3506_v48, %v1449_v41 }
 0x8e0   : > { %3035 = vmatmul.msk.bf16.vlgmr.msra.gmra.mxu0 %vm621_vm0, %v1469_v63  ;;  %3037 = vmatmul.msk.bf16.vlgmr.msra.gmra.mxu1 %vm621_vm0, %v1469_v63  ;;  %v1456_v1 = vmul.f32 %v1453_v0, %v4077_v60 }
 0x8e1   : > { %3039 = vmatmul.msk.bf16.vlgmr.msra.gmra.mxu2 %vm621_vm0, %v1469_v63 }
 0x8e2   : > { %v1462_v54 = vmul.f32 %v3447_v36, %v1456_v1 }
 0x8e4   : > { %v1468_v2 = vadd.f32 %v3448_v53, %v1462_v54 }
 0x8e6   : > { %v1470_v3 = vpack.c.bf16 %v1468_v2, %v1468_v2 }
 0x8f0   : > { %3036 = vmatmul.msk.bf16.gmra.mxu0 %vm621_vm0, %v1470_v3  ;;  %3038 = vmatmul.msk.bf16.gmra.mxu1 %vm621_vm0, %v1470_v3 }
 0x8f1   : > { %3040 = vmatmul.msk.bf16.gmra.mxu2 %vm621_vm0, %v1470_v3 }
 0x95d   : > { %v1536_v4 = vpop.f32.mrf.mxu0  ;;  %v1554_v6 = vpop.f32.mrf.mxu1 }
 0x95e   : > { %v1555_v20 = vadd.f32 %v1554_v6, %v1484_v11  ;;  %v1537_v42 = vadd.f32 %v1536_v4, %v1483_v28 }
 0x960   : > { %v1584_v31 = vpack.c.bf16 %v1555_v20, %v1555_v20  ;;  %v1581_v51 = vpack.c.bf16 %v1537_v42, %v1537_v42  ;;  %v3353_v42 = vld [vmem:[%s4526_s9 + $0x60] sm:$0xff] }
 0x962   : > { %v1603_v44 = vunpack.c.l.b16 %v1584_v31  ;;  %v1593_v55 = vunpack.c.l.b16 %v1581_v51  ;;  %v3354_v31 = vld [vmem:[%s4526_s9 + $0x68] sm:$0xff] }
 0x964   : > { %v1572_v7 = vpop.f32.mrf.mxu2 }
 0x965   : > { %v1538_v8 = vpop.f32.mrf.mxu0  ;;  %v1556_v9 = vpop.f32.mrf.mxu1  ;;  %v1573_v33 = vadd.f32 %v1572_v7, %v1485_v21 }
 0x966   : > { %v1557_v18 = vadd.f32 %v1556_v9, %v1484_v11  ;;  %v1539_v34 = vadd.f32 %v1538_v8, %v1483_v28 }
 0x967   : > { %v1587_v46 = vpack.c.bf16 %v1573_v33, %v1573_v33 }
 0x968   : > { %v1585_v23 = vpack.c.bf16 %v1557_v18, %v1557_v18  ;;  %v1582_v47 = vpack.c.bf16 %v1539_v34, %v1539_v34 }
 0x969   : > { %v1675_v13 = vunpack.c.l.b16 %v1587_v46 }
 0x96a   : > { %v1604_v38 = vunpack.c.l.b16 %v1585_v23  ;;  %v1594_v53 = vunpack.c.l.b16 %v1582_v47  ;;  %v3352_v47 = vld [vmem:[%s4526_s9 + $0x58] sm:$0xff] }
 0x96c   : > { %v1574_v60 = vpop.f32.mrf.mxu2  ;;  %v1606_v36 = vpack.c.b16 %v1604_v38, %v1603_v44  ;;  %v1596_v56 = vpack.c.b16 %v1594_v53, %v1593_v55  ;;  %v3349_v53 = vld [vmem:[%s4526_s9 + $0x40] sm:$0xff] }
 0x96d   : > { %v1541_v14 = vpop.f32.mrf.mxu0  ;;  %v1559_v15 = vpop.f32.mrf.mxu1  ;;  %v1575_v24 = vadd.f32 %v1574_v60, %v1485_v21 }
 0x96e   : > { %v1560_v16 = vadd.f32 %v1559_v15, %v1484_v11  ;;  %v1542_v57 = vadd.f32 %v1541_v14, %v1483_v28  ;;  %v3356_v28 = vld [vmem:[%s4526_s9 + $0x78] sm:$0xff] }
 0x96f   : > { %v1588_v27 = vpack.c.bf16 %v1575_v24, %v1575_v24  ;;  %1780 = vmatpush.bf16.msrb.mxu1 %v3356_v28 }
 0x970   : > { %v1586_v19 = vpack.c.bf16 %v1560_v16, %v1560_v16  ;;  %v1583_v59 = vpack.c.bf16 %v1542_v57, %v1542_v57 }
 0x971   : > { %v1676_v49 = vunpack.c.l.b16 %v1588_v27 }
 0x972   : > { %v1605_v17 = vunpack.c.l.b16 %v1586_v19  ;;  %v1595_v61 = vunpack.c.l.b16 %v1583_v59 }
 0x973   : > { %v1678_v45 = vpack.c.b16 %v1676_v49, %v1675_v13  ;;  %v3350_v13 = vld [vmem:[%s4526_s9 + $0x48] sm:$0xff] }
 0x974   : > { %v1607_v25 = vpack.c.b16 %v1605_v17, %v1605_v17  ;;  %v1577_v26 = vpop.f32.mrf.mxu2  ;;  %v1597_v62 = vpack.c.b16 %v1595_v61, %v1595_v61 }
 0x975   : > { %v1578_v22 = vadd.f32 %v1577_v26, %v1485_v21  ;;  %v1543_v29 = vpop.f32.mrf.mxu0  ;;  %v1561_v30 = vpop.f32.mrf.mxu1 }
 0x976   : > { %1616 = vmatpush.bf16.xpose.msra.mxu3 %v1607_v25  ;;  %v3355_v29 = vld [vmem:[%s4526_s9 + $0x70] sm:$0xff] }
 0x977   : > { %v1589_v35 = vpack.c.bf16 %v1578_v22, %v1578_v22  ;;  %1781 = vmatpush.bf16.msrb.mxu1 %v3355_v29  ;;  %v3357_v29 = vld [vmem:[%s4530_s13 + $0x10] sm:$0xff] }
 0x979   : > { %v1677_v43 = vunpack.c.l.b16 %v1589_v35 }
 0x97b   : > { %v1679_v48 = vpack.c.b16 %v1677_v43, %v1677_v43  ;;  %1782 = vmatpush.bf16.msrb.mxu1 %v3354_v31 }
 0x97c   : > { %v1579_v50 = vpop.f32.mrf.mxu2 }
 0x97d   : > { %v1688_v52 = vsel %vm1030_vm5, %v1679_v48, 0 }
 0x97e   : > { %1696 = vmatpush.bf16.msrb.mxu0 %v1688_v52  ;;  %1617 = vmatpush.bf16.xpose.msra.mxu3 %v1606_v36  ;;  %v3351_v52 = vld [vmem:[%s4526_s9 + $0x50] sm:$0xff] }
 0x97f   : > { %1783 = vmatpush.bf16.msrb.mxu1 %v3353_v42 }
 0x982   : > { %1697 = vmatpush.bf16.msrb.mxu0 %v1678_v45 }
 0x983   : > { %1784 = vmatpush.bf16.msrb.mxu1 %v3352_v47 }
 0x985   : > { %1618 = vmatmul.bf16.vlgmr.msra.gmra.mxu3 %v1596_v56 }
 0x987   : > { %1785 = vmatpush.bf16.msrb.mxu1 %v3351_v52 }
 0x98b   : > { %1786 = vmatpush.bf16.msrb.mxu1 %v3350_v13 }
 0x98f   : > { %1787 = vmatpush.bf16.msrb.mxu1 %v3349_v53  ;;  %v3450_v53 = vld [vmem:[%s4528_s11 + $0x1] ss:$0 sm:$0xff] }
 0x995   : > { %1623 = vmatmul.bf16.gmra.mxu3 %v1597_v62  ;;  %v3449_v62 = vld [vmem:[%s4527_s10 + $0x1] ss:$0 sm:$0xff] }
 0xa08   : > { %v1619_v41 = vpop.f32.mrf.mxu3 }
 0xa09   : > { %v1620_v63 = vadd.f32 %v1619_v41, %v3927_v32 }
 0xa0b   : > { %v1628_v0 = vsel %vm970_vm10, %v1620_v63, -inf }
 0xa0c   : > { %1629 = vmax.xlane.f32.xlu0 %v1628_v0 }
 0xa10   : > { %v1621_v1 = vpop.f32.mrf.mxu3 }
 0xa11   : > { %v1622_v54 = vadd.f32 %v1621_v1, %v3933_v37 }
 0xa13   : > { %v1631_v2 = vsel %vm970_vm10, %v1622_v54, -inf }
 0xa14   : > { %1632 = vmax.xlane.f32.xlu1 %v1631_v2 }
 0xa18   : > { %v1624_v3 = vpop.f32.mrf.mxu3 }
 0xa19   : > { %v1625_v4 = vadd.f32 %v1624_v3, %v3939_v40 }
 0xa1b   : > { %v1634_v6 = vsel %vm970_vm10, %v1625_v4, -inf }
 0xa1c   : > { %1635 = vmax.xlane.f32.xlu2 %v1634_v6 }
 0xa20   : > { %v1626_v7 = vpop.f32.mrf.mxu3 }
 0xa7f   : > { %v1630_v8 = vpop.xlane.xlu0 %1629 }
 0xa80   : > { %v1637_v9 = vsub.f32 %v1620_v63, %v1630_v8 }
 0xa82   : > { %v1640_v10 = vmul.f32 1.442695, %v1637_v9 }
 0xa84   : > { %3507 = vpow2.f32 %v1640_v10 }
 0xa87   : > { %v1633_v11 = vpop.xlane.xlu1 %1632 }
 0xa88   : > { %v1638_v60 = vsub.f32 %v1622_v54, %v1633_v11 }
 0xa8a   : > { %v3508_v14 = vpop.eup %3507  ;;  %v1642_v15 = vmul.f32 1.442695, %v1638_v60 }
 0xa8b   : > { %v1646_v16 = vsel %vm970_vm10, %v3508_v14, 0.0 }
 0xa8c   : > { %3509 = vpow2.f32 %v1642_v15  ;;  %1647 = vadd.xlane.f32.xlu0 %v1646_v16 }
 0xa8f   : > { %v1636_v18 = vpop.xlane.xlu2 %1635 }
 0xa90   : > { %v1639_v19 = vsub.f32 %v1625_v4, %v1636_v18 }
 0xa92   : > { %v3510_v20 = vpop.eup %3509  ;;  %v1644_v21 = vmul.f32 1.442695, %v1639_v19 }
 0xa93   : > { %v1649_v17 = vsel %vm970_vm10, %v3510_v20, 0.0 }
 0xa94   : > { %3511 = vpow2.f32 %v1644_v21  ;;  %1650 = vadd.xlane.f32.xlu1 %v1649_v17 }
 0xa9a   : > { %v3512_v23 = vpop.eup %3511 }
 0xa9b   : > { %v1652_v24 = vsel %vm970_vm10, %v3512_v23, 0.0 }
 0xa9c   : > { %1653 = vadd.xlane.f32.xlu2 %v1652_v24 }
 0xaff   : > { %v1648_v25 = vpop.xlane.xlu0 %1647 }
 0xb00   : > { %3513 = vrcp.f32 %v1648_v25  ;;  %v3358_v25 = vld [vmem:[%s4530_s13 + $0x18] sm:$0xff] }
 0xb01   : > { %1919 = vmatpush.bf16.msrb.mxu2 %v3358_v25 }
 0xb05   : > { %1920 = vmatpush.bf16.msrb.mxu2 %v3357_v29 }
 0xb06   : > { %v3514_v22 = vpop.eup %3513 }
 0xb07   : > { %v1651_v26 = vpop.xlane.xlu1 %1650  ;;  %v1658_v30 = vmul.f32 %v3514_v22, %v3508_v14 }
 0xb08   : > { %3515 = vrcp.f32 %v1651_v26 }
 0xb09   : > { %v1661_v34 = vpack.c.bf16 %v1658_v30, %v1658_v30 }
 0xb0b   : > { %v1667_v43 = vunpack.c.l.b16 %v1661_v34 }
 0xb0e   : > { %v3516_v33 = vpop.eup %3515 }
 0xb0f   : > { %v1659_v35 = vmul.f32 %v3516_v33, %v3510_v20  ;;  %v1654_v38 = vpop.xlane.xlu2 %1653 }
 0xb10   : > { %3517 = vrcp.f32 %v1654_v38 }
 0xb11   : > { %v1662_v27 = vpack.c.bf16 %v1659_v35, %v1659_v35 }
 0xb13   : > { %v1668_v44 = vunpack.c.l.b16 %v1662_v27 }
 0xb15   : > { %v1670_v46 = vpack.c.b16 %v1668_v44, %v1667_v43 }
 0xb16   : > { %v3518_v48 = vpop.eup %3517 }
 0xb17   : > { %3041 = vmatmul.msk.bf16.vlgmr.msrb.gmra.mxu0 %vm970_vm10, %v1670_v46  ;;  %v1660_v36 = vmul.f32 %v3518_v48, %v3512_v23 }
 0xb19   : > { %v1663_v49 = vpack.c.bf16 %v1660_v36, %v1660_v36 }
 0xb1b   : > { %v1669_v50 = vunpack.c.l.b16 %v1663_v49 }
 0xb1d   : > { %v1671_v51 = vpack.c.b16 %v1669_v50, %v1669_v50 }
 0xb27   : > { %3042 = vmatmul.msk.bf16.gmra.mxu0 %vm970_vm10, %v1671_v51 }
 0xb94   : > { %v1699_v45 = vpop.f32.mrf.mxu0 }
 0xb9c   : > { %v1701_v55 = vpop.f32.mrf.mxu0 }
 0xb9d   : > { %v1708_v56 = vpack.c.bf16 %v1701_v55, %v1699_v45 }
 0xb9f   : > { %1788 = vmatmul.bf16.vlgmr.msrb.gmra.mxu1 %v1708_v56 }
 0xba4   : > { %v1704_v57 = vpop.f32.mrf.mxu0 }
 0xba5   : > { %v1709_v61 = vpack.c.bf16 %v1704_v57, %v1704_v57 }
 0xbac   : > { %v1706_v59 = vpop.f32.mrf.mxu0 }
 0xbaf   : > { %1793 = vmatmul.bf16.gmra.mxu1 %v1709_v61  ;;  %v3451_v61 = vld [vmem:[%s4529_s12 + $0x1] ss:$0 sm:$0xff] }
 0xc1c   : > { %v1789_v41 = vpop.f32.mrf.mxu1 }
 0xc1d   : > { %v1790_v63 = vadd.f32 %v3449_v62, %v1789_v41 }
 0xc1f   : > { %v4179_v0 = vadd.f32 %v1790_v63, %v4047_v39 }
 0xc21   : > { %v1805_v1 = vsel %vm621_vm0, %v4179_v0, 0.0 }
 0xc22   : > { %1806 = vadd.xlane.f32.xlu0 %v1805_v1 }
 0xc24   : > { %v1791_v54 = vpop.f32.mrf.mxu1 }
 0xc25   : > { %v1792_v2 = vadd.f32 %v3449_v62, %v1791_v54 }
 0xc27   : > { %v4184_v3 = vadd.f32 %v1792_v2, %v4052_v58 }
 0xc29   : > { %v1808_v4 = vsel %vm621_vm0, %v4184_v3, 0.0 }
 0xc2a   : > { %1809 = vadd.xlane.f32.xlu1 %v1808_v4 }
 0xc2c   : > { %v1794_v6 = vpop.f32.mrf.mxu1 }
 0xc2d   : > { %v1795_v7 = vadd.f32 %v3449_v62, %v1794_v6 }
 0xc2f   : > { %v4189_v8 = vadd.f32 %v1795_v7, %v4057_v5 }
 0xc31   : > { %v1811_v39 = vsel %vm621_vm0, %v4189_v8, 0.0 }
 0xc32   : > { %1812 = vadd.xlane.f32.xlu2 %v1811_v39 }
 0xc34   : > { %v1796_v9 = vpop.f32.mrf.mxu1 }
 0xc95   : > { %v1807_v10 = vpop.xlane.xlu0 %1806 }
 0xc96   : > { %v1814_v11 = vmul.f32 %v1807_v10, %v3795_v12 }
 0xc98   : > { %v1817_v58 = vsub.f32 %v4179_v0, %v1814_v11 }
 0xc9a   : > { %v1820_v60 = vmul.f32 %v1817_v58, %v1817_v58 }
 0xc9c   : > { %v1823_v14 = vsel %vm621_vm0, %v1820_v60, 0.0  ;;  %v3366_v60 = vld [vmem:[%s4532_s15 + $0x78] sm:$0xff] }
 0xc9d   : > { %v1810_v15 = vpop.xlane.xlu1 %1809  ;;  %1824 = vadd.xlane.f32.xlu0 %v1823_v14  ;;  %2030 = vmatpush.bf16.msrb.mxu3 %v3366_v60  ;;  %v3365_v14 = vld [vmem:[%s4532_s15 + $0x70] sm:$0xff] }
 0xc9e   : > { %v1815_v16 = vmul.f32 %v1810_v15, %v3795_v12  ;;  %v3364_v15 = vld [vmem:[%s4532_s15 + $0x68] sm:$0xff] }
 0xca0   : > { %v1818_v5 = vsub.f32 %v4184_v3, %v1815_v16  ;;  %v3363_v16 = vld [vmem:[%s4532_s15 + $0x60] sm:$0xff] }
 0xca1   : > { %2031 = vmatpush.bf16.msrb.mxu3 %v3365_v14 }
 0xca2   : > { %v1821_v18 = vmul.f32 %v1818_v5, %v1818_v5 }
 0xca4   : > { %v1826_v19 = vsel %vm621_vm0, %v1821_v18, 0.0  ;;  %v3361_v18 = vld [vmem:[%s4532_s15 + $0x50] sm:$0xff] }
 0xca5   : > { %1827 = vadd.xlane.f32.xlu1 %v1826_v19  ;;  %v1813_v20 = vpop.xlane.xlu2 %1812  ;;  %2032 = vmatpush.bf16.msrb.mxu3 %v3364_v15  ;;  %v3360_v19 = vld [vmem:[%s4532_s15 + $0x48] sm:$0xff] }
 0xca6   : > { %v1816_v21 = vmul.f32 %v1813_v20, %v3795_v12  ;;  %v3359_v20 = vld [vmem:[%s4532_s15 + $0x40] sm:$0xff] }
 0xca8   : > { %v1819_v17 = vsub.f32 %v4189_v8, %v1816_v21  ;;  %v3452_v21 = vld [vmem:[%s4531_s14 + $0x1] ss:$0 sm:$0xff] }
 0xca9   : > { %2033 = vmatpush.bf16.msrb.mxu3 %v3363_v16 }
 0xcaa   : > { %v1822_v23 = vmul.f32 %v1819_v17, %v1819_v17 }
 0xcac   : > { %v1829_v24 = vsel %vm621_vm0, %v1822_v23, 0.0 }
 0xcad   : > { %1830 = vadd.xlane.f32.xlu2 %v1829_v24 }
 0xd10   : > { %v1825_v26 = vpop.xlane.xlu0 %1824 }
 0xd11   : > { %v1832_v28 = vmul.f32 %v1825_v26, %v3795_v12 }
 0xd13   : > { %v1835_v22 = vadd.f32 1e-05, %v1832_v28 }
 0xd15   : > { %3519 = vrsqrt.f32 %v1835_v22  ;;  %vm1844_vm7 = vweird.f32 %v1835_v22 }
 0xd18   : > { %v1828_v30 = vpop.xlane.xlu1 %1827 }
 0xd19   : > { %v1833_v31 = vmul.f32 %v1828_v30, %v3795_v12 }
 0xd1b   : > { %v3520_v33 = vpop.eup %3519  ;;  %v1836_v34 = vadd.f32 1e-05, %v1833_v31 }
 0xd1c   : > { %v1839_v35 = vmul.f32 %v3520_v33, %v1835_v22  ;;  %vm1845_vm6 = vweird.f32 %v3520_v33 }
 0xd1d   : > { %3521 = vrsqrt.f32 %v1836_v34  ;;  %vm1846_vm8 = vmor %vm1844_vm7, %vm1845_vm6  ;;  %vm1854_vm11 = vweird.f32 %v1836_v34 }
 0xd1e   : > { %v1840_v38 = vmul.f32 %v3520_v33, %v1839_v35 }
 0xd20   : > { %v1841_v27 = vmul.f32 0.5, %v1840_v38  ;;  %v1831_v42 = vpop.xlane.xlu2 %1830 }
 0xd21   : > { %v1834_v43 = vmul.f32 %v1831_v42, %v3795_v12 }
 0xd22   : > { %v1842_v44 = vsub.f32 1.5, %v1841_v27 }
 0xd23   : > { %v3522_v46 = vpop.eup %3521  ;;  %v1837_v47 = vadd.f32 1e-05, %v1834_v43 }
 0xd24   : > { %v1843_v48 = vmul.f32 %v3520_v33, %v1842_v44  ;;  %v1849_v36 = vmul.f32 %v3522_v46, %v1836_v34  ;;  %vm1855_vm9 = vweird.f32 %v3522_v46 }
 0xd25   : > { %3523 = vrsqrt.f32 %v1837_v47  ;;  %vm1856_vm12 = vmor %vm1854_vm11, %vm1855_vm9  ;;  %vm1864_vm14 = vweird.f32 %v1837_v47 }
 0xd26   : > { %v1850_v49 = vmul.f32 %v3522_v46, %v1849_v36  ;;  %v1847_v50 = vsel %vm1846_vm8, %v3520_v33, %v1843_v48 }
 0xd27   : > { %v1868_v45 = vmul.f32 %v1847_v50, %v1817_v58 }
 0xd28   : > { %v1851_v51 = vmul.f32 0.5, %v1850_v49 }
 0xd29   : > { %v1874_v62 = vmul.f32 %v3450_v53, %v1868_v45 }
 0xd2a   : > { %v1852_v52 = vsub.f32 1.5, %v1851_v51 }
 0xd2b   : > { %v3524_v13 = vpop.eup %3523  ;;  %v1880_v2 = vadd.f32 %v3451_v61, %v1874_v62 }
 0xd2c   : > { %v1853_v55 = vmul.f32 %v3522_v46, %v1852_v52  ;;  %v1859_v56 = vmul.f32 %v3524_v13, %v1837_v47  ;;  %vm1865_vm13 = vweird.f32 %v3524_v13 }
 0xd2d   : > { %vm1866_vm15 = vmor %vm1864_vm14, %vm1865_vm13 }
 0xd2e   : > { %v1857_v57 = vsel %vm1856_vm12, %v3522_v46, %v1853_v55  ;;  %v1860_v59 = vmul.f32 %v3524_v13, %v1859_v56 }
 0xd2f   : > { %v1869_v41 = vmul.f32 %v1857_v57, %v1818_v5  ;;  %v3362_v5 = vld [vmem:[%s4532_s15 + $0x58] sm:$0xff] }
 0xd30   : > { %v1861_v63 = vmul.f32 0.5, %v1860_v59  ;;  %2034 = vmatpush.bf16.msrb.mxu3 %v3362_v5 }
 0xd31   : > { %v1875_v1 = vmul.f32 %v3450_v53, %v1869_v41 }
 0xd32   : > { %v1862_v54 = vsub.f32 1.5, %v1861_v63  ;;  %v3453_v63 = vld [vmem:[%s4533_s16 + $0x1] ss:$0 sm:$0xff] }
 0xd33   : > { %v1881_v4 = vadd.f32 %v3451_v61, %v1875_v1 }
 0xd34   : > { %v1863_v6 = vmul.f32 %v3524_v13, %v1862_v54  ;;  %2035 = vmatpush.bf16.msrb.mxu3 %v3361_v18 }
 0xd35   : > { %v1883_v7 = vpack.c.bf16 %v1881_v4, %v1880_v2 }
 0xd36   : > { %v1867_v39 = vsel %vm1866_vm15, %v3524_v13, %v1863_v6 }
 0xd37   : > { %3107 = vmatmul.msk.bf16.vlgmr.msrb.gmra.mxu2 %vm621_vm0, %v1883_v7  ;;  %v1870_v9 = vmul.f32 %v1867_v39, %v1819_v17 }
 0xd38   : > { %2036 = vmatpush.bf16.msrb.mxu3 %v3360_v19 }
 0xd39   : > { %v1876_v10 = vmul.f32 %v3450_v53, %v1870_v9 }
 0xd3b   : > { %v1882_v11 = vadd.f32 %v3451_v61, %v1876_v10 }
 0xd3c   : > { %2037 = vmatpush.bf16.msrb.mxu3 %v3359_v20 }
 0xd3d   : > { %v1884_v58 = vpack.c.bf16 %v1882_v11, %v1882_v11 }
 0xd47   : > { %3108 = vmatmul.msk.bf16.gmra.mxu2 %vm621_vm0, %v1884_v58 }
 0xdba   : > { %v1922_v17 = vpop.f32.mrf.mxu2 }
 0xdbb   : > { %v1923_v23 = vadd.f32 %v3452_v21, %v1922_v17 }
 0xdbd   : > { %v1934_v24 = vmul.f32 0.044715, %v1923_v23  ;;  %v1931_v52 = vmul.f32 0.5, %v1923_v23 }
 0xdbf   : > { %v1937_v25 = vmul.f32 %v1934_v24, %v1923_v23 }
 0xdc1   : > { %v1940_v26 = vmul.f32 %v1937_v25, %v1923_v23 }
 0xdc2   : > { %v1924_v28 = vpop.f32.mrf.mxu2 }
 0xdc3   : > { %v1943_v22 = vadd.f32 %v1940_v26, %v1923_v23  ;;  %v1925_v29 = vadd.f32 %v3452_v21, %v1924_v28  ;;  %v3370_v28 = vld [vmem:[%s4524_s7 + $0x7c] sm:$0xf] }
 0xdc5   : > { %v1935_v30 = vmul.f32 0.044715, %v1925_v29  ;;  %v1946_v31 = vmul.f32 0.7978846, %v1943_v22  ;;  %v1932_v13 = vmul.f32 0.5, %v1925_v29 }
 0xdc6   : > { %v3185_v22 = vld [vmem:[%s4524_s7 + $0x84] sm:$0xf0] }
 0xdc7   : > { %v1938_v33 = vmul.f32 %v1935_v30, %v1925_v29  ;;  %3525 = vtanh.f32 %v1946_v31  ;;  %v3188_v30 = vor.u32 %v3370_v28, %v3185_v22  ;;  %v3371_v31 = vld [vmem:[%s4524_s7 + $0x80] sm:$0xf0] }
 0xdc9   : > { %v1941_v34 = vmul.f32 %v1938_v33, %v1925_v29  ;;  %v3191_v33 = vld [vmem:[%s4524_s7 + $0x80] sm:$0xf]  ;;  %2215 = vmatpush.bf16.msra.mxu1 %v3188_v30 }
 0xdca   : > { %v1927_v35 = vpop.f32.mrf.mxu2 }
 0xdcb   : > { %v1944_v38 = vadd.f32 %v1941_v34, %v1925_v29  ;;  %v1928_v27 = vadd.f32 %v3452_v21, %v1927_v35  ;;  %v3183_v29 = vld [vmem:[%s4524_s7 + $0x78] sm:$0xf]  ;;  %v3372_v34 = vld [vmem:[%s4524_s7 + $0x88] sm:$0xf0] }
 0xdcd   : > { %v1947_v42 = vmul.f32 0.7978846, %v1944_v38  ;;  %v1936_v43 = vmul.f32 0.044715, %v1928_v27  ;;  %v3526_v46 = vpop.eup %3525  ;;  %v1933_v61 = vmul.f32 0.5, %v1928_v27  ;;  %v3184_v38 = vor.u32 %v3371_v31, %v3183_v29 }
 0xdce   : > { %v1952_v49 = vadd.f32 1.0, %v3526_v46  ;;  %v3367_v46 = vld [vmem:[%s4524_s7 + $0x64] sm:$0xf] }
 0xdcf   : > { %3527 = vtanh.f32 %v1947_v42  ;;  %v1939_v44 = vmul.f32 %v1936_v43, %v1928_v27  ;;  %2197 = vmatpush.bf16.msra.mxu0 %v3184_v38  ;;  %v3171_v43 = vld [vmem:[%s4524_s7 + $0x60] sm:$0xf] }
 0xdd0   : > { %v1955_v45 = vmul.f32 %v1952_v49, %v1931_v52  ;;  %v3179_v49 = vld [vmem:[%s4524_s7 + $0x68] sm:$0xf] }
 0xdd1   : > { %v1942_v47 = vmul.f32 %v1939_v44, %v1928_v27  ;;  %v3368_v44 = vld [vmem:[%s4524_s7 + $0x68] sm:$0xf0] }
 0xdd2   : > { %v1929_v48 = vpop.f32.mrf.mxu2 }
 0xdd3   : > { %v1945_v36 = vadd.f32 %v1942_v47, %v1928_v27  ;;  %v3192_v27 = vor.u32 %v3372_v34, %v3191_v33  ;;  %v3172_v48 = vor.u32 %v3368_v44, %v3171_v43 }
 0xdd5   : > { %v3528_v50 = vpop.eup %3527  ;;  %v1948_v51 = vmul.f32 0.7978846, %v1945_v36  ;;  %2233 = vmatpush.bf16.msra.mxu2 %v3192_v27  ;;  %v3173_v36 = vld [vmem:[%s4524_s7 + $0x6c] sm:$0xf0]  ;;  %2198 = vmatpush.bf16.msra.mxu0 %v3172_v48 }
 0xdd6   : > { %v1953_v53 = vadd.f32 1.0, %v3528_v50  ;;  %v3176_v50 = vor.u32 %v3367_v46, %v3173_v36 }
 0xdd7   : > { %3529 = vtanh.f32 %v1948_v51  ;;  %v3369_v51 = vld [vmem:[%s4524_s7 + $0x70] sm:$0xf0] }
 0xdd8   : > { %v1956_v55 = vmul.f32 %v1953_v53, %v1932_v13  ;;  %v3180_v52 = vor.u32 %v3369_v51, %v3179_v49  ;;  %2216 = vmatpush.bf16.msra.mxu1 %v3176_v50 }
 0xdda   : > { %v1958_v56 = vpack.c.bf16 %v1956_v55, %v1955_v45  ;;  %2234 = vmatpush.bf16.msra.mxu2 %v3180_v52 }
 0xddc   : > { %2038 = vmatmul.bf16.vlgmr.msrb.gmra.mxu3 %v1958_v56 }
 0xddd   : > { %v3530_v57 = vpop.eup %3529 }
 0xdde   : > { %v1954_v59 = vadd.f32 1.0, %v3530_v57 }
 0xde0   : > { %v1957_v62 = vmul.f32 %v1954_v59, %v1933_v61 }
 0xde2   : > { %v1959_v41 = vpack.c.bf16 %v1957_v62, %v1957_v62 }
 0xdec   : > { %2043 = vmatmul.bf16.gmra.mxu3 %v1959_v41 }
 0xe5f   : > { %v2039_v1 = vpop.f32.mrf.mxu3 }
 0xe60   : > { %v2040_v54 = vadd.f32 %v3453_v63, %v2039_v1 }
 0xe62   : > { %v4250_v2 = vadd.f32 %v2040_v54, %v4179_v0 }
 0xe64   : > { %v2055_v4 = vsel %vm621_vm0, %v4250_v2, 0.0 }
 0xe65   : > { %2056 = vadd.xlane.f32.xlu0 %v2055_v4 }
 0xe67   : > { %v2041_v6 = vpop.f32.mrf.mxu3 }
 0xe68   : > { %v2042_v7 = vadd.f32 %v3453_v63, %v2041_v6 }
 0xe6a   : > { %v4255_v39 = vadd.f32 %v2042_v7, %v4184_v3 }
 0xe6c   : > { %v2058_v9 = vsel %vm621_vm0, %v4255_v39, 0.0 }
 0xe6d   : > { %2059 = vadd.xlane.f32.xlu1 %v2058_v9 }
 0xe6f   : > { %v2044_v10 = vpop.f32.mrf.mxu3 }
 0xe70   : > { %v2045_v11 = vadd.f32 %v3453_v63, %v2044_v10 }
 0xe72   : > { %v4260_v58 = vadd.f32 %v2045_v11, %v4189_v8 }
 0xe74   : > { %v2061_v0 = vsel %vm621_vm0, %v4260_v58, 0.0 }
 0xe75   : > { %2062 = vadd.xlane.f32.xlu2 %v2061_v0  ;;  %v3454_v0 = vld [vmem:[%s4561_s5 + $0x2] ss:$0 sm:$0xff] }
 0xe77   : > { %v2046_v60 = vpop.f32.mrf.mxu3 }
 0xed8   : > { %v2057_v14 = vpop.xlane.xlu0 %2056 }
 0xed9   : > { %v2064_v15 = vmul.f32 %v2057_v14, %v3795_v12 }
 0xedb   : > { %v4266_v3 = vsub.f32 %v4250_v2, %v2064_v15 }
 0xedd   : > { %v2070_v16 = vmul.f32 %v4266_v3, %v4266_v3 }
 0xedf   : > { %v2073_v5 = vsel %vm621_vm0, %v2070_v16, 0.0 }
 0xee0   : > { %v2060_v18 = vpop.xlane.xlu1 %2059  ;;  %2074 = vadd.xlane.f32.xlu0 %v2073_v5 }
 0xee1   : > { %v2065_v8 = vmul.f32 %v2060_v18, %v3795_v12  ;;  %v3455_v18 = vld [vmem:[%s4523_s6 + $0x2] ss:$0 sm:$0xff] }
 0xee3   : > { %v4273_v19 = vsub.f32 %v4255_v39, %v2065_v8 }
 0xee5   : > { %v2071_v20 = vmul.f32 %v4273_v19, %v4273_v19 }
 0xee7   : > { %v2076_v21 = vsel %vm621_vm0, %v2071_v20, 0.0 }
 0xee8   : > { %2077 = vadd.xlane.f32.xlu1 %v2076_v21  ;;  %v2063_v17 = vpop.xlane.xlu2 %2062 }
 0xee9   : > { %v2066_v23 = vmul.f32 %v2063_v17, %v3795_v12 }
 0xeeb   : > { %v4280_v24 = vsub.f32 %v4260_v58, %v2066_v23 }
 0xeed   : > { %v2072_v25 = vmul.f32 %v4280_v24, %v4280_v24 }
 0xeef   : > { %v2079_v26 = vsel %vm621_vm0, %v2072_v25, 0.0 }
 0xef0   : > { %2080 = vadd.xlane.f32.xlu2 %v2079_v26 }
 0xf53   : > { %v2075_v35 = vpop.xlane.xlu0 %2074 }
 0xf54   : > { %v2082_v42 = vmul.f32 %v2075_v35, %v3795_v12 }
 0xf56   : > { %v2085_v47 = vadd.f32 1e-05, %v2082_v42  ;;  %v3168_v42 = vld [vmem:[%s4525_s8 + $0x6] sm:$0x7] }
 0xf57   : > { %v2148_v43 = vperm.slane %v3168_v42, 1  ;;  %v2149_v50 = vperm.slane %v3168_v42, 2 }
 0xf58   : > { %3531 = vrsqrt.f32 %v2085_v47  ;;  %vm2094_vm2 = vweird.f32 %v2085_v47 }
 0xf5b   : > { %v2078_v13 = vpop.xlane.xlu1 %2077 }
 0xf5c   : > { %v2083_v53 = vmul.f32 %v2078_v13, %v3795_v12 }
 0xf5e   : > { %v3532_v45 = vpop.eup %3531  ;;  %v2086_v55 = vadd.f32 1e-05, %v2083_v53 }
 0xf5f   : > { %v2089_v56 = vmul.f32 %v3532_v45, %v2085_v47  ;;  %vm2095_vm1 = vweird.f32 %v3532_v45 }
 0xf60   : > { %3533 = vrsqrt.f32 %v2086_v55  ;;  %vm2096_vm3 = vmor %vm2094_vm2, %vm2095_vm1  ;;  %vm2104_vm6 = vweird.f32 %v2086_v55 }
 0xf61   : > { %v2090_v57 = vmul.f32 %v3532_v45, %v2089_v56 }
 0xf63   : > { %v2091_v59 = vmul.f32 0.5, %v2090_v57  ;;  %v2081_v61 = vpop.xlane.xlu2 %2080 }
 0xf64   : > { %v2084_v62 = vmul.f32 %v2081_v61, %v3795_v12 }
 0xf65   : > { %v2092_v41 = vsub.f32 1.5, %v2091_v59 }
 0xf66   : > { %v3534_v63 = vpop.eup %3533  ;;  %v2087_v1 = vadd.f32 1e-05, %v2084_v62 }
 0xf67   : > { %v2093_v54 = vmul.f32 %v3532_v45, %v2092_v41  ;;  %v2099_v4 = vmul.f32 %v3534_v63, %v2086_v55  ;;  %vm2105_vm4 = vweird.f32 %v3534_v63  ;;  %v2147_v55 = vperm.slane %v3168_v42, 0 }
 0xf68   : > { %3535 = vrsqrt.f32 %v2087_v1  ;;  %vm2106_vm7 = vmor %vm2104_vm6, %vm2105_vm4  ;;  %vm2114_vm9 = vweird.f32 %v2087_v1 }
 0xf69   : > { %v2100_v6 = vmul.f32 %v3534_v63, %v2099_v4  ;;  %v2097_v7 = vsel %vm2096_vm3, %v3532_v45, %v2093_v54 }
 0xf6a   : > { %v2118_v60 = vmul.f32 %v2097_v7, %v4266_v3 }
 0xf6b   : > { %v2101_v9 = vmul.f32 0.5, %v2100_v6 }
 0xf6c   : > { %v2124_v8 = vmul.f32 %v3454_v0, %v2118_v60 }
 0xf6d   : > { %v2102_v10 = vsub.f32 1.5, %v2101_v9 }
 0xf6e   : > { %v3536_v11 = vpop.eup %3535  ;;  %v2130_v25 = vadd.f32 %v3455_v18, %v2124_v8 }
 0xf6f   : > { %v2103_v14 = vmul.f32 %v3534_v63, %v2102_v10  ;;  %v2109_v15 = vmul.f32 %v3536_v11, %v2087_v1  ;;  %vm2115_vm8 = vweird.f32 %v3536_v11 }
 0xf70   : > { %vm2116_vm11 = vmor %vm2114_vm9, %vm2115_vm8  ;;  %vm2798_vm9 = vcmask 257024  }
 0xf71   : > { %v2107_v16 = vsel %vm2106_vm7, %v3534_v63, %v2103_v14  ;;  %v2110_v5 = vmul.f32 %v3536_v11, %v2109_v15 }
 0xf72   : > { %v2119_v20 = vmul.f32 %v2107_v16, %v4273_v19 }
 0xf73   : > { %v2111_v21 = vmul.f32 0.5, %v2110_v5 }
 0xf74   : > { %v2125_v17 = vmul.f32 %v3454_v0, %v2119_v20 }
 0xf75   : > { %v2112_v23 = vsub.f32 1.5, %v2111_v21 }
 0xf76   : > { %v2131_v26 = vadd.f32 %v3455_v18, %v2125_v17 }
 0xf77   : > { %v2113_v3 = vmul.f32 %v3536_v11, %v2112_v23 }
 0xf78   : > { %v2133_v28 = vpack.c.bf16 %v2131_v26, %v2130_v25 }
 0xf79   : > { %v2117_v22 = vsel %vm2116_vm11, %v3536_v11, %v2113_v3 }
 0xf7a   : > { %3193 = vmatmul.msk.bf16.vlgmr.msra.gmra.mxu0 %vm621_vm0, %v2133_v28  ;;  %3195 = vmatmul.msk.bf16.vlgmr.msra.gmra.mxu1 %vm621_vm0, %v2133_v28  ;;  %v2120_v29 = vmul.f32 %v2117_v22, %v4280_v24 }
 0xf7b   : > { %3197 = vmatmul.msk.bf16.vlgmr.msra.gmra.mxu2 %vm621_vm0, %v2133_v28 }
 0xf7c   : > { %v2126_v19 = vmul.f32 %v3454_v0, %v2120_v29 }
 0xf7e   : > { %v2132_v30 = vadd.f32 %v3455_v18, %v2126_v19 }
 0xf80   : > { %v2134_v31 = vpack.c.bf16 %v2132_v30, %v2132_v30 }
 0xf8a   : > { %3194 = vmatmul.msk.bf16.gmra.mxu0 %vm621_vm0, %v2134_v31  ;;  %3196 = vmatmul.msk.bf16.gmra.mxu1 %vm621_vm0, %v2134_v31 }
 0xf8b   : > { %3198 = vmatmul.msk.bf16.gmra.mxu2 %vm621_vm0, %v2134_v31 }
 0xff7   : > { %v2200_v33 = vpop.f32.mrf.mxu0  ;;  %v2218_v34 = vpop.f32.mrf.mxu1 }
 0xff8   : > { %v2219_v49 = vadd.f32 %v2218_v34, %v2148_v43  ;;  %v2201_v4 = vadd.f32 %v2200_v33, %v2147_v55 }
 0xffa   : > { %v2248_v61 = vpack.c.bf16 %v2219_v49, %v2219_v49  ;;  %v2245_v15 = vpack.c.bf16 %v2201_v4, %v2201_v4 }
 0xffc   : > { %v2267_v7 = vunpack.c.l.b16 %v2248_v61  ;;  %v2257_v20 = vunpack.c.l.b16 %v2245_v15  ;;  %v3373_v15 = vld [vmem:[%s4526_s9 + $0x80] sm:$0xff] }
 0xffe   : > { %v2236_v35 = vpop.f32.mrf.mxu2 }
 0xfff   : > { %v2202_v38 = vpop.f32.mrf.mxu0  ;;  %v2220_v27 = vpop.f32.mrf.mxu1  ;;  %v2237_v62 = vadd.f32 %v2236_v35, %v2149_v50 }
0x1000   : > { %v2221_v48 = vadd.f32 %v2220_v27, %v2148_v43  ;;  %v2203_v41 = vadd.f32 %v2202_v38, %v2147_v55 }
0x1001   : > { %v2251_v9 = vpack.c.bf16 %v2237_v62, %v2237_v62 }
0x1002   : > { %v2249_v52 = vpack.c.bf16 %v2221_v48, %v2221_v48  ;;  %v2246_v10 = vpack.c.bf16 %v2203_v41, %v2203_v41 }
0x1003   : > { %v2339_v5 = vunpack.c.l.b16 %v2251_v9 }
0x1004   : > { %v2268_v1 = vunpack.c.l.b16 %v2249_v52  ;;  %v2258_v18 = vunpack.c.l.b16 %v2246_v10 }
0x1006   : > { %v2238_v24 = vpop.f32.mrf.mxu2  ;;  %v2270_v0 = vpack.c.b16 %v2268_v1, %v2267_v7  ;;  %v2260_v21 = vpack.c.b16 %v2258_v18, %v2257_v20 }
0x1007   : > { %v2205_v44 = vpop.f32.mrf.mxu0  ;;  %v2223_v46 = vpop.f32.mrf.mxu1  ;;  %v2239_v13 = vadd.f32 %v2238_v24, %v2149_v50 }
0x1008   : > { %v2224_v47 = vadd.f32 %v2223_v46, %v2148_v43  ;;  %v2206_v17 = vadd.f32 %v2205_v44, %v2147_v55 }
0x1009   : > { %v2252_v54 = vpack.c.bf16 %v2239_v13, %v2239_v13  ;;  %v3380_v13 = vld [vmem:[%s4526_s9 + $0xb8] sm:$0xff] }
0x100a   : > { %v2250_v36 = vpack.c.bf16 %v2224_v47, %v2224_v47  ;;  %v2247_v23 = vpack.c.bf16 %v2206_v17, %v2206_v17  ;;  %2444 = vmatpush.bf16.msrb.mxu1 %v3380_v13  ;;  %v3456_v17 = vld [vmem:[%s4527_s10 + $0x2] ss:$0 sm:$0xff] }
0x100b   : > { %v2340_v60 = vunpack.c.l.b16 %v2252_v54 }
0x100c   : > { %v2269_v51 = vunpack.c.l.b16 %v2250_v36  ;;  %v2259_v25 = vunpack.c.l.b16 %v2247_v23 }
0x100d   : > { %v2342_v8 = vpack.c.b16 %v2340_v60, %v2339_v5  ;;  %v3375_v60 = vld [vmem:[%s4526_s9 + $0x90] sm:$0xff] }
0x100e   : > { %v2271_v53 = vpack.c.b16 %v2269_v51, %v2269_v51  ;;  %v2241_v45 = vpop.f32.mrf.mxu2  ;;  %v2261_v26 = vpack.c.b16 %v2259_v25, %v2259_v25 }
0x100f   : > { %v2242_v56 = vadd.f32 %v2241_v45, %v2149_v50  ;;  %v2207_v57 = vpop.f32.mrf.mxu0  ;;  %v2225_v59 = vpop.f32.mrf.mxu1  ;;  %v3379_v45 = vld [vmem:[%s4526_s9 + $0xb0] sm:$0xff] }
0x1010   : > { %2280 = vmatpush.bf16.xpose.msra.mxu3 %v2271_v53  ;;  %2445 = vmatpush.bf16.msrb.mxu1 %v3379_v45 }
0x1011   : > { %v2253_v63 = vpack.c.bf16 %v2242_v56, %v2242_v56  ;;  %v3378_v56 = vld [vmem:[%s4526_s9 + $0xa8] sm:$0xff] }
0x1013   : > { %v2341_v6 = vunpack.c.l.b16 %v2253_v63  ;;  %v3377_v63 = vld [vmem:[%s4526_s9 + $0xa0] sm:$0xff] }
0x1014   : > { %2446 = vmatpush.bf16.msrb.mxu1 %v3378_v56 }
0x1015   : > { %v2343_v11 = vpack.c.b16 %v2341_v6, %v2341_v6  ;;  %v3376_v6 = vld [vmem:[%s4526_s9 + $0x98] sm:$0xff] }
0x1016   : > { %v2243_v14 = vpop.f32.mrf.mxu2 }
0x1017   : > { %v2352_v16 = vsel %vm1030_vm5, %v2343_v11, 0  ;;  %v3374_v14 = vld [vmem:[%s4526_s9 + $0x88] sm:$0xff] }
0x1018   : > { %2360 = vmatpush.bf16.msrb.mxu0 %v2352_v16  ;;  %2281 = vmatpush.bf16.xpose.msra.mxu3 %v2270_v0 }
0x1019   : > { %2447 = vmatpush.bf16.msrb.mxu1 %v3377_v63 }
0x101c   : > { %2361 = vmatpush.bf16.msrb.mxu0 %v2342_v8 }
0x101d   : > { %2448 = vmatpush.bf16.msrb.mxu1 %v3376_v6 }
0x101f   : > { %2282 = vmatmul.bf16.vlgmr.msra.gmra.mxu3 %v2260_v21 }
0x1021   : > { %2449 = vmatpush.bf16.msrb.mxu1 %v3375_v60 }
0x1025   : > { %2450 = vmatpush.bf16.msrb.mxu1 %v3374_v14 }
0x1029   : > { %2451 = vmatpush.bf16.msrb.mxu1 %v3373_v15 }
0x102f   : > { %2287 = vmatmul.bf16.gmra.mxu3 %v2261_v26 }
0x10a2   : > { %v2283_v3 = vpop.f32.mrf.mxu3 }
0x10a3   : > { %v2284_v28 = vadd.f32 %v2283_v3, %v3927_v32 }
0x10a5   : > { %v2292_v22 = vsel %vm970_vm10, %v2284_v28, -inf }
0x10a6   : > { %2293 = vmax.xlane.f32.xlu0 %v2292_v22 }
0x10aa   : > { %v2285_v29 = vpop.f32.mrf.mxu3 }
0x10ab   : > { %v2286_v19 = vadd.f32 %v2285_v29, %v3933_v37 }
0x10ad   : > { %v2295_v30 = vsel %vm970_vm10, %v2286_v19, -inf }
0x10ae   : > { %2296 = vmax.xlane.f32.xlu1 %v2295_v30 }
0x10b2   : > { %v2288_v31 = vpop.f32.mrf.mxu3 }
0x10b3   : > { %v2289_v33 = vadd.f32 %v2288_v31, %v3939_v40 }
0x10b5   : > { %v2298_v34 = vsel %vm970_vm10, %v2289_v33, -inf }
0x10b6   : > { %2299 = vmax.xlane.f32.xlu2 %v2298_v34 }
0x10ba   : > { %v2290_v35 = vpop.f32.mrf.mxu3 }
0x1119   : > { %v2294_v38 = vpop.xlane.xlu0 %2293 }
0x111a   : > { %v2301_v27 = vsub.f32 %v2284_v28, %v2294_v38 }
0x111c   : > { %v2304_v42 = vmul.f32 1.442695, %v2301_v27 }
0x111e   : > { %3537 = vpow2.f32 %v2304_v42 }
0x1121   : > { %v2297_v32 = vpop.xlane.xlu1 %2296 }
0x1122   : > { %v2302_v43 = vsub.f32 %v2286_v19, %v2297_v32 }
0x1124   : > { %v3538_v24 = vpop.eup %3537  ;;  %v2306_v44 = vmul.f32 1.442695, %v2302_v43 }
0x1125   : > { %v2310_v37 = vsel %vm970_vm10, %v3538_v24, 0.0 }
0x1126   : > { %3539 = vpow2.f32 %v2306_v44  ;;  %2311 = vadd.xlane.f32.xlu0 %v2310_v37 }
0x1129   : > { %v2300_v46 = vpop.xlane.xlu2 %2299 }
0x112a   : > { %v2303_v47 = vsub.f32 %v2289_v33, %v2300_v46 }
0x112c   : > { %v3540_v48 = vpop.eup %3539  ;;  %v2308_v40 = vmul.f32 1.442695, %v2303_v47 }
0x112d   : > { %v2313_v36 = vsel %vm970_vm10, %v3540_v48, 0.0 }
0x112e   : > { %3541 = vpow2.f32 %v2308_v40  ;;  %2314 = vadd.xlane.f32.xlu1 %v2313_v36  ;;  %v3382_v36 = vld [vmem:[%s4530_s13 + $0x28] sm:$0xff] }
0x112f   : > { %2583 = vmatpush.bf16.msrb.mxu2 %v3382_v36 }
0x1134   : > { %v3542_v49 = vpop.eup %3541 }
0x1135   : > { %v2316_v50 = vsel %vm970_vm10, %v3542_v49, 0.0 }
0x1136   : > { %2317 = vadd.xlane.f32.xlu2 %v2316_v50 }
0x1199   : > { %v2312_v51 = vpop.xlane.xlu0 %2311 }
0x119a   : > { %3543 = vrcp.f32 %v2312_v51 }
0x11a0   : > { %v3544_v53 = vpop.eup %3543 }
0x11a1   : > { %v2315_v52 = vpop.xlane.xlu1 %2314  ;;  %v2322_v55 = vmul.f32 %v3544_v53, %v3538_v24 }
0x11a2   : > { %3545 = vrcp.f32 %v2315_v52  ;;  %v3381_v52 = vld [vmem:[%s4530_s13 + $0x20] sm:$0xff] }
0x11a3   : > { %v2325_v59 = vpack.c.bf16 %v2322_v55, %v2322_v55  ;;  %2584 = vmatpush.bf16.msrb.mxu2 %v3381_v52 }
0x11a5   : > { %v2331_v1 = vunpack.c.l.b16 %v2325_v59 }
0x11a8   : > { %v3546_v57 = vpop.eup %3545 }
0x11a9   : > { %v2323_v61 = vmul.f32 %v3546_v57, %v3540_v48  ;;  %v2318_v62 = vpop.xlane.xlu2 %2317 }
0x11aa   : > { %3547 = vrcp.f32 %v2318_v62 }
0x11ab   : > { %v2326_v41 = vpack.c.bf16 %v2323_v61, %v2323_v61 }
0x11ad   : > { %v2332_v54 = vunpack.c.l.b16 %v2326_v41 }
0x11af   : > { %v2334_v4 = vpack.c.b16 %v2332_v54, %v2331_v1 }
0x11b0   : > { %v3548_v7 = vpop.eup %3547 }
0x11b1   : > { %3199 = vmatmul.msk.bf16.vlgmr.msrb.gmra.mxu0 %vm970_vm10, %v2334_v4  ;;  %v2324_v9 = vmul.f32 %v3548_v7, %v3542_v49 }
0x11b3   : > { %v2327_v10 = vpack.c.bf16 %v2324_v9, %v2324_v9 }
0x11b5   : > { %v2333_v11 = vunpack.c.l.b16 %v2327_v10 }
0x11b7   : > { %v2335_v0 = vpack.c.b16 %v2333_v11, %v2333_v11 }
0x11c1   : > { %3200 = vmatmul.msk.bf16.gmra.mxu0 %vm970_vm10, %v2335_v0  ;;  %v3457_v0 = vld [vmem:[%s4528_s11 + $0x2] ss:$0 sm:$0xff] }
0x122e   : > { %v2363_v16 = vpop.f32.mrf.mxu0 }
0x1236   : > { %v2365_v5 = vpop.f32.mrf.mxu0 }
0x1237   : > { %v2372_v18 = vpack.c.bf16 %v2365_v5, %v2363_v16 }
0x1239   : > { %2452 = vmatmul.bf16.vlgmr.msrb.gmra.mxu1 %v2372_v18  ;;  %v3458_v18 = vld [vmem:[%s4529_s12 + $0x2] ss:$0 sm:$0xff] }
0x123e   : > { %v2368_v8 = vpop.f32.mrf.mxu0 }
0x123f   : > { %v2373_v21 = vpack.c.bf16 %v2368_v8, %v2368_v8 }
0x1246   : > { %v2370_v20 = vpop.f32.mrf.mxu0 }
0x1249   : > { %2457 = vmatmul.bf16.gmra.mxu1 %v2373_v21 }
0x12b6   : > { %v2453_v23 = vpop.f32.mrf.mxu1 }
0x12b7   : > { %v2454_v25 = vadd.f32 %v3456_v17, %v2453_v23 }
0x12b9   : > { %v4382_v26 = vadd.f32 %v2454_v25, %v4250_v2 }
0x12bb   : > { %v2469_v3 = vsel %vm621_vm0, %v4382_v26, 0.0 }
0x12bc   : > { %2470 = vadd.xlane.f32.xlu0 %v2469_v3 }
0x12be   : > { %v2455_v28 = vpop.f32.mrf.mxu1 }
0x12bf   : > { %v2456_v22 = vadd.f32 %v3456_v17, %v2455_v28 }
0x12c1   : > { %v4387_v29 = vadd.f32 %v2456_v22, %v4255_v39 }
0x12c3   : > { %v2472_v19 = vsel %vm621_vm0, %v4387_v29, 0.0 }
0x12c4   : > { %2473 = vadd.xlane.f32.xlu1 %v2472_v19 }
0x12c6   : > { %v2458_v30 = vpop.f32.mrf.mxu1 }
0x12c7   : > { %v2459_v31 = vadd.f32 %v3456_v17, %v2458_v30 }
0x12c9   : > { %v4392_v33 = vadd.f32 %v2459_v31, %v4260_v58 }
0x12cb   : > { %v2475_v2 = vsel %vm621_vm0, %v4392_v33, 0.0 }
0x12cc   : > { %2476 = vadd.xlane.f32.xlu2 %v2475_v2 }
0x12ce   : > { %v2460_v34 = vpop.f32.mrf.mxu1 }
0x132f   : > { %v2471_v35 = vpop.xlane.xlu0 %2470 }
0x1330   : > { %v2478_v38 = vmul.f32 %v2471_v35, %v3795_v12  ;;  %v3390_v35 = vld [vmem:[%s4532_s15 + $0xb8] sm:$0xff] }
0x1331   : > { %2694 = vmatpush.bf16.msrb.mxu3 %v3390_v35 }
0x1332   : > { %v2481_v39 = vsub.f32 %v4382_v26, %v2478_v38  ;;  %v3389_v38 = vld [vmem:[%s4532_s15 + $0xb0] sm:$0xff] }
0x1334   : > { %v2484_v27 = vmul.f32 %v2481_v39, %v2481_v39 }
0x1335   : > { %2695 = vmatpush.bf16.msrb.mxu3 %v3389_v38 }
0x1336   : > { %v2487_v42 = vsel %vm621_vm0, %v2484_v27, 0.0  ;;  %v3387_v27 = vld [vmem:[%s4532_s15 + $0xa0] sm:$0xff] }
0x1337   : > { %v2474_v32 = vpop.xlane.xlu1 %2473  ;;  %2488 = vadd.xlane.f32.xlu0 %v2487_v42  ;;  %v3386_v42 = vld [vmem:[%s4532_s15 + $0x98] sm:$0xff] }
0x1338   : > { %v2479_v43 = vmul.f32 %v2474_v32, %v3795_v12  ;;  %v3385_v32 = vld [vmem:[%s4532_s15 + $0x90] sm:$0xff] }
0x133a   : > { %v2482_v58 = vsub.f32 %v4387_v29, %v2479_v43  ;;  %v3384_v43 = vld [vmem:[%s4532_s15 + $0x88] sm:$0xff] }
0x133c   : > { %v2485_v24 = vmul.f32 %v2482_v58, %v2482_v58 }
0x133e   : > { %v2490_v44 = vsel %vm621_vm0, %v2485_v24, 0.0  ;;  %v3459_v24 = vld [vmem:[%s4531_s14 + $0x2] ss:$0 sm:$0xff] }
0x133f   : > { %2491 = vadd.xlane.f32.xlu1 %v2490_v44  ;;  %v2477_v37 = vpop.xlane.xlu2 %2476 }
0x1340   : > { %v2480_v46 = vmul.f32 %v2477_v37, %v3795_v12 }
0x1342   : > { %v2483_v47 = vsub.f32 %v4392_v33, %v2480_v46 }
0x1344   : > { %v2486_v48 = vmul.f32 %v2483_v47, %v2483_v47 }
0x1346   : > { %v2493_v40 = vsel %vm621_vm0, %v2486_v48, 0.0 }
0x1347   : > { %2494 = vadd.xlane.f32.xlu2 %v2493_v40 }
0x13aa   : > { %v2489_v49 = vpop.xlane.xlu0 %2488 }
0x13ab   : > { %v2496_v50 = vmul.f32 %v2489_v49, %v3795_v12 }
0x13ad   : > { %v2499_v51 = vadd.f32 1e-05, %v2496_v50 }
0x13af   : > { %3549 = vrsqrt.f32 %v2499_v51  ;;  %vm2508_vm10 = vweird.f32 %v2499_v51 }
0x13b2   : > { %v2492_v13 = vpop.xlane.xlu1 %2491 }
0x13b3   : > { %v2497_v53 = vmul.f32 %v2492_v13, %v3795_v12 }
0x13b5   : > { %v3550_v45 = vpop.eup %3549  ;;  %v2500_v55 = vadd.f32 1e-05, %v2497_v53 }
0x13b6   : > { %v2503_v56 = vmul.f32 %v3550_v45, %v2499_v51  ;;  %vm2509_vm5 = vweird.f32 %v3550_v45 }
0x13b7   : > { %3551 = vrsqrt.f32 %v2500_v55  ;;  %vm2510_vm12 = vmor %vm2508_vm10, %vm2509_vm5  ;;  %vm2518_vm14 = vweird.f32 %v2500_v55 }
0x13b8   : > { %v2504_v57 = vmul.f32 %v3550_v45, %v2503_v56 }
0x13ba   : > { %v2505_v59 = vmul.f32 0.5, %v2504_v57  ;;  %v2495_v61 = vpop.xlane.xlu2 %2494 }
0x13bb   : > { %v2498_v62 = vmul.f32 %v2495_v61, %v3795_v12 }
0x13bc   : > { %v2506_v41 = vsub.f32 1.5, %v2505_v59 }
0x13bd   : > { %v3552_v63 = vpop.eup %3551  ;;  %v2501_v1 = vadd.f32 1e-05, %v2498_v62 }
0x13be   : > { %v2507_v54 = vmul.f32 %v3550_v45, %v2506_v41  ;;  %v2513_v4 = vmul.f32 %v3552_v63, %v2500_v55  ;;  %vm2519_vm13 = vweird.f32 %v3552_v63 }
0x13bf   : > { %3553 = vrsqrt.f32 %v2501_v1  ;;  %vm2520_vm15 = vmor %vm2518_vm14, %vm2519_vm13  ;;  %vm2528_vm2 = vweird.f32 %v2501_v1 }
0x13c0   : > { %v2514_v6 = vmul.f32 %v3552_v63, %v2513_v4  ;;  %v2511_v7 = vsel %vm2510_vm12, %v3550_v45, %v2507_v54 }
0x13c1   : > { %v2532_v60 = vmul.f32 %v2511_v7, %v2481_v39  ;;  %v3388_v39 = vld [vmem:[%s4532_s15 + $0xa8] sm:$0xff] }
0x13c2   : > { %v2515_v9 = vmul.f32 0.5, %v2514_v6  ;;  %2696 = vmatpush.bf16.msrb.mxu3 %v3388_v39 }
0x13c3   : > { %v2538_v8 = vmul.f32 %v3457_v0, %v2532_v60 }
0x13c4   : > { %v2516_v10 = vsub.f32 1.5, %v2515_v9 }
0x13c5   : > { %v3554_v11 = vpop.eup %3553  ;;  %v2544_v25 = vadd.f32 %v3458_v18, %v2538_v8 }
0x13c6   : > { %v2517_v14 = vmul.f32 %v3552_v63, %v2516_v10  ;;  %v2523_v15 = vmul.f32 %v3554_v11, %v2501_v1  ;;  %vm2529_vm1 = vweird.f32 %v3554_v11  ;;  %2697 = vmatpush.bf16.msrb.mxu3 %v3387_v27 }
0x13c7   : > { %vm2530_vm3 = vmor %vm2528_vm2, %vm2529_vm1 }
0x13c8   : > { %v2521_v16 = vsel %vm2520_vm15, %v3552_v63, %v2517_v14  ;;  %v2524_v5 = vmul.f32 %v3554_v11, %v2523_v15 }
0x13c9   : > { %v2533_v20 = vmul.f32 %v2521_v16, %v2482_v58  ;;  %v3383_v58 = vld [vmem:[%s4532_s15 + $0x80] sm:$0xff] }
0x13ca   : > { %v2525_v21 = vmul.f32 0.5, %v2524_v5  ;;  %2698 = vmatpush.bf16.msrb.mxu3 %v3386_v42 }
0x13cb   : > { %v2539_v17 = vmul.f32 %v3457_v0, %v2533_v20 }
0x13cc   : > { %v2526_v23 = vsub.f32 1.5, %v2525_v21 }
0x13cd   : > { %v2545_v3 = vadd.f32 %v3458_v18, %v2539_v17 }
0x13ce   : > { %v2527_v28 = vmul.f32 %v3554_v11, %v2526_v23  ;;  %2699 = vmatpush.bf16.msrb.mxu3 %v3385_v32 }
0x13cf   : > { %v2547_v22 = vpack.c.bf16 %v2545_v3, %v2544_v25 }
0x13d0   : > { %v2531_v19 = vsel %vm2530_vm3, %v3554_v11, %v2527_v28 }
0x13d1   : > { %3265 = vmatmul.msk.bf16.vlgmr.msrb.gmra.mxu2 %vm621_vm0, %v2547_v22  ;;  %v2534_v30 = vmul.f32 %v2531_v19, %v2483_v47 }
0x13d2   : > { %2700 = vmatpush.bf16.msrb.mxu3 %v3384_v43 }
0x13d3   : > { %v2540_v31 = vmul.f32 %v3457_v0, %v2534_v30 }
0x13d5   : > { %v2546_v2 = vadd.f32 %v3458_v18, %v2540_v31  ;;  %v3460_v18 = vld [vmem:[%s4533_s16 + $0x2] ss:$0 sm:$0xff] }
0x13d6   : > { %2701 = vmatpush.bf16.msrb.mxu3 %v3383_v58 }
0x13d7   : > { %v2548_v34 = vpack.c.bf16 %v2546_v2, %v2546_v2 }
0x13e1   : > { %3266 = vmatmul.msk.bf16.gmra.mxu2 %vm621_vm0, %v2548_v34 }
0x1454   : > { %v2586_v44 = vpop.f32.mrf.mxu2 }
0x1455   : > { %v2587_v37 = vadd.f32 %v3459_v24, %v2586_v44 }
0x1457   : > { %v2598_v46 = vmul.f32 0.044715, %v2587_v37  ;;  %v2595_v6 = vmul.f32 0.5, %v2587_v37 }
0x1459   : > { %v2601_v47 = vmul.f32 %v2598_v46, %v2587_v37 }
0x145b   : > { %v2604_v48 = vmul.f32 %v2601_v47, %v2587_v37 }
0x145c   : > { %v2588_v40 = vpop.f32.mrf.mxu2 }
0x145d   : > { %v2607_v36 = vadd.f32 %v2604_v48, %v2587_v37  ;;  %v2589_v49 = vadd.f32 %v3459_v24, %v2588_v40 }
0x145f   : > { %v2599_v50 = vmul.f32 0.044715, %v2589_v49  ;;  %v2610_v51 = vmul.f32 0.7978846, %v2607_v36  ;;  %v2596_v7 = vmul.f32 0.5, %v2589_v49 }
0x1461   : > { %v2602_v52 = vmul.f32 %v2599_v50, %v2589_v49  ;;  %3555 = vtanh.f32 %v2610_v51 }
0x1463   : > { %v2605_v13 = vmul.f32 %v2602_v52, %v2589_v49 }
0x1464   : > { %v2591_v53 = vpop.f32.mrf.mxu2 }
0x1465   : > { %v2608_v45 = vadd.f32 %v2605_v13, %v2589_v49  ;;  %v2592_v55 = vadd.f32 %v3459_v24, %v2591_v53 }
0x1467   : > { %v2611_v56 = vmul.f32 0.7978846, %v2608_v45  ;;  %v2600_v57 = vmul.f32 0.044715, %v2592_v55  ;;  %v3556_v61 = vpop.eup %3555  ;;  %v2597_v15 = vmul.f32 0.5, %v2592_v55 }
0x1468   : > { %v2616_v1 = vadd.f32 1.0, %v3556_v61 }
0x1469   : > { %3557 = vtanh.f32 %v2611_v56  ;;  %v2603_v59 = vmul.f32 %v2600_v57, %v2592_v55 }
0x146a   : > { %v2619_v10 = vmul.f32 %v2616_v1, %v2595_v6 }
0x146b   : > { %v2606_v62 = vmul.f32 %v2603_v59, %v2592_v55 }
0x146c   : > { %v2593_v41 = vpop.f32.mrf.mxu2 }
0x146d   : > { %v2609_v63 = vadd.f32 %v2606_v62, %v2592_v55  ;;  %v3461_v62 = vld [vmem:[%s4534_s17] ss:$0 sm:$0xff] }
0x146f   : > { %v3558_v54 = vpop.eup %3557  ;;  %v2612_v4 = vmul.f32 0.7978846, %v2609_v63 }
0x1470   : > { %v2617_v9 = vadd.f32 1.0, %v3558_v54 }
0x1471   : > { %3559 = vtanh.f32 %v2612_v4 }
0x1472   : > { %v2620_v11 = vmul.f32 %v2617_v9, %v2596_v7 }
0x1474   : > { %v2622_v0 = vpack.c.bf16 %v2620_v11, %v2619_v10 }
0x1476   : > { %2702 = vmatmul.bf16.vlgmr.msrb.gmra.mxu3 %v2622_v0 }
0x1477   : > { %v3560_v60 = vpop.eup %3559 }
0x1478   : > { %v2618_v14 = vadd.f32 1.0, %v3560_v60 }
0x147a   : > { %v2621_v16 = vmul.f32 %v2618_v14, %v2597_v15 }
0x147c   : > { %v2623_v5 = vpack.c.bf16 %v2621_v16, %v2621_v16 }
0x1486   : > { %2707 = vmatmul.bf16.gmra.mxu3 %v2623_v5 }
0x14f9   : > { %v2703_v8 = vpop.f32.mrf.mxu3 }
0x14fa   : > { %v2704_v20 = vadd.f32 %v3460_v18, %v2703_v8 }
0x14fc   : > { %v2712_v21 = vadd.f32 %v2704_v20, %v4382_v26 }
0x14fe   : > { %v2717_v17 = vsel %vm621_vm0, %v2712_v21, 0.0 }
0x14ff   : > { %2718 = vadd.xlane.f32.xlu0 %v2717_v17 }
0x1501   : > { %v2705_v23 = vpop.f32.mrf.mxu3 }
0x1502   : > { %v2706_v25 = vadd.f32 %v3460_v18, %v2705_v23 }
0x1504   : > { %v2713_v3 = vadd.f32 %v2706_v25, %v4387_v29 }
0x1506   : > { %v2720_v28 = vsel %vm621_vm0, %v2713_v3, 0.0 }
0x1507   : > { %2721 = vadd.xlane.f32.xlu1 %v2720_v28 }
0x1509   : > { %v2708_v22 = vpop.f32.mrf.mxu3 }
0x150a   : > { %v2709_v19 = vadd.f32 %v3460_v18, %v2708_v22 }
0x150c   : > { %v2714_v30 = vadd.f32 %v2709_v19, %v4392_v33 }
0x150e   : > { %v2723_v31 = vsel %vm621_vm0, %v2714_v30, 0.0 }
0x150f   : > { %2724 = vadd.xlane.f32.xlu2 %v2723_v31 }
0x1511   : > { %v2710_v2 = vpop.f32.mrf.mxu3 }
0x1572   : > { %v2719_v34 = vpop.xlane.xlu0 %2718 }
0x1573   : > { %v2726_v26 = vmul.f32 %v2719_v34, %v3795_v12 }
0x1575   : > { %v2729_v35 = vsub.f32 %v2712_v21, %v2726_v26 }
0x1577   : > { %v2732_v38 = vmul.f32 %v2729_v35, %v2729_v35 }
0x1579   : > { %v2735_v39 = vsel %vm621_vm0, %v2732_v38, 0.0 }
0x157a   : > { %v2722_v27 = vpop.xlane.xlu1 %2721  ;;  %2736 = vadd.xlane.f32.xlu0 %v2735_v39 }
0x157b   : > { %v2727_v29 = vmul.f32 %v2722_v27, %v3795_v12 }
0x157d   : > { %v2730_v42 = vsub.f32 %v2713_v3, %v2727_v29 }
0x157f   : > { %v2733_v32 = vmul.f32 %v2730_v42, %v2730_v42 }
0x1581   : > { %v2738_v43 = vsel %vm621_vm0, %v2733_v32, 0.0 }
0x1582   : > { %2739 = vadd.xlane.f32.xlu1 %v2738_v43  ;;  %v2725_v33 = vpop.xlane.xlu2 %2724 }
0x1583   : > { %v2728_v58 = vmul.f32 %v2725_v33, %v3795_v12 }
0x1585   : > { %v4463_v24 = vsub.f32 %v2714_v30, %v2728_v58 }
0x1587   : > { %v2734_v44 = vmul.f32 %v4463_v24, %v4463_v24 }
0x1589   : > { %v2741_v37 = vsel %vm621_vm0, %v2734_v44, 0.0 }
0x158a   : > { %2742 = vadd.xlane.f32.xlu2 %v2741_v37 }
0x15ed   : > { %v2737_v46 = vpop.xlane.xlu0 %2736 }
0x15ee   : > { %v2744_v47 = vmul.f32 %v2737_v46, %v3795_v12 }
0x15f0   : > { %v2747_v48 = vadd.f32 1e-05, %v2744_v47 }
0x15f2   : > { %3561 = vrsqrt.f32 %v2747_v48  ;;  %vm2756_vm4 = vweird.f32 %v2747_v48 }
0x15f5   : > { %v2740_v40 = vpop.xlane.xlu1 %2739 }
0x15f6   : > { %v2745_v36 = vmul.f32 %v2740_v40, %v3795_v12 }
0x15f8   : > { %v3562_v49 = vpop.eup %3561  ;;  %v2748_v50 = vadd.f32 1e-05, %v2745_v36 }
0x15f9   : > { %v2751_v51 = vmul.f32 %v3562_v49, %v2747_v48  ;;  %vm2757_vm0 = vweird.f32 %v3562_v49 }
0x15fa   : > { %3563 = vrsqrt.f32 %v2748_v50  ;;  %vm2758_vm6 = vmor %vm2756_vm4, %vm2757_vm0  ;;  %vm2766_vm8 = vweird.f32 %v2748_v50 }
0x15fb   : > { %v2752_v52 = vmul.f32 %v3562_v49, %v2751_v51 }
0x15fd   : > { %v2753_v13 = vmul.f32 0.5, %v2752_v52  ;;  %v2743_v53 = vpop.xlane.xlu2 %2742 }
0x15fe   : > { %v2746_v45 = vmul.f32 %v2743_v53, %v3795_v12  ;;  %v3462_v12 = vld [vmem:[%s4535_s18] ss:$0 sm:$0xff] }
0x15ff   : > { %v2754_v55 = vsub.f32 1.5, %v2753_v13 }
0x1600   : > { %v3564_v56 = vpop.eup %3563  ;;  %v2749_v57 = vadd.f32 1e-05, %v2746_v45 }
0x1601   : > { %v2755_v59 = vmul.f32 %v3562_v49, %v2754_v55  ;;  %v2761_v61 = vmul.f32 %v3564_v56, %v2748_v50  ;;  %vm2767_vm7 = vweird.f32 %v3564_v56 }
0x1602   : > { %3565 = vrsqrt.f32 %v2749_v57  ;;  %vm2768_vm11 = vmor %vm2766_vm8, %vm2767_vm7  ;;  %vm2776_vm10 = vweird.f32 %v2749_v57 }
0x1603   : > { %v2759_v41 = vsel %vm2758_vm6, %v3562_v49, %v2755_v59  ;;  %v2762_v63 = vmul.f32 %v3564_v56, %v2761_v61 }
0x1604   : > { %v2780_v1 = vmul.f32 %v2759_v41, %v2729_v35 }
0x1605   : > { %v2763_v54 = vmul.f32 0.5, %v2762_v63 }
0x1606   : > { %v2786_v4 = vmul.f32 %v3461_v62, %v2780_v1 }
0x1607   : > { %v2764_v6 = vsub.f32 1.5, %v2763_v54 }
0x1608   : > { %v3566_v7 = vpop.eup %3565  ;;  %v2792_v9 = vadd.f32 %v3462_v12, %v2786_v4 }
0x1609   : > { %v2765_v10 = vmul.f32 %v3564_v56, %v2764_v6  ;;  %v2771_v11 = vmul.f32 %v3566_v7, %v2749_v57  ;;  %vm2777_vm5 = vweird.f32 %v3566_v7 }
0x160a   : > { %v2795_v0 = vpack.c.bf16 %v2792_v9, %v2792_v9  ;;  %vm2778_vm12 = vmor %vm2776_vm10, %vm2777_vm5 }
0x160b   : > { %v2769_v60 = vsel %vm2768_vm11, %v3564_v56, %v2765_v10  ;;  %v2772_v14 = vmul.f32 %v3566_v7, %v2771_v11 }
0x160c   : > { %v2781_v15 = vmul.f32 %v2769_v60, %v2730_v42  ;;  %2799 = vst.msk [vmem:[%s606_s27] sm:$0xf] %vm2798_vm9, %v2795_v0 }
0x160d   : > { %v2773_v16 = vmul.f32 0.5, %v2772_v14 }
0x160e   : > { %v2787_v5 = vmul.f32 %v3461_v62, %v2781_v15 }
0x160f   : > { %v2774_v18 = vsub.f32 1.5, %v2773_v16 }
0x1610   : > { %v2793_v8 = vadd.f32 %v3462_v12, %v2787_v5 }
0x1611   : > { %v2775_v20 = vmul.f32 %v3566_v7, %v2774_v18 }
0x1612   : > { %v2796_v21 = vpack.c.bf16 %v2793_v8, %v2793_v8 }
0x1613   : > { %v2779_v17 = vsel %vm2778_vm12, %v3566_v7, %v2775_v20 }
0x1614   : > { %v2782_v23 = vmul.f32 %v2779_v17, %v4463_v24  ;;  %2800 = vst.msk [vmem:[%s606_s27 + $0x4] sm:$0xf] %vm2798_vm9, %v2796_v21 }
0x1616   : > { %v2788_v25 = vmul.f32 %v3461_v62, %v2782_v23 }
0x1618   : > { %v2794_v3 = vadd.f32 %v3462_v12, %v2788_v25 }
0x161a   : > { %v2797_v28 = vpack.c.bf16 %v2794_v3, %v2794_v3 }
0x161c   : > { %2801 = vst.msk [vmem:[%s606_s27 + $0x8] sm:$0xf] %vm2798_vm9, %v2797_v28 }
0x161d   : > { %3594 = shalt.err (!%p3591_p3)
}
0x161e   : > { %s3634_s25 = smov 64   ;;  %s3635_s27 = smov 4  }
0x161f   : > { %3394 = dma.vmem_to_hbm [thread:$0]  (%p3774_p5), %s2816_s4, 192, %s2818_s26, %s2803_s1, %s3634_s25, %s3634_s25, %s3635_s27  }
0x1620 PF: > { %s4565_s20 = sld [smem:[#allocation5_spill]]  ;;  %p3400_p4 = scmp.ge.s32.totalorder %s3629_s21, 2 }
0x1622   : > { %p3397_p7 = pnand %p3400_p4, %p3778_p6 }
0x1624   : > { %p3398_p8 = pneg %p3397_p7 }
0x1626   : > { %s2832_s29 = sand.u32 1, %s4565_s20  }
0x1627   : > { %s2833_s22 = scalar_lea.sflag [#allocation3], %s2832_s29 }
0x1628   : > { %3612 = dma.done.wait (%p3398_p8), %s2833_s22, 192  }
0x1629   : > { %3614 = vsyncadd (%p3398_p8), %s2833_s22, 4294967104  ;;  %s4567_s21 = sld [smem:[#allocation7_spill]]  ;;  %s4570_s0 = smov %s3621_s30 }
0x162a   : > { %s4568_s28 = sld [smem:[#allocation6_spill]] }
0x162b   : > { %s4569_s20 = sld [smem:[#allocation8_spill]] }
0x162f   : > { %p29_p9 = scmp.ge.s32.totalorder %s4567_s21, 4  }
0x1630   : > { %s4571_s30 = smov %s4568_s28 }
0x1631   :  { %31 = sbr.rel (!%p29_p9) target bundleno = 10 (0xa), region = 158 }
0x1636   :  { %2839 = vsyncpa [#allocation3], 1 }
0x1637   :  { %2841 = vsyncpa [#allocation3 + $0x1], 1 }

</bundles_post_ra>
